<compile_context>
chip_gen: v5e
topology: v5e:2x2
jax: 0.10.0
libtpu: 0.0.40
codegen_flags: <defaults>
</compile_context>

<pallas_src>
import math
import functools

import jax
import jax.numpy as jnp
from jax.experimental import pallas as pl
from jax.experimental.pallas import tpu as pltpu


# ---------------------------------------------------------------------------
# In-kernel helpers (traced into the kernel body) -- f32 math
# ---------------------------------------------------------------------------
def _layer_norm(h, g, b, eps=1e-5):
    mu = jnp.mean(h, axis=-1, keepdims=True)
    var = jnp.mean(jnp.square(h - mu), axis=-1, keepdims=True)
    return (h - mu) * jax.lax.rsqrt(var + eps) * g + b


def _new_gelu(a):
    # NewGELUActivation: 0.5*x*(1+tanh(sqrt(2/pi)*(x+0.044715*x^3)))
    return 0.5 * a * (1.0 + jnp.tanh(math.sqrt(2.0 / math.pi) * (a + 0.044715 * a * a * a)))


# ---------------------------------------------------------------------------
# Pallas kernel: one (batch_block, layer) grid step
# ---------------------------------------------------------------------------
def vit_kernel(patches_ref, proj_w_ref, adj_ref,
               ln1_g_ref, ln1_b_ref, wq_ref, wk_ref, wv_ref, wo_ref,
               ln2_g_ref, ln2_b_ref, fc1_w_ref, fc1_b_ref, fc2_w_ref, fc2_b_ref,
               lnf_g_ref, lnf_b_ref, out_w_ref,
               out_ref,
               x_ref,                      # VMEM scratch: f32 residual stream
               *, num_heads, n_tokens):
    l = pl.program_id(1)
    n_layers = pl.num_programs(1)
    b_blk, n_pad, _ = patches_ref.shape
    M, D = x_ref.shape                      # M = b_blk * n_pad
    hd = D // num_heads
    scale = 1.0 / math.sqrt(hd)
    bf16 = jnp.bfloat16

    # ---- layer 0: patch embedding (conv-as-matmul); cls token / pos emb / conv
    # bias are folded into `adj` by the wrapper ----
    @pl.when(l == 0)
    def _embed():
        p = patches_ref[...].reshape(M, -1)                               # bf16
        emb = jnp.dot(p, proj_w_ref[...], preferred_element_type=jnp.float32)
        emb = emb.reshape(b_blk, n_pad, D) + adj_ref[...]
        x_ref[...] = emb.reshape(M, D)

    x = x_ref[...]                                                        # (M, D) f32

    # ---- multi-head self-attention (pre-LN) ----
    h = _layer_norm(x, ln1_g_ref[0], ln1_b_ref[0]).astype(bf16)
    q = jnp.dot(h, wq_ref[0], preferred_element_type=jnp.float32)
    k = jnp.dot(h, wk_ref[0], preferred_element_type=jnp.float32)
    v = jnp.dot(h, wv_ref[0], preferred_element_type=jnp.float32)
    q3 = q.reshape(b_blk, n_pad, D).astype(bf16)
    k3 = k.reshape(b_blk, n_pad, D).astype(bf16)
    v3 = v.reshape(b_blk, n_pad, D).astype(bf16)

    # mask padded key tokens (rows >= n_tokens are padding)
    kmask = jax.lax.broadcasted_iota(jnp.int32, (1, 1, n_pad), 2) < n_tokens

    head_outs = []
    for hh in range(num_heads):                       # static unroll over heads
        sl = slice(hh * hd, (hh + 1) * hd)
        s = jnp.einsum('bqd,bkd->bqk', q3[:, :, sl], k3[:, :, sl],
                       preferred_element_type=jnp.float32) * scale
        s = jnp.where(kmask, s, -1e9)
        m = jnp.max(s, axis=-1, keepdims=True)
        e = jnp.exp(s - m)                                            # f32 EUP
        p_attn = e * pl.reciprocal(jnp.sum(e, axis=-1, keepdims=True), approx=True)
        ho = jnp.einsum('bqk,bkd->bqd', p_attn.astype(bf16), v3[:, :, sl],
                        preferred_element_type=jnp.float32)
        head_outs.append(ho)
    # single fused output projection on the concatenated heads
    attn_cat = jnp.concatenate(head_outs, axis=-1).reshape(M, D).astype(bf16)
    # TODO(synk): reference EncoderBlock computes `attention_output + x` then discards
    # it (apparent bug); we implement the intended residual connection.
    x = x + jnp.dot(attn_cat, wo_ref[0], preferred_element_type=jnp.float32)

    # ---- MLP (pre-LN) ----
    h2 = _layer_norm(x, ln2_g_ref[0], ln2_b_ref[0]).astype(bf16)
    a = jnp.dot(h2, fc1_w_ref[0], preferred_element_type=jnp.float32) + fc1_b_ref[0]
    a = _new_gelu(a).astype(bf16)
    x = x + (jnp.dot(a, fc2_w_ref[0], preferred_element_type=jnp.float32) + fc2_b_ref[0])

    x_ref[...] = x

    # ---- final layer: LN, CLS projection, L2 normalization ----
    @pl.when(l == n_layers - 1)
    def _finalize():
        xf = _layer_norm(x, lnf_g_ref[...], lnf_b_ref[...])               # (M, D)
        xf3 = xf.reshape(b_blk, n_pad, D)
        row0 = jax.lax.broadcasted_iota(jnp.int32, (1, n_pad, 1), 1) == 0
        cls = jnp.sum(jnp.where(row0, xf3, 0.0), axis=1)                  # (b_blk, D)
        proj = jnp.dot(cls.astype(bf16), out_w_ref[...],
                       preferred_element_type=jnp.float32)                # (b_blk, out_pad)
        nrm2 = jnp.sum(proj * proj, axis=-1, keepdims=True)               # padded cols are 0
        out_ref[...] = proj * jax.lax.rsqrt(nrm2)


# ---------------------------------------------------------------------------
# Wrapper: patch extraction + param layout/padding + pallas_call
# ---------------------------------------------------------------------------
def vit_pallas(x_nchw, P, *, patch_size, num_heads, n_layers, batch_block=None):
    B, C, H, W = x_nchw.shape
    p = patch_size
    Hp, Wp = H // p, W // p
    Np = Hp * Wp
    N = Np + 1
    D = P["conv_w"].shape[0]
    Cpp = C * p * p
    out_dim = P["out_w"].shape[1]

    n_pad = ((N + 7) // 8) * 8                       # sublane-aligned token count
    out_pad = ((out_dim + 127) // 128) * 128         # lane-dense output width
    b_blk = min(B, 8) if batch_block is None else batch_block
    Bpad = ((B + b_blk - 1) // b_blk) * b_blk

    bf16, f32 = jnp.bfloat16, jnp.float32

    # im2col for stride==kernel Conv2d; row 0 of each image is a zero placeholder
    # for the class token (its value comes from `adj`), padded rows stay zero.
    xp = (x_nchw.reshape(B, C, Hp, p, Wp, p)
                 .transpose(0, 2, 4, 1, 3, 5)
                 .reshape(B, Np, Cpp))
    patches = jnp.zeros((Bpad, n_pad, Cpp), bf16).at[:B, 1:N, :].set(xp.astype(bf16))

    proj_w = P["conv_w"].reshape(D, Cpp).T.astype(bf16)              # (Cpp, D)
    # adj folds conv bias + positional embedding (+ cls token on row 0)
    adj = P["pos_emb"] + P["conv_b"][None, :]
    adj = adj.at[0].set(P["cls_tok"][0] + P["pos_emb"][0])
    adj = jnp.zeros((n_pad, D), f32).at[:N].set(adj)

    out_w = jnp.zeros((D, out_pad), bf16).at[:, :out_dim].set(P["out_w"].astype(bf16))

    wq, wk, wv, wo = (P[key].astype(bf16) for key in ("wq", "wk", "wv", "wo"))
    fc1_w, fc2_w = P["fc1_w"].astype(bf16), P["fc2_w"].astype(bf16)

    operands = [patches, proj_w, adj,
                P["ln1_g"], P["ln1_b"], wq, wk, wv, wo,
                P["ln2_g"], P["ln2_b"], fc1_w, P["fc1_b"], fc2_w, P["fc2_b"],
                P["lnf_g"], P["lnf_b"], out_w]

    def const_spec(a):            # whole array, same block every grid step
        nd = a.ndim
        return pl.BlockSpec(a.shape, lambda b, l, _n=nd: (0,) * _n)

    def layer_spec(a):            # leading dim = layer, streamed per grid step
        nd = a.ndim
        return pl.BlockSpec((1,) + a.shape[1:], lambda b, l, _n=nd: (l,) + (0,) * (_n - 1))

    in_specs = [pl.BlockSpec((b_blk, n_pad, Cpp), lambda b, l: (b, 0, 0)),
                const_spec(proj_w), const_spec(adj)]
    in_specs += [layer_spec(a) for a in operands[3:15]]
    in_specs += [const_spec(P["lnf_g"]), const_spec(P["lnf_b"]), const_spec(out_w)]

    out_spec = pl.BlockSpec((b_blk, out_pad), lambda b, l: (b, 0))

    kernel = functools.partial(vit_kernel, num_heads=num_heads, n_tokens=N)
    out = pl.pallas_call(
        kernel,
        out_shape=jax.ShapeDtypeStruct((Bpad, out_pad), jnp.float32),
        grid=(Bpad // b_blk, n_layers),
        in_specs=in_specs,
        out_specs=out_spec,
        scratch_shapes=[pltpu.VMEM((b_blk * n_pad, D), jnp.float32)],
        compiler_params=pltpu.CompilerParams(
            dimension_semantics=("parallel", "arbitrary")),
    )(*operands)
    return out[:B, :out_dim]


# ---------------------------------------------------------------------------
# Pure-JAX f32 reference (same intended semantics) for a correctness check
# ---------------------------------------------------------------------------
def vit_reference(x_nchw, P, *, patch_size, num_heads, n_layers):
    B, C, H, W = x_nchw.shape
    p = patch_size
    Hp, Wp = H // p, W // p
    D = P["conv_w"].shape[0]
    hd = D // num_heads

    xp = (x_nchw.reshape(B, C, Hp, p, Wp, p)
                 .transpose(0, 2, 4, 1, 3, 5)
                 .reshape(B, Hp * Wp, C * p * p))
    emb = jnp.einsum("bnc,dc->bnd", xp, P["conv_w"].reshape(D, -1)) + P["conv_b"]
    cls = jnp.broadcast_to(P["cls_tok"][None], (B, 1, D))
    x = jnp.concatenate([cls, emb], axis=1) + P["pos_emb"][None]

    def ln(h, g, b):
        mu = h.mean(-1, keepdims=True)
        var = ((h - mu) ** 2).mean(-1, keepdims=True)
        return (h - mu) / jnp.sqrt(var + 1e-5) * g + b

    for l in range(n_layers):
        h = ln(x, P["ln1_g"][l, 0], P["ln1_b"][l, 0])
        q, k, v = h @ P["wq"][l], h @ P["wk"][l], h @ P["wv"][l]
        split = lambda t: t.reshape(B, -1, num_heads, hd).transpose(0, 2, 1, 3)
        qh, kh, vh = split(q), split(k), split(v)
        s = jnp.einsum("bhqd,bhkd->bhqk", qh, kh) / math.sqrt(hd)
        aw = jax.nn.softmax(s, axis=-1)
        o = jnp.einsum("bhqk,bhkd->bhqd", aw, vh).transpose(0, 2, 1, 3).reshape(B, -1, D)
        x = x + o @ P["wo"][l]
        h2 = ln(x, P["ln2_g"][l, 0], P["ln2_b"][l, 0])
        a = h2 @ P["fc1_w"][l] + P["fc1_b"][l, 0]
        a = 0.5 * a * (1.0 + jnp.tanh(math.sqrt(2.0 / math.pi) * (a + 0.044715 * a ** 3)))
        x = x + (a @ P["fc2_w"][l] + P["fc2_b"][l, 0])

    x = ln(x, P["lnf_g"][0], P["lnf_b"][0])
    cls_t = x[:, 0] @ P["out_w"]
    return cls_t / jnp.linalg.norm(cls_t, axis=-1, keepdims=True)


# ---------------------------------------------------------------------------
def make_params(key, *, d_model, num_channels, patch_size, num_patches, n_layers, out_dim):
    D, L = d_model, n_layers
    ks = jax.random.split(key, 12)
    f32 = jnp.float32
    return dict(
        conv_w=jax.random.normal(ks[0], (D, num_channels, patch_size, patch_size), f32) * 0.02,
        conv_b=jax.random.normal(ks[1], (D,), f32) * 0.02,
        cls_tok=jax.random.normal(ks[2], (1, D), f32),                 # torch.randn
        pos_emb=jax.random.normal(ks[3], (num_patches + 1, D), f32),   # torch.randn
        ln1_g=jnp.ones((L, 1, D), f32), ln1_b=jnp.zeros((L, 1, D), f32),
        wq=jax.random.normal(ks[4], (L, D, D), f32) * 0.02,
        wk=jax.random.normal(ks[5], (L, D, D), f32) * 0.02,
        wv=jax.random.normal(ks[6], (L, D, D), f32) * 0.02,
        wo=jax.random.normal(ks[7], (L, D, D), f32) * 0.02,
        ln2_g=jnp.ones((L, 1, D), f32), ln2_b=jnp.zeros((L, 1, D), f32),
        fc1_w=jax.random.normal(ks[8], (L, D, 4 * D), f32) * 0.02,
        fc1_b=jax.random.normal(ks[9], (L, 1, 4 * D), f32) * 0.02,
        fc2_w=jax.random.normal(ks[10], (L, 4 * D, D), f32) * 0.02,
        fc2_b=jax.random.normal(ks[11], (L, 1, D), f32) * 0.02,
        lnf_g=jnp.ones((1, D), f32), lnf_b=jnp.zeros((1, D), f32),
        out_w=jax.random.normal(jax.random.fold_in(key, 99), (D, out_dim), f32),  # torch.randn
    )


if __name__ == "__main__":
    # Small ViT config: d_model=32, heads=4, layers=2, 16x16 image, 4x4 patches -> 16 patches + CLS
    B, C, H, W = 2, 3, 16, 16
    patch_size, d_model, num_heads, n_layers, out_dim = 4, 32, 4, 2, 16
    num_patches = (H // patch_size) * (W // patch_size)

    key = jax.random.PRNGKey(0)
    kx, kp = jax.random.split(key)
    x = jax.random.normal(kx, (B, C, H, W), jnp.float32)
    P = make_params(kp, d_model=d_model, num_channels=C, patch_size=patch_size,
                    num_patches=num_patches, n_layers=n_layers, out_dim=out_dim)

    out = vit_pallas(x, P, patch_size=patch_size, num_heads=num_heads, n_layers=n_layers)
    out = jax.block_until_ready(out)

    ref = vit_reference(x, P, patch_size=patch_size, num_heads=num_heads, n_layers=n_layers)
    assert out.shape == (B, out_dim)
    assert bool(jnp.all(jnp.isfinite(out)))
    # bf16 matmuls (f32 accumulation) vs f32 reference -> looser tolerance
    assert bool(jnp.allclose(out, ref, atol=3e-2, rtol=3e-2)), "mismatch vs JAX reference"
    print("KERNEL_OK")
</pallas_src>

<mosaic_0001>
module attributes {stable_mosaic.version = 11 : i64} {
  func.func @vit_kernel(%arg0: i32, %arg1: i32, %arg2: memref<2x24x48xbf16, #tpu.memory_space<vmem>>, %arg3: memref<48x32xbf16, #tpu.memory_space<vmem>>, %arg4: memref<24x32xf32, #tpu.memory_space<vmem>>, %arg5: memref<1x1x32xf32, #tpu.memory_space<vmem>>, %arg6: memref<1x1x32xf32, #tpu.memory_space<vmem>>, %arg7: memref<1x32x32xbf16, #tpu.memory_space<vmem>>, %arg8: memref<1x32x32xbf16, #tpu.memory_space<vmem>>, %arg9: memref<1x32x32xbf16, #tpu.memory_space<vmem>>, %arg10: memref<1x32x32xbf16, #tpu.memory_space<vmem>>, %arg11: memref<1x1x32xf32, #tpu.memory_space<vmem>>, %arg12: memref<1x1x32xf32, #tpu.memory_space<vmem>>, %arg13: memref<1x32x128xbf16, #tpu.memory_space<vmem>>, %arg14: memref<1x1x128xf32, #tpu.memory_space<vmem>>, %arg15: memref<1x128x32xbf16, #tpu.memory_space<vmem>>, %arg16: memref<1x1x32xf32, #tpu.memory_space<vmem>>, %arg17: memref<1x32xf32, #tpu.memory_space<vmem>>, %arg18: memref<1x32xf32, #tpu.memory_space<vmem>>, %arg19: memref<32x128xbf16, #tpu.memory_space<vmem>>, %arg20: memref<2x128xf32, #tpu.memory_space<vmem>>, %arg21: memref<48x32xf32, #tpu.memory_space<vmem>>) attributes {dimension_semantics = [#tpu.dimension_semantics<parallel>, #tpu.dimension_semantics<arbitrary>], iteration_bounds = array<i64: 1, 2>, scalar_prefetch = 0 : i64, scratch_operands = 1 : i64, tpu.core_type = #tpu.core_type<tc>, window_params = [{transform_indices = @transform_0, window_bounds = array<i64: 2, 24, 48>}, {pipeline_mode = #tpu.pipeline_mode<synchronous>, transform_indices = @transform_1, window_bounds = array<i64: 48, 32>}, {pipeline_mode = #tpu.pipeline_mode<synchronous>, transform_indices = @transform_2, window_bounds = array<i64: 24, 32>}, {transform_indices = @transform_3, window_bounds = array<i64: 1, 1, 32>}, {transform_indices = @transform_4, window_bounds = array<i64: 1, 1, 32>}, {transform_indices = @transform_5, window_bounds = array<i64: 1, 32, 32>}, {transform_indices = @transform_6, window_bounds = array<i64: 1, 32, 32>}, {transform_indices = @transform_7, window_bounds = array<i64: 1, 32, 32>}, {transform_indices = @transform_8, window_bounds = array<i64: 1, 32, 32>}, {transform_indices = @transform_9, window_bounds = array<i64: 1, 1, 32>}, {transform_indices = @transform_10, window_bounds = array<i64: 1, 1, 32>}, {transform_indices = @transform_11, window_bounds = array<i64: 1, 32, 128>}, {transform_indices = @transform_12, window_bounds = array<i64: 1, 1, 128>}, {transform_indices = @transform_13, window_bounds = array<i64: 1, 128, 32>}, {transform_indices = @transform_14, window_bounds = array<i64: 1, 1, 32>}, {pipeline_mode = #tpu.pipeline_mode<synchronous>, transform_indices = @transform_15, window_bounds = array<i64: 1, 32>}, {pipeline_mode = #tpu.pipeline_mode<synchronous>, transform_indices = @transform_16, window_bounds = array<i64: 1, 32>}, {pipeline_mode = #tpu.pipeline_mode<synchronous>, transform_indices = @transform_17, window_bounds = array<i64: 32, 128>}, {transform_indices = @transform_18, window_bounds = array<i64: 2, 128>}]} {
    %c0_i32 = arith.constant 0 : i32
    %0 = arith.cmpi eq, %arg1, %c0_i32 : i32
    %1 = arith.extui %0 : i1 to i32
    %c0_i32_0 = arith.constant 0 : i32
    %2 = arith.cmpi ne, %1, %c0_i32_0 : i32
    scf.if %2 {
      %c0_84 = arith.constant 0 : index
      %c0_85 = arith.constant 0 : index
      %c0_86 = arith.constant 0 : index
      %204 = vector.load %arg2[%c0_84, %c0_85, %c0_86] : memref<2x24x48xbf16, #tpu.memory_space<vmem>>, vector<2x24x48xbf16>
      %205 = vector.shape_cast %204 : vector<2x24x48xbf16> to vector<48x48xbf16>
      %c0_87 = arith.constant 0 : index
      %c0_88 = arith.constant 0 : index
      %206 = vector.load %arg3[%c0_87, %c0_88] : memref<48x32xbf16, #tpu.memory_space<vmem>>, vector<48x32xbf16>
      %cst_89 = arith.constant dense<0.000000e+00> : vector<48x32xf32>
      %207 = tpu.matmul %205, %206, %cst_89 {dimension_numbers = #tpu.dot_dimension_numbers<[1], [0], [0], [1], [0, 0, 1, 1], [], []>} : vector<48x48xbf16>, vector<48x32xbf16>, vector<48x32xf32> -> vector<48x32xf32>
      %208 = vector.shape_cast %207 : vector<48x32xf32> to vector<2x24x32xf32>
      %c0_90 = arith.constant 0 : index
      %c0_91 = arith.constant 0 : index
      %209 = vector.load %arg4[%c0_90, %c0_91] : memref<24x32xf32, #tpu.memory_space<vmem>>, vector<24x32xf32>
      %210 = vector.shape_cast %209 : vector<24x32xf32> to vector<1x24x32xf32>
      %211 = vector.broadcast %210 : vector<1x24x32xf32> to vector<2x24x32xf32>
      %212 = arith.addf %208, %211 : vector<2x24x32xf32>
      %213 = vector.shape_cast %212 : vector<2x24x32xf32> to vector<48x32xf32>
      %c0_92 = arith.constant 0 : index
      %c0_93 = arith.constant 0 : index
      %214 = vector.load %arg21[%c0_92, %c0_93] : memref<48x32xf32, #tpu.memory_space<vmem>>, vector<48x32xf32>
      tpu.vector_store %arg21[%c0_92, %c0_93], %213 {strides = array<i32>} : memref<48x32xf32, #tpu.memory_space<vmem>>, vector<48x32xf32>,
    } else {
    }
    %c0 = arith.constant 0 : index
    %c0_1 = arith.constant 0 : index
    %3 = vector.load %arg21[%c0, %c0_1] : memref<48x32xf32, #tpu.memory_space<vmem>>, vector<48x32xf32>
    %c0_2 = arith.constant 0 : index
    %c0_3 = arith.constant 0 : index
    %c0_4 = arith.constant 0 : index
    %4 = vector.load %arg5[%c0_2, %c0_3, %c0_4] : memref<1x1x32xf32, #tpu.memory_space<vmem>>, vector<1x1x32xf32>
    %5 = vector.shape_cast %4 : vector<1x1x32xf32> to vector<1x32xf32>
    %c0_5 = arith.constant 0 : index
    %c0_6 = arith.constant 0 : index
    %c0_7 = arith.constant 0 : index
    %6 = vector.load %arg6[%c0_5, %c0_6, %c0_7] : memref<1x1x32xf32, #tpu.memory_space<vmem>>, vector<1x1x32xf32>
    %7 = vector.shape_cast %6 : vector<1x1x32xf32> to vector<1x32xf32>
    %cst = arith.constant dense<0.000000e+00> : vector<48xf32>
    %8 = vector.multi_reduction <add>, %3, %cst [1] : vector<48x32xf32> to vector<48xf32>
    %9 = vector.shape_cast %8 : vector<48xf32> to vector<48x1xf32>
    %cst_8 = arith.constant 3.200000e+01 : f32
    %10 = vector.broadcast %cst_8 : f32 to vector<48x1xf32>
    %11 = arith.divf %9, %10 : vector<48x1xf32>
    %12 = vector.broadcast %11 : vector<48x1xf32> to vector<48x32xf32>
    %13 = arith.subf %3, %12 : vector<48x32xf32>
    %14 = arith.mulf %13, %13 : vector<48x32xf32>
    %cst_9 = arith.constant dense<0.000000e+00> : vector<48xf32>
    %15 = vector.multi_reduction <add>, %14, %cst_9 [1] : vector<48x32xf32> to vector<48xf32>
    %16 = vector.shape_cast %15 : vector<48xf32> to vector<48x1xf32>
    %cst_10 = arith.constant 3.200000e+01 : f32
    %17 = vector.broadcast %cst_10 : f32 to vector<48x1xf32>
    %18 = arith.divf %16, %17 : vector<48x1xf32>
    %19 = vector.broadcast %11 : vector<48x1xf32> to vector<48x32xf32>
    %20 = arith.subf %3, %19 : vector<48x32xf32>
    %cst_11 = arith.constant 9.99999974E-6 : f32
    %21 = vector.broadcast %cst_11 : f32 to vector<48x1xf32>
    %22 = arith.addf %18, %21 : vector<48x1xf32>
    %23 = math.rsqrt %22 : vector<48x1xf32>
    %24 = vector.broadcast %23 : vector<48x1xf32> to vector<48x32xf32>
    %25 = arith.mulf %20, %24 : vector<48x32xf32>
    %26 = vector.broadcast %5 : vector<1x32xf32> to vector<48x32xf32>
    %27 = arith.mulf %25, %26 : vector<48x32xf32>
    %28 = vector.broadcast %7 : vector<1x32xf32> to vector<48x32xf32>
    %29 = arith.addf %27, %28 : vector<48x32xf32>
    %30 = arith.truncf %29 : vector<48x32xf32> to vector<48x32xbf16>
    %c0_12 = arith.constant 0 : index
    %c0_13 = arith.constant 0 : index
    %c0_14 = arith.constant 0 : index
    %31 = vector.load %arg7[%c0_12, %c0_13, %c0_14] : memref<1x32x32xbf16, #tpu.memory_space<vmem>>, vector<1x32x32xbf16>
    %32 = vector.shape_cast %31 : vector<1x32x32xbf16> to vector<32x32xbf16>
    %cst_15 = arith.constant dense<0.000000e+00> : vector<48x32xf32>
    %33 = tpu.matmul %30, %32, %cst_15 {dimension_numbers = #tpu.dot_dimension_numbers<[1], [0], [0], [1], [0, 0, 1, 1], [], []>} : vector<48x32xbf16>, vector<32x32xbf16>, vector<48x32xf32> -> vector<48x32xf32>
    %c0_16 = arith.constant 0 : index
    %c0_17 = arith.constant 0 : index
    %c0_18 = arith.constant 0 : index
    %34 = vector.load %arg8[%c0_16, %c0_17, %c0_18] : memref<1x32x32xbf16, #tpu.memory_space<vmem>>, vector<1x32x32xbf16>
    %35 = vector.shape_cast %34 : vector<1x32x32xbf16> to vector<32x32xbf16>
    %cst_19 = arith.constant dense<0.000000e+00> : vector<48x32xf32>
    %36 = tpu.matmul %30, %35, %cst_19 {dimension_numbers = #tpu.dot_dimension_numbers<[1], [0], [0], [1], [0, 0, 1, 1], [], []>} : vector<48x32xbf16>, vector<32x32xbf16>, vector<48x32xf32> -> vector<48x32xf32>
    %c0_20 = arith.constant 0 : index
    %c0_21 = arith.constant 0 : index
    %c0_22 = arith.constant 0 : index
    %37 = vector.load %arg9[%c0_20, %c0_21, %c0_22] : memref<1x32x32xbf16, #tpu.memory_space<vmem>>, vector<1x32x32xbf16>
    %38 = vector.shape_cast %37 : vector<1x32x32xbf16> to vector<32x32xbf16>
    %cst_23 = arith.constant dense<0.000000e+00> : vector<48x32xf32>
    %39 = tpu.matmul %30, %38, %cst_23 {dimension_numbers = #tpu.dot_dimension_numbers<[1], [0], [0], [1], [0, 0, 1, 1], [], []>} : vector<48x32xbf16>, vector<32x32xbf16>, vector<48x32xf32> -> vector<48x32xf32>
    %40 = vector.shape_cast %33 : vector<48x32xf32> to vector<2x24x32xf32>
    %41 = arith.truncf %40 : vector<2x24x32xf32> to vector<2x24x32xbf16>
    %42 = vector.shape_cast %36 : vector<48x32xf32> to vector<2x24x32xf32>
    %43 = arith.truncf %42 : vector<2x24x32xf32> to vector<2x24x32xbf16>
    %44 = vector.shape_cast %39 : vector<48x32xf32> to vector<2x24x32xf32>
    %45 = arith.truncf %44 : vector<2x24x32xf32> to vector<2x24x32xbf16>
    %46 = tpu.iota {dimensions = array<i32: 2>} : vector<1x1x24xi32>
    %c17_i32 = arith.constant 17 : i32
    %47 = vector.broadcast %c17_i32 : i32 to vector<1x1x24xi32>
    %48 = arith.cmpi slt, %46, %47 : vector<1x1x24xi32>
    %49 = vector.extract_strided_slice %41 {offsets = [0, 0, 0], sizes = [2, 24, 8], strides = [1, 1, 1]} : vector<2x24x32xbf16> to vector<2x24x8xbf16>
    %50 = vector.extract_strided_slice %43 {offsets = [0, 0, 0], sizes = [2, 24, 8], strides = [1, 1, 1]} : vector<2x24x32xbf16> to vector<2x24x8xbf16>
    "tpu.trace_start"() <{level = 10 : i32, message = "bqd,bkd->bqk"}> : () -> ()
    %cst_24 = arith.constant dense<0.000000e+00> : vector<2x24x24xf32>
    %51 = tpu.matmul %49, %50, %cst_24 {dimension_numbers = #tpu.dot_dimension_numbers<[2], [2], [1], [1], [0, 0, 0, 1, 1, 1], [0], [0]>} : vector<2x24x8xbf16>, vector<2x24x8xbf16>, vector<2x24x24xf32> -> vector<2x24x24xf32>
    "tpu.trace_stop"() : () -> ()
    %cst_25 = arith.constant 0.353553385 : f32
    %52 = vector.broadcast %cst_25 : f32 to vector<2x24x24xf32>
    %53 = arith.mulf %51, %52 : vector<2x24x24xf32>
    %cst_26 = arith.constant -1.000000e+09 : f32
    %54 = vector.shape_cast %48 : vector<1x1x24xi1> to vector<1x1x24xi1>
    %55 = vector.broadcast %54 : vector<1x1x24xi1> to vector<2x24x24xi1>
    %56 = vector.broadcast %cst_26 : f32 to vector<2x24x24xf32>
    %57 = arith.select %55, %53, %56 : vector<2x24x24xi1>, vector<2x24x24xf32>
    %cst_27 = arith.constant dense<0xFF800000> : vector<2x24xf32>
    %58 = vector.multi_reduction <maximumf>, %57, %cst_27 [2] : vector<2x24x24xf32> to vector<2x24xf32>
    %59 = vector.shape_cast %58 : vector<2x24xf32> to vector<2x24x1xf32>
    %60 = vector.broadcast %59 : vector<2x24x1xf32> to vector<2x24x24xf32>
    %61 = arith.subf %57, %60 : vector<2x24x24xf32>
    %62 = math.exp %61 : vector<2x24x24xf32>
    %cst_28 = arith.constant dense<0.000000e+00> : vector<2x24xf32>
    %63 = vector.multi_reduction <add>, %62, %cst_28 [2] : vector<2x24x24xf32> to vector<2x24xf32>
    %64 = vector.shape_cast %63 : vector<2x24xf32> to vector<2x24x1xf32>
    %65 = tpu.reciprocal %64 {approx = true} : vector<2x24x1xf32> -> vector<2x24x1xf32>
    %66 = vector.broadcast %65 : vector<2x24x1xf32> to vector<2x24x24xf32>
    %67 = arith.mulf %62, %66 : vector<2x24x24xf32>
    %68 = arith.truncf %67 : vector<2x24x24xf32> to vector<2x24x24xbf16>
    %69 = vector.extract_strided_slice %45 {offsets = [0, 0, 0], sizes = [2, 24, 8], strides = [1, 1, 1]} : vector<2x24x32xbf16> to vector<2x24x8xbf16>
    "tpu.trace_start"() <{level = 10 : i32, message = "bqk,bkd->bqd"}> : () -> ()
    %cst_29 = arith.constant dense<0.000000e+00> : vector<2x24x8xf32>
    %70 = tpu.matmul %68, %69, %cst_29 {dimension_numbers = #tpu.dot_dimension_numbers<[2], [1], [1], [2], [0, 0, 0, 1, 1, 2], [0], [0]>} : vector<2x24x24xbf16>, vector<2x24x8xbf16>, vector<2x24x8xf32> -> vector<2x24x8xf32>
    "tpu.trace_stop"() : () -> ()
    %71 = vector.extract_strided_slice %41 {offsets = [0, 0, 8], sizes = [2, 24, 8], strides = [1, 1, 1]} : vector<2x24x32xbf16> to vector<2x24x8xbf16>
    %72 = vector.extract_strided_slice %43 {offsets = [0, 0, 8], sizes = [2, 24, 8], strides = [1, 1, 1]} : vector<2x24x32xbf16> to vector<2x24x8xbf16>
    "tpu.trace_start"() <{level = 10 : i32, message = "bqd,bkd->bqk"}> : () -> ()
    %cst_30 = arith.constant dense<0.000000e+00> : vector<2x24x24xf32>
    %73 = tpu.matmul %71, %72, %cst_30 {dimension_numbers = #tpu.dot_dimension_numbers<[2], [2], [1], [1], [0, 0, 0, 1, 1, 1], [0], [0]>} : vector<2x24x8xbf16>, vector<2x24x8xbf16>, vector<2x24x24xf32> -> vector<2x24x24xf32>
    "tpu.trace_stop"() : () -> ()
    %cst_31 = arith.constant 0.353553385 : f32
    %74 = vector.broadcast %cst_31 : f32 to vector<2x24x24xf32>
    %75 = arith.mulf %73, %74 : vector<2x24x24xf32>
    %cst_32 = arith.constant -1.000000e+09 : f32
    %76 = vector.shape_cast %48 : vector<1x1x24xi1> to vector<1x1x24xi1>
    %77 = vector.broadcast %76 : vector<1x1x24xi1> to vector<2x24x24xi1>
    %78 = vector.broadcast %cst_32 : f32 to vector<2x24x24xf32>
    %79 = arith.select %77, %75, %78 : vector<2x24x24xi1>, vector<2x24x24xf32>
    %cst_33 = arith.constant dense<0xFF800000> : vector<2x24xf32>
    %80 = vector.multi_reduction <maximumf>, %79, %cst_33 [2] : vector<2x24x24xf32> to vector<2x24xf32>
    %81 = vector.shape_cast %80 : vector<2x24xf32> to vector<2x24x1xf32>
    %82 = vector.broadcast %81 : vector<2x24x1xf32> to vector<2x24x24xf32>
    %83 = arith.subf %79, %82 : vector<2x24x24xf32>
    %84 = math.exp %83 : vector<2x24x24xf32>
    %cst_34 = arith.constant dense<0.000000e+00> : vector<2x24xf32>
    %85 = vector.multi_reduction <add>, %84, %cst_34 [2] : vector<2x24x24xf32> to vector<2x24xf32>
    %86 = vector.shape_cast %85 : vector<2x24xf32> to vector<2x24x1xf32>
    %87 = tpu.reciprocal %86 {approx = true} : vector<2x24x1xf32> -> vector<2x24x1xf32>
    %88 = vector.broadcast %87 : vector<2x24x1xf32> to vector<2x24x24xf32>
    %89 = arith.mulf %84, %88 : vector<2x24x24xf32>
    %90 = arith.truncf %89 : vector<2x24x24xf32> to vector<2x24x24xbf16>
    %91 = vector.extract_strided_slice %45 {offsets = [0, 0, 8], sizes = [2, 24, 8], strides = [1, 1, 1]} : vector<2x24x32xbf16> to vector<2x24x8xbf16>
    "tpu.trace_start"() <{level = 10 : i32, message = "bqk,bkd->bqd"}> : () -> ()
    %cst_35 = arith.constant dense<0.000000e+00> : vector<2x24x8xf32>
    %92 = tpu.matmul %90, %91, %cst_35 {dimension_numbers = #tpu.dot_dimension_numbers<[2], [1], [1], [2], [0, 0, 0, 1, 1, 2], [0], [0]>} : vector<2x24x24xbf16>, vector<2x24x8xbf16>, vector<2x24x8xf32> -> vector<2x24x8xf32>
    "tpu.trace_stop"() : () -> ()
    %93 = vector.extract_strided_slice %41 {offsets = [0, 0, 16], sizes = [2, 24, 8], strides = [1, 1, 1]} : vector<2x24x32xbf16> to vector<2x24x8xbf16>
    %94 = vector.extract_strided_slice %43 {offsets = [0, 0, 16], sizes = [2, 24, 8], strides = [1, 1, 1]} : vector<2x24x32xbf16> to vector<2x24x8xbf16>
    "tpu.trace_start"() <{level = 10 : i32, message = "bqd,bkd->bqk"}> : () -> ()
    %cst_36 = arith.constant dense<0.000000e+00> : vector<2x24x24xf32>
    %95 = tpu.matmul %93, %94, %cst_36 {dimension_numbers = #tpu.dot_dimension_numbers<[2], [2], [1], [1], [0, 0, 0, 1, 1, 1], [0], [0]>} : vector<2x24x8xbf16>, vector<2x24x8xbf16>, vector<2x24x24xf32> -> vector<2x24x24xf32>
    "tpu.trace_stop"() : () -> ()
    %cst_37 = arith.constant 0.353553385 : f32
    %96 = vector.broadcast %cst_37 : f32 to vector<2x24x24xf32>
    %97 = arith.mulf %95, %96 : vector<2x24x24xf32>
    %cst_38 = arith.constant -1.000000e+09 : f32
    %98 = vector.shape_cast %48 : vector<1x1x24xi1> to vector<1x1x24xi1>
    %99 = vector.broadcast %98 : vector<1x1x24xi1> to vector<2x24x24xi1>
    %100 = vector.broadcast %cst_38 : f32 to vector<2x24x24xf32>
    %101 = arith.select %99, %97, %100 : vector<2x24x24xi1>, vector<2x24x24xf32>
    %cst_39 = arith.constant dense<0xFF800000> : vector<2x24xf32>
    %102 = vector.multi_reduction <maximumf>, %101, %cst_39 [2] : vector<2x24x24xf32> to vector<2x24xf32>
    %103 = vector.shape_cast %102 : vector<2x24xf32> to vector<2x24x1xf32>
    %104 = vector.broadcast %103 : vector<2x24x1xf32> to vector<2x24x24xf32>
    %105 = arith.subf %101, %104 : vector<2x24x24xf32>
    %106 = math.exp %105 : vector<2x24x24xf32>
    %cst_40 = arith.constant dense<0.000000e+00> : vector<2x24xf32>
    %107 = vector.multi_reduction <add>, %106, %cst_40 [2] : vector<2x24x24xf32> to vector<2x24xf32>
    %108 = vector.shape_cast %107 : vector<2x24xf32> to vector<2x24x1xf32>
    %109 = tpu.reciprocal %108 {approx = true} : vector<2x24x1xf32> -> vector<2x24x1xf32>
    %110 = vector.broadcast %109 : vector<2x24x1xf32> to vector<2x24x24xf32>
    %111 = arith.mulf %106, %110 : vector<2x24x24xf32>
    %112 = arith.truncf %111 : vector<2x24x24xf32> to vector<2x24x24xbf16>
    %113 = vector.extract_strided_slice %45 {offsets = [0, 0, 16], sizes = [2, 24, 8], strides = [1, 1, 1]} : vector<2x24x32xbf16> to vector<2x24x8xbf16>
    "tpu.trace_start"() <{level = 10 : i32, message = "bqk,bkd->bqd"}> : () -> ()
    %cst_41 = arith.constant dense<0.000000e+00> : vector<2x24x8xf32>
    %114 = tpu.matmul %112, %113, %cst_41 {dimension_numbers = #tpu.dot_dimension_numbers<[2], [1], [1], [2], [0, 0, 0, 1, 1, 2], [0], [0]>} : vector<2x24x24xbf16>, vector<2x24x8xbf16>, vector<2x24x8xf32> -> vector<2x24x8xf32>
    "tpu.trace_stop"() : () -> ()
    %115 = vector.extract_strided_slice %41 {offsets = [0, 0, 24], sizes = [2, 24, 8], strides = [1, 1, 1]} : vector<2x24x32xbf16> to vector<2x24x8xbf16>
    %116 = vector.extract_strided_slice %43 {offsets = [0, 0, 24], sizes = [2, 24, 8], strides = [1, 1, 1]} : vector<2x24x32xbf16> to vector<2x24x8xbf16>
    "tpu.trace_start"() <{level = 10 : i32, message = "bqd,bkd->bqk"}> : () -> ()
    %cst_42 = arith.constant dense<0.000000e+00> : vector<2x24x24xf32>
    %117 = tpu.matmul %115, %116, %cst_42 {dimension_numbers = #tpu.dot_dimension_numbers<[2], [2], [1], [1], [0, 0, 0, 1, 1, 1], [0], [0]>} : vector<2x24x8xbf16>, vector<2x24x8xbf16>, vector<2x24x24xf32> -> vector<2x24x24xf32>
    "tpu.trace_stop"() : () -> ()
    %cst_43 = arith.constant 0.353553385 : f32
    %118 = vector.broadcast %cst_43 : f32 to vector<2x24x24xf32>
    %119 = arith.mulf %117, %118 : vector<2x24x24xf32>
    %cst_44 = arith.constant -1.000000e+09 : f32
    %120 = vector.shape_cast %48 : vector<1x1x24xi1> to vector<1x1x24xi1>
    %121 = vector.broadcast %120 : vector<1x1x24xi1> to vector<2x24x24xi1>
    %122 = vector.broadcast %cst_44 : f32 to vector<2x24x24xf32>
    %123 = arith.select %121, %119, %122 : vector<2x24x24xi1>, vector<2x24x24xf32>
    %cst_45 = arith.constant dense<0xFF800000> : vector<2x24xf32>
    %124 = vector.multi_reduction <maximumf>, %123, %cst_45 [2] : vector<2x24x24xf32> to vector<2x24xf32>
    %125 = vector.shape_cast %124 : vector<2x24xf32> to vector<2x24x1xf32>
    %126 = vector.broadcast %125 : vector<2x24x1xf32> to vector<2x24x24xf32>
    %127 = arith.subf %123, %126 : vector<2x24x24xf32>
    %128 = math.exp %127 : vector<2x24x24xf32>
    %cst_46 = arith.constant dense<0.000000e+00> : vector<2x24xf32>
    %129 = vector.multi_reduction <add>, %128, %cst_46 [2] : vector<2x24x24xf32> to vector<2x24xf32>
    %130 = vector.shape_cast %129 : vector<2x24xf32> to vector<2x24x1xf32>
    %131 = tpu.reciprocal %130 {approx = true} : vector<2x24x1xf32> -> vector<2x24x1xf32>
    %132 = vector.broadcast %131 : vector<2x24x1xf32> to vector<2x24x24xf32>
    %133 = arith.mulf %128, %132 : vector<2x24x24xf32>
    %134 = arith.truncf %133 : vector<2x24x24xf32> to vector<2x24x24xbf16>
    %135 = vector.extract_strided_slice %45 {offsets = [0, 0, 24], sizes = [2, 24, 8], strides = [1, 1, 1]} : vector<2x24x32xbf16> to vector<2x24x8xbf16>
    "tpu.trace_start"() <{level = 10 : i32, message = "bqk,bkd->bqd"}> : () -> ()
    %cst_47 = arith.constant dense<0.000000e+00> : vector<2x24x8xf32>
    %136 = tpu.matmul %134, %135, %cst_47 {dimension_numbers = #tpu.dot_dimension_numbers<[2], [1], [1], [2], [0, 0, 0, 1, 1, 2], [0], [0]>} : vector<2x24x24xbf16>, vector<2x24x8xbf16>, vector<2x24x8xf32> -> vector<2x24x8xf32>
    "tpu.trace_stop"() : () -> ()
    %137 = tpu.concatenate %70, %92, %114, %136 in 2 : vector<2x24x8xf32>, vector<2x24x8xf32>, vector<2x24x8xf32>, vector<2x24x8xf32> -> vector<2x24x32xf32>
    %138 = vector.shape_cast %137 : vector<2x24x32xf32> to vector<48x32xf32>
    %139 = arith.truncf %138 : vector<48x32xf32> to vector<48x32xbf16>
    %c0_48 = arith.constant 0 : index
    %c0_49 = arith.constant 0 : index
    %c0_50 = arith.constant 0 : index
    %140 = vector.load %arg10[%c0_48, %c0_49, %c0_50] : memref<1x32x32xbf16, #tpu.memory_space<vmem>>, vector<1x32x32xbf16>
    %141 = vector.shape_cast %140 : vector<1x32x32xbf16> to vector<32x32xbf16>
    %cst_51 = arith.constant dense<0.000000e+00> : vector<48x32xf32>
    %142 = tpu.matmul %139, %141, %cst_51 {dimension_numbers = #tpu.dot_dimension_numbers<[1], [0], [0], [1], [0, 0, 1, 1], [], []>} : vector<48x32xbf16>, vector<32x32xbf16>, vector<48x32xf32> -> vector<48x32xf32>
    %143 = arith.addf %3, %142 : vector<48x32xf32>
    %c0_52 = arith.constant 0 : index
    %c0_53 = arith.constant 0 : index
    %c0_54 = arith.constant 0 : index
    %144 = vector.load %arg11[%c0_52, %c0_53, %c0_54] : memref<1x1x32xf32, #tpu.memory_space<vmem>>, vector<1x1x32xf32>
    %145 = vector.shape_cast %144 : vector<1x1x32xf32> to vector<1x32xf32>
    %c0_55 = arith.constant 0 : index
    %c0_56 = arith.constant 0 : index
    %c0_57 = arith.constant 0 : index
    %146 = vector.load %arg12[%c0_55, %c0_56, %c0_57] : memref<1x1x32xf32, #tpu.memory_space<vmem>>, vector<1x1x32xf32>
    %147 = vector.shape_cast %146 : vector<1x1x32xf32> to vector<1x32xf32>
    %cst_58 = arith.constant dense<0.000000e+00> : vector<48xf32>
    %148 = vector.multi_reduction <add>, %143, %cst_58 [1] : vector<48x32xf32> to vector<48xf32>
    %149 = vector.shape_cast %148 : vector<48xf32> to vector<48x1xf32>
    %cst_59 = arith.constant 3.200000e+01 : f32
    %150 = vector.broadcast %cst_59 : f32 to vector<48x1xf32>
    %151 = arith.divf %149, %150 : vector<48x1xf32>
    %152 = vector.broadcast %151 : vector<48x1xf32> to vector<48x32xf32>
    %153 = arith.subf %143, %152 : vector<48x32xf32>
    %154 = arith.mulf %153, %153 : vector<48x32xf32>
    %cst_60 = arith.constant dense<0.000000e+00> : vector<48xf32>
    %155 = vector.multi_reduction <add>, %154, %cst_60 [1] : vector<48x32xf32> to vector<48xf32>
    %156 = vector.shape_cast %155 : vector<48xf32> to vector<48x1xf32>
    %cst_61 = arith.constant 3.200000e+01 : f32
    %157 = vector.broadcast %cst_61 : f32 to vector<48x1xf32>
    %158 = arith.divf %156, %157 : vector<48x1xf32>
    %159 = vector.broadcast %151 : vector<48x1xf32> to vector<48x32xf32>
    %160 = arith.subf %143, %159 : vector<48x32xf32>
    %cst_62 = arith.constant 9.99999974E-6 : f32
    %161 = vector.broadcast %cst_62 : f32 to vector<48x1xf32>
    %162 = arith.addf %158, %161 : vector<48x1xf32>
    %163 = math.rsqrt %162 : vector<48x1xf32>
    %164 = vector.broadcast %163 : vector<48x1xf32> to vector<48x32xf32>
    %165 = arith.mulf %160, %164 : vector<48x32xf32>
    %166 = vector.broadcast %145 : vector<1x32xf32> to vector<48x32xf32>
    %167 = arith.mulf %165, %166 : vector<48x32xf32>
    %168 = vector.broadcast %147 : vector<1x32xf32> to vector<48x32xf32>
    %169 = arith.addf %167, %168 : vector<48x32xf32>
    %170 = arith.truncf %169 : vector<48x32xf32> to vector<48x32xbf16>
    %c0_63 = arith.constant 0 : index
    %c0_64 = arith.constant 0 : index
    %c0_65 = arith.constant 0 : index
    %171 = vector.load %arg13[%c0_63, %c0_64, %c0_65] : memref<1x32x128xbf16, #tpu.memory_space<vmem>>, vector<1x32x128xbf16>
    %172 = vector.shape_cast %171 : vector<1x32x128xbf16> to vector<32x128xbf16>
    %cst_66 = arith.constant dense<0.000000e+00> : vector<48x128xf32>
    %173 = tpu.matmul %170, %172, %cst_66 {dimension_numbers = #tpu.dot_dimension_numbers<[1], [0], [0], [1], [0, 0, 1, 1], [], []>} : vector<48x32xbf16>, vector<32x128xbf16>, vector<48x128xf32> -> vector<48x128xf32>
    %c0_67 = arith.constant 0 : index
    %c0_68 = arith.constant 0 : index
    %c0_69 = arith.constant 0 : index
    %174 = vector.load %arg14[%c0_67, %c0_68, %c0_69] : memref<1x1x128xf32, #tpu.memory_space<vmem>>, vector<1x1x128xf32>
    %175 = vector.shape_cast %174 : vector<1x1x128xf32> to vector<1x128xf32>
    %176 = vector.broadcast %175 : vector<1x128xf32> to vector<48x128xf32>
    %177 = arith.addf %173, %176 : vector<48x128xf32>
    %cst_70 = arith.constant 5.000000e-01 : f32
    %178 = vector.broadcast %cst_70 : f32 to vector<48x128xf32>
    %179 = arith.mulf %178, %177 : vector<48x128xf32>
    %cst_71 = arith.constant 4.471500e-02 : f32
    %180 = vector.broadcast %cst_71 : f32 to vector<48x128xf32>
    %181 = arith.mulf %180, %177 : vector<48x128xf32>
    %182 = arith.mulf %181, %177 : vector<48x128xf32>
    %183 = arith.mulf %182, %177 : vector<48x128xf32>
    %184 = arith.addf %177, %183 : vector<48x128xf32>
    %cst_72 = arith.constant 0.797884583 : f32
    %185 = vector.broadcast %cst_72 : f32 to vector<48x128xf32>
    %186 = arith.mulf %185, %184 : vector<48x128xf32>
    %187 = math.tanh %186 : vector<48x128xf32>
    %cst_73 = arith.constant 1.000000e+00 : f32
    %188 = vector.broadcast %cst_73 : f32 to vector<48x128xf32>
    %189 = arith.addf %188, %187 : vector<48x128xf32>
    %190 = arith.mulf %179, %189 : vector<48x128xf32>
    %191 = arith.truncf %190 : vector<48x128xf32> to vector<48x128xbf16>
    %c0_74 = arith.constant 0 : index
    %c0_75 = arith.constant 0 : index
    %c0_76 = arith.constant 0 : index
    %192 = vector.load %arg15[%c0_74, %c0_75, %c0_76] : memref<1x128x32xbf16, #tpu.memory_space<vmem>>, vector<1x128x32xbf16>
    %193 = vector.shape_cast %192 : vector<1x128x32xbf16> to vector<128x32xbf16>
    %cst_77 = arith.constant dense<0.000000e+00> : vector<48x32xf32>
    %194 = tpu.matmul %191, %193, %cst_77 {dimension_numbers = #tpu.dot_dimension_numbers<[1], [0], [0], [1], [0, 0, 1, 1], [], []>} : vector<48x128xbf16>, vector<128x32xbf16>, vector<48x32xf32> -> vector<48x32xf32>
    %c0_78 = arith.constant 0 : index
    %c0_79 = arith.constant 0 : index
    %c0_80 = arith.constant 0 : index
    %195 = vector.load %arg16[%c0_78, %c0_79, %c0_80] : memref<1x1x32xf32, #tpu.memory_space<vmem>>, vector<1x1x32xf32>
    %196 = vector.shape_cast %195 : vector<1x1x32xf32> to vector<1x32xf32>
    %197 = vector.broadcast %196 : vector<1x32xf32> to vector<48x32xf32>
    %198 = arith.addf %194, %197 : vector<48x32xf32>
    %199 = arith.addf %143, %198 : vector<48x32xf32>
    %c0_81 = arith.constant 0 : index
    %c0_82 = arith.constant 0 : index
    %200 = vector.load %arg21[%c0_81, %c0_82] : memref<48x32xf32, #tpu.memory_space<vmem>>, vector<48x32xf32>
    tpu.vector_store %arg21[%c0_81, %c0_82], %199 {strides = array<i32>} : memref<48x32xf32, #tpu.memory_space<vmem>>, vector<48x32xf32>,
    %c1_i32 = arith.constant 1 : i32
    %201 = arith.cmpi eq, %arg1, %c1_i32 : i32
    %202 = arith.extui %201 : i1 to i32
    %c0_i32_83 = arith.constant 0 : i32
    %203 = arith.cmpi ne, %202, %c0_i32_83 : i32
    scf.if %203 {
      %c0_84 = arith.constant 0 : index
      %c0_85 = arith.constant 0 : index
      %204 = vector.load %arg17[%c0_84, %c0_85] : memref<1x32xf32, #tpu.memory_space<vmem>>, vector<1x32xf32>
      %c0_86 = arith.constant 0 : index
      %c0_87 = arith.constant 0 : index
      %205 = vector.load %arg18[%c0_86, %c0_87] : memref<1x32xf32, #tpu.memory_space<vmem>>, vector<1x32xf32>
      %cst_88 = arith.constant dense<0.000000e+00> : vector<48xf32>
      %206 = vector.multi_reduction <add>, %199, %cst_88 [1] : vector<48x32xf32> to vector<48xf32>
      %207 = vector.shape_cast %206 : vector<48xf32> to vector<48x1xf32>
      %cst_89 = arith.constant 3.200000e+01 : f32
      %208 = vector.broadcast %cst_89 : f32 to vector<48x1xf32>
      %209 = arith.divf %207, %208 : vector<48x1xf32>
      %210 = vector.broadcast %209 : vector<48x1xf32> to vector<48x32xf32>
      %211 = arith.subf %199, %210 : vector<48x32xf32>
      %212 = arith.mulf %211, %211 : vector<48x32xf32>
      %cst_90 = arith.constant dense<0.000000e+00> : vector<48xf32>
      %213 = vector.multi_reduction <add>, %212, %cst_90 [1] : vector<48x32xf32> to vector<48xf32>
      %214 = vector.shape_cast %213 : vector<48xf32> to vector<48x1xf32>
      %cst_91 = arith.constant 3.200000e+01 : f32
      %215 = vector.broadcast %cst_91 : f32 to vector<48x1xf32>
      %216 = arith.divf %214, %215 : vector<48x1xf32>
      %217 = vector.broadcast %209 : vector<48x1xf32> to vector<48x32xf32>
      %218 = arith.subf %199, %217 : vector<48x32xf32>
      %cst_92 = arith.constant 9.99999974E-6 : f32
      %219 = vector.broadcast %cst_92 : f32 to vector<48x1xf32>
      %220 = arith.addf %216, %219 : vector<48x1xf32>
      %221 = math.rsqrt %220 : vector<48x1xf32>
      %222 = vector.broadcast %221 : vector<48x1xf32> to vector<48x32xf32>
      %223 = arith.mulf %218, %222 : vector<48x32xf32>
      %224 = vector.broadcast %204 : vector<1x32xf32> to vector<48x32xf32>
      %225 = arith.mulf %223, %224 : vector<48x32xf32>
      %226 = vector.broadcast %205 : vector<1x32xf32> to vector<48x32xf32>
      %227 = arith.addf %225, %226 : vector<48x32xf32>
      %228 = vector.shape_cast %227 : vector<48x32xf32> to vector<2x24x32xf32>
      %229 = tpu.iota {dimensions = array<i32: 1>} : vector<1x24x1xi32>
      %c0_i32_93 = arith.constant 0 : i32
      %230 = vector.broadcast %c0_i32_93 : i32 to vector<1x24x1xi32>
      %231 = arith.cmpi eq, %229, %230 : vector<1x24x1xi32>
      %cst_94 = arith.constant 0.000000e+00 : f32
      %232 = vector.shape_cast %231 : vector<1x24x1xi1> to vector<1x24x1xi1>
      %233 = vector.broadcast %232 : vector<1x24x1xi1> to vector<2x24x32xi1>
      %234 = vector.broadcast %cst_94 : f32 to vector<2x24x32xf32>
      %235 = arith.select %233, %228, %234 : vector<2x24x32xi1>, vector<2x24x32xf32>
      %cst_95 = arith.constant dense<0.000000e+00> : vector<2x32xf32>
      %236 = vector.multi_reduction <add>, %235, %cst_95 [1] : vector<2x24x32xf32> to vector<2x32xf32>
      %237 = arith.truncf %236 : vector<2x32xf32> to vector<2x32xbf16>
      %c0_96 = arith.constant 0 : index
      %c0_97 = arith.constant 0 : index
      %238 = vector.load %arg19[%c0_96, %c0_97] : memref<32x128xbf16, #tpu.memory_space<vmem>>, vector<32x128xbf16>
      %cst_98 = arith.constant dense<0.000000e+00> : vector<2x128xf32>
      %239 = tpu.matmul %237, %238, %cst_98 {dimension_numbers = #tpu.dot_dimension_numbers<[1], [0], [0], [1], [0, 0, 1, 1], [], []>} : vector<2x32xbf16>, vector<32x128xbf16>, vector<2x128xf32> -> vector<2x128xf32>
      %240 = arith.mulf %239, %239 : vector<2x128xf32>
      %cst_99 = arith.constant dense<0.000000e+00> : vector<2xf32>
      %241 = vector.multi_reduction <add>, %240, %cst_99 [1] : vector<2x128xf32> to vector<2xf32>
      %242 = vector.shape_cast %241 : vector<2xf32> to vector<2x1xf32>
      %243 = math.rsqrt %242 : vector<2x1xf32>
      %244 = vector.broadcast %243 : vector<2x1xf32> to vector<2x128xf32>
      %245 = arith.mulf %239, %244 : vector<2x128xf32>
      %c0_100 = arith.constant 0 : index
      %c0_101 = arith.constant 0 : index
      %246 = vector.load %arg20[%c0_100, %c0_101] : memref<2x128xf32, #tpu.memory_space<vmem>>, vector<2x128xf32>
      tpu.vector_store %arg20[%c0_100, %c0_101], %245 {strides = array<i32>} : memref<2x128xf32, #tpu.memory_space<vmem>>, vector<2x128xf32>,
    } else {
    }
    return
  }
  func.func @transform_0(%arg0: i32, %arg1: i32) -> (i32, i32, i32) {
    %c0_i32 = arith.constant 0 : i32
    %c0_i32_0 = arith.constant 0 : i32
    %c0_i32_1 = arith.constant 0 : i32
    return %arg0, %c0_i32, %c0_i32_0 : i32, i32, i32
  }
  func.func @transform_1(%arg0: i32, %arg1: i32) -> (i32, i32) {
    %c0_i32 = arith.constant 0 : i32
    %c0_i32_0 = arith.constant 0 : i32
    %c0_i32_1 = arith.constant 0 : i32
    return %c0_i32, %c0_i32_0 : i32, i32
  }
  func.func @transform_2(%arg0: i32, %arg1: i32) -> (i32, i32) {
    %c0_i32 = arith.constant 0 : i32
    %c0_i32_0 = arith.constant 0 : i32
    %c0_i32_1 = arith.constant 0 : i32
    return %c0_i32, %c0_i32_0 : i32, i32
  }
  func.func @transform_3(%arg0: i32, %arg1: i32) -> (i32, i32, i32) {
    %c0_i32 = arith.constant 0 : i32
    %c0_i32_0 = arith.constant 0 : i32
    %c0_i32_1 = arith.constant 0 : i32
    return %arg1, %c0_i32, %c0_i32_0 : i32, i32, i32
  }
  func.func @transform_4(%arg0: i32, %arg1: i32) -> (i32, i32, i32) {
    %c0_i32 = arith.constant 0 : i32
    %c0_i32_0 = arith.constant 0 : i32
    %c0_i32_1 = arith.constant 0 : i32
    return %arg1, %c0_i32, %c0_i32_0 : i32, i32, i32
  }
  func.func @transform_5(%arg0: i32, %arg1: i32) -> (i32, i32, i32) {
    %c0_i32 = arith.constant 0 : i32
    %c0_i32_0 = arith.constant 0 : i32
    %c0_i32_1 = arith.constant 0 : i32
    return %arg1, %c0_i32, %c0_i32_0 : i32, i32, i32
  }
  func.func @transform_6(%arg0: i32, %arg1: i32) -> (i32, i32, i32) {
    %c0_i32 = arith.constant 0 : i32
    %c0_i32_0 = arith.constant 0 : i32
    %c0_i32_1 = arith.constant 0 : i32
    return %arg1, %c0_i32, %c0_i32_0 : i32, i32, i32
  }
  func.func @transform_7(%arg0: i32, %arg1: i32) -> (i32, i32, i32) {
    %c0_i32 = arith.constant 0 : i32
    %c0_i32_0 = arith.constant 0 : i32
    %c0_i32_1 = arith.constant 0 : i32
    return %arg1, %c0_i32, %c0_i32_0 : i32, i32, i32
  }
  func.func @transform_8(%arg0: i32, %arg1: i32) -> (i32, i32, i32) {
    %c0_i32 = arith.constant 0 : i32
    %c0_i32_0 = arith.constant 0 : i32
    %c0_i32_1 = arith.constant 0 : i32
    return %arg1, %c0_i32, %c0_i32_0 : i32, i32, i32
  }
  func.func @transform_9(%arg0: i32, %arg1: i32) -> (i32, i32, i32) {
    %c0_i32 = arith.constant 0 : i32
    %c0_i32_0 = arith.constant 0 : i32
    %c0_i32_1 = arith.constant 0 : i32
    return %arg1, %c0_i32, %c0_i32_0 : i32, i32, i32
  }
  func.func @transform_10(%arg0: i32, %arg1: i32) -> (i32, i32, i32) {
    %c0_i32 = arith.constant 0 : i32
    %c0_i32_0 = arith.constant 0 : i32
    %c0_i32_1 = arith.constant 0 : i32
    return %arg1, %c0_i32, %c0_i32_0 : i32, i32, i32
  }
  func.func @transform_11(%arg0: i32, %arg1: i32) -> (i32, i32, i32) {
    %c0_i32 = arith.constant 0 : i32
    %c0_i32_0 = arith.constant 0 : i32
    %c0_i32_1 = arith.constant 0 : i32
    return %arg1, %c0_i32, %c0_i32_0 : i32, i32, i32
  }
  func.func @transform_12(%arg0: i32, %arg1: i32) -> (i32, i32, i32) {
    %c0_i32 = arith.constant 0 : i32
    %c0_i32_0 = arith.constant 0 : i32
    %c0_i32_1 = arith.constant 0 : i32
    return %arg1, %c0_i32, %c0_i32_0 : i32, i32, i32
  }
  func.func @transform_13(%arg0: i32, %arg1: i32) -> (i32, i32, i32) {
    %c0_i32 = arith.constant 0 : i32
    %c0_i32_0 = arith.constant 0 : i32
    %c0_i32_1 = arith.constant 0 : i32
    return %arg1, %c0_i32, %c0_i32_0 : i32, i32, i32
  }
  func.func @transform_14(%arg0: i32, %arg1: i32) -> (i32, i32, i32) {
    %c0_i32 = arith.constant 0 : i32
    %c0_i32_0 = arith.constant 0 : i32
    %c0_i32_1 = arith.constant 0 : i32
    return %arg1, %c0_i32, %c0_i32_0 : i32, i32, i32
  }
  func.func @transform_15(%arg0: i32, %arg1: i32) -> (i32, i32) {
    %c0_i32 = arith.constant 0 : i32
    %c0_i32_0 = arith.constant 0 : i32
    %c0_i32_1 = arith.constant 0 : i32
    return %c0_i32, %c0_i32_0 : i32, i32
  }
  func.func @transform_16(%arg0: i32, %arg1: i32) -> (i32, i32) {
    %c0_i32 = arith.constant 0 : i32
    %c0_i32_0 = arith.constant 0 : i32
    %c0_i32_1 = arith.constant 0 : i32
    return %c0_i32, %c0_i32_0 : i32, i32
  }
  func.func @transform_17(%arg0: i32, %arg1: i32) -> (i32, i32) {
    %c0_i32 = arith.constant 0 : i32
    %c0_i32_0 = arith.constant 0 : i32
    %c0_i32_1 = arith.constant 0 : i32
    return %c0_i32, %c0_i32_0 : i32, i32
  }
  func.func @transform_18(%arg0: i32, %arg1: i32) -> (i32, i32) {
    %c0_i32 = arith.constant 0 : i32
    %c0_i32_0 = arith.constant 0 : i32
    return %arg0, %c0_i32 : i32, i32
  }
}

</mosaic_0001>

<bundles_post_ra>
// kernel: tpu_custom_call.1
= control target key start
LH: loop header
LB: loop body
LE: loop exit
PB: predicated region body
PF: predicated region fallthrough
CT: control target
= control target key end

     0   :  { %s5191_s0 = inlined_call_operand.hbm [shape: bf16[2,24,48], index: 0, kind: input, shape index: {}]   ;;  %s5192_s1 = inlined_call_operand.vmem [shape: bf16[48,32], index: 1, kind: input, shape index: {}]   ;;  %s5193_s2 = inlined_call_operand.hbm [shape: f32[24,32], index: 2, kind: input, shape index: {}]   ;;  %s5194_s3 = inlined_call_operand.vmem [shape: f32[2,1,32], index: 3, kind: input, shape index: {}]   ;;  %s5195_s4 = inlined_call_operand.vmem [shape: f32[2,1,32], index: 4, kind: input, shape index: {}]   ;;  %s5196_s5 = inlined_call_operand.vmem [shape: bf16[2,32,32], index: 5, kind: input, shape index: {}]   ;;  %s5197_s6 = inlined_call_operand.vmem [shape: bf16[2,32,32], index: 6, kind: input, shape index: {}]   ;;  %s5198_s7 = inlined_call_operand.vmem [shape: bf16[2,32,32], index: 7, kind: input, shape index: {}]   ;;  %s5199_s8 = inlined_call_operand.vmem [shape: bf16[2,32,32], index: 8, kind: input, shape index: {}]   ;;  %s5200_s9 = inlined_call_operand.hbm [shape: f32[2,1,32], index: 9, kind: input, shape index: {}]   ;;  %s5201_s10 = inlined_call_operand.hbm [shape: f32[2,1,32], index: 10, kind: input, shape index: {}]   ;;  %s5202_s11 = inlined_call_operand.vmem [shape: bf16[2,32,128], index: 11, kind: input, shape index: {}]   ;;  %s5203_s12 = inlined_call_operand.hbm [shape: f32[2,1,128], index: 12, kind: input, shape index: {}]   ;;  %s5204_s13 = inlined_call_operand.vmem [shape: bf16[2,128,32], index: 13, kind: input, shape index: {}]   ;;  %s5205_s14 = inlined_call_operand.hbm [shape: f32[2,1,32], index: 14, kind: input, shape index: {}]   ;;  %s5206_s15 = inlined_call_operand.vmem [shape: f32[1,32], index: 15, kind: input, shape index: {}]   ;;  %s5207_s16 = inlined_call_operand.vmem [shape: f32[1,32], index: 16, kind: input, shape index: {}]   ;;  %s5208_s17 = inlined_call_operand.vmem [shape: bf16[32,128], index: 17, kind: input, shape index: {}]   ;;  %s5209_s18 = inlined_call_operand.hbm [shape: f32[2,128], index: 18, kind: output, shape index: {}]  }
   0x1   :  { %5215 = sst [smem:[#allocation21_spill]] %s5191_s0 }
   0x2   :  { %5216 = sst [smem:[#allocation22_spill]] %s5192_s1 }
   0x3   :  { %5217 = sst [smem:[#allocation23_spill]] %s5193_s2 }
   0x4   :  { %5218 = sst [smem:[#allocation24_spill]] %s5196_s5 }
   0x5   :  { %5219 = sst [smem:[#allocation25_spill]] %s5197_s6 }
   0x6   :  { %5220 = sst [smem:[#allocation26_spill]] %s5199_s8 }
   0x7   :  { %5221 = sst [smem:[#allocation27_spill]] %s5200_s9 }
   0x8   :  { %5222 = sst [smem:[#allocation28_spill]] %s5201_s10 }
   0x9   :  { %5223 = sst [smem:[#allocation29_spill]] %s5202_s11 }
   0xa   :  { %5224 = sst [smem:[#allocation30_spill]] %s5203_s12 }
   0xb   :  { %5225 = sst [smem:[#allocation31_spill]] %s5204_s13 }
   0xc   :  { %5226 = sst [smem:[#allocation32_spill]] %s5206_s15 }
   0xd   :  { %5227 = sst [smem:[#allocation33_spill]] %s5207_s16 }
   0xe   :  { %5228 = sst [smem:[#allocation34_spill]] %s5208_s17 }
   0xf   :  { %5229 = sst [smem:[#allocation35_spill]] %s5209_s18 }
  0x10   :  { %23 = vsyncpa [#allocation4], 0 }
  0x11   :  { %24 = vsyncpa [#allocation7], 0 }
  0x12   :  { %25 = vsyncpa [#allocation5], 0  ;;  %s4199_s27 = smov 0   ;;  %s4201_s28 = smov 0  }
  0x13   :  { %s4203_s29 = smov 0   ;;  %s4205_s30 = smov 0  }
  0x14   :  { %s4207_s0 = smov 0   ;;  %s4209_s19 = smov 0  }
  0x15 LB: > { %5230 = sst [smem:[#allocation17_spill]] %s4076_s29  ;;  %s4228_s1 = sadd.s32 4294967295, %s4088_s19   ;;  %s4088_s19 = sphi %s4209_s19, %s31_s19   ;;  %s4084_s0 = sphi %s4207_s0, %s5270_s0   ;;  %s4080_s30 = sphi %s4205_s30, %s5269_s30   ;;  %s4076_s29 = sphi %s4203_s29, %s5265_s29   ;;  %s4072_s28 = sphi %s4201_s28, %s5268_s28   ;;  %s4068_s27 = sphi %s4199_s27, %s5267_s27  }
  0x16   : > { %5231 = sst [smem:[#allocation18_spill]] %s4088_s19  ;;  %p287_p0 = scmp.ne.s32.totalorder %s4072_s28, %s4068_s27 }
  0x17   : > { %p288_p1 = scmp.eq.s32.totalorder %s4228_s1, 0  ;;  %p3288_p2 = scmp.ge.s32.totalorder %s4088_s19, 1 }
  0x18   : > { %p517_p3 = scmp.lt.s32.totalorder %s4088_s19, 3  ;;  %s5233_s2 = sld [smem:[#allocation21_spill]] }
  0x19   : > { %p4236_p4 = por %p288_p1, %p287_p0  ;;  %s4090_s25 = smov [#allocation3]  }
  0x1a   : > { %p4243_p5 = pnand %p3288_p2, %p517_p3  ;;  %s534_s26 = sshll.u32 %s4090_s25, 4  ;;  %s535_s26 = int_to_ptr.vmem [resolvable:$true] %s534_s26 }
  0x1b   : > { %s4091_s21 = smov 64   ;;  %s4092_s22 = smov 4  }
  0x1c   : > { %p3530_p6 = pneg %p4243_p5  ;;  %s274_s18 = sadd.s32 1, %s4076_s29 }
  0x1d   : > { %p281_p9 = scmp.ne.s32.totalorder %s4076_s29, %s4072_s28  ;;  %p282_p10 = scmp.eq.s32.totalorder %s4088_s19, 0 }
  0x1e   : > { %s532_s23 = sshll.u32 %s5233_s2, 4  ;;  %p4251_p7 = pnand %p3530_p6, %p288_p1  ;;  %s533_s23 = int_to_ptr.hbm [resolvable:$true] %s532_s23 }
  0x1f   : > { %s40_s2 = sadd.s32 1, %s4084_s0  ;;  %p4264_p11 = por %p282_p10, %p281_p9 }
  0x20   : > { %3533 = dma.hbm_to_vmem [thread:$0]  (!%p4251_p7), %s533_s23, 384, %s535_s26, [#allocation4], %s4091_s21, %s4091_s21, %s4092_s22  }
  0x21   : > { %p41_p8 = scmp.ge.s32.totalorder %s40_s2, 2  ;;  %p3552_p12 = scmp.lt.s32.totalorder %s4088_s19, 2 }
  0x22   : > { %s618_s15 = sand.u32 1, %s4088_s19   ;;  %s4273_s17 = sand.u32 1, %s4076_s29  }
  0x23   : > { %s5272_s2 = smov (%p41_p8, %s40_s2), 0  ;;  %s5238_s9 = sld [smem:[#allocation27_spill]] }
  0x24   : > { %5236 = sst [smem:[#allocation19_spill]] %s5272_s2  ;;  %s271_s16 = ssub.s32 %s4084_s0, %s5272_s2 }
  0x25   : > { %p272_p13 = scmp.eq.s32.totalorder %s271_s16, 0  ;;  %s621_s11 = scalar_lea.vmem [#allocation8], %s4273_s17 }
  0x26   : > { %s628_s8 = sshll.u32 %s621_s11, 4  ;;  %p4285_p0 = pnand %p3552_p12, %p4264_p11  ;;  %s629_s8 = int_to_ptr.vmem [resolvable:$true] %s628_s8 }
  0x27   : > { %s4280_s22 = scalar_select %p272_p13, %s4076_s29, %s274_s18  }
  0x28   : > { %s5241_s10 = sld [smem:[#allocation28_spill]]  ;;  %s4293_s26 = scalar_lea.sflag [#allocation4], %s618_s15 }
  0x29   : > { %s624_s21 = scalar_lea.hbm %s5238_s9, %s4084_s0  ;;  %5239 = sst [smem:[#allocation20_spill]] %s4280_s22 }
  0x2a   : > { %s626_s13 = sshll.u32 %s624_s21, 4  ;;  %s638_s11 = scalar_lea.vmem [#allocation9], %s4273_s17  ;;  %s627_s13 = int_to_ptr.hbm [resolvable:$true] %s626_s13 }
  0x2b   : > { %3540 = dma.hbm_to_vmem [thread:$0]  (!%p4285_p0), %s627_s13, 16, %s629_s8, %s4293_s26  }
  0x2c   : > { %s645_s25 = sshll.u32 %s638_s11, 4  ;;  %s5242_s12 = sld [smem:[#allocation30_spill]]  ;;  %s646_s25 = int_to_ptr.vmem [resolvable:$true] %s645_s25 }
  0x2d   : > { %s5243_s13 = sld [smem:[#allocation23_spill]]  ;;  %s4094_s19 = smov 128  }
  0x2e   : > { %s641_s23 = scalar_lea.hbm %s5241_s10, %s4084_s0  ;;  %s4095_s2 = smov 8  }
  0x2f   : > { %s643_s18 = sshll.u32 %s641_s23, 4  ;;  %s663_s23 = scalar_lea.vmem [#allocation10], %s4273_s17  ;;  %s644_s18 = int_to_ptr.hbm [resolvable:$true] %s643_s18 }
  0x30   : > { %3543 = dma.hbm_to_vmem [thread:$0]  (!%p4285_p0), %s644_s18, 16, %s646_s25, %s4293_s26  }
  0x31   : > { %s670_s15 = sshll.u32 %s663_s23, 4  ;;  %s4093_s18 = smov [#allocation6]   ;;  %s671_s15 = int_to_ptr.vmem [resolvable:$true] %s670_s15 }
  0x32   : > { %s666_s21 = scalar_lea.hbm %s5242_s12, %s4084_s0  ;;  %s551_s25 = sshll.u32 %s4093_s18, 4  ;;  %s552_s25 = int_to_ptr.vmem [resolvable:$true] %s551_s25 }
  0x33   : > { %s668_s9 = sshll.u32 %s666_s21, 4  ;;  %s549_s11 = sshll.u32 %s5243_s13, 4  ;;  %s669_s9 = int_to_ptr.hbm [resolvable:$true] %s668_s9  ;;  %s550_s11 = int_to_ptr.hbm [resolvable:$true] %s549_s11 }
  0x34   : > { %3546 = dma.hbm_to_vmem [thread:$0]  (!%p4285_p0), %s669_s9, 16, %s671_s15, %s4293_s26  }
  0x35   : > { %3536 = dma.hbm_to_vmem [thread:$0]  (!%p4251_p7), %s550_s11, 384, %s552_s25, [#allocation7], %s4094_s19, %s4094_s19, %s4095_s2  }
  0x36   : > { %s691_s12 = scalar_lea.hbm %s5205_s14, %s4084_s0  ;;  %s688_s29 = scalar_lea.vmem [#allocation11], %s4273_s17 }
  0x37   : > { %s693_s22 = sshll.u32 %s691_s12, 4  ;;  %s695_s10 = sshll.u32 %s688_s29, 4  ;;  %s694_s22 = int_to_ptr.hbm [resolvable:$true] %s693_s22  ;;  %s696_s10 = int_to_ptr.vmem [resolvable:$true] %s695_s10 }
  0x38   : > { %3549 = dma.hbm_to_vmem [thread:$0]  (!%p4285_p0), %s694_s22, 16, %s696_s10, %s4293_s26  }
  0x39   : > { %704 = sbr.rel (%p4243_p5) target bundleno = 2927 (0xb6f), region = 92 }
  0x3e   : > { %4051 = dma.done.wait (%p288_p1), [#allocation4], 384  }
  0x3f   : > { %4053 = vsyncadd (%p288_p1), [#allocation4], 4294966912 }
  0x40   : > { %4055 = dma.done.wait (%p288_p1), [#allocation7], 384  }
  0x41   : > { %4057 = vsyncadd (%p288_p1), [#allocation7], 4294966912  ;;  %s716_s9 = sand.u32 1, %s4228_s1   ;;  %s4335_s12 = sand.u32 1, %s4072_s28  }
  0x42   : > { %s717_s17 = scalar_lea.sflag [#allocation4], %s716_s9 }
  0x43   : > { %4059 = dma.done.wait (%p4236_p4), %s717_s17, 64  }
  0x44   : > { %4061 = vsyncadd (%p4236_p4), %s717_s17, 4294967232  ;;  %p843_p1 = scmp.lt.s32.totalorder %s4080_s30, 1  ;;  %s5244_s5 = sld [smem:[#allocation24_spill]] }
  0x45   : > { %s5245_s6 = sld [smem:[#allocation25_spill]]  ;;  %s746_s21 = scalar_lea.vmem [#allocation11], %s4335_s12 }
  0x46   : > { %s4344_s24 = scalar_select %p843_p1, %s4080_s30, 1 }
  0x47   : > { %s5246_s22 = sld [smem:[#allocation26_spill]]  ;;  %p3307_p2 = scmp.ne.s32.totalorder %s4080_s30, 0 }
  0x48   : > { %s3468_s8 = sshll.u32 %s4344_s24, 4  ;;  %s3473_s13 = sshll.u32 %s4344_s24, 6 }
  0x49   : > { %s4369_s9 = scalar_lea.vmem %s5198_s7, %s3468_s8  ;;  %s5247_s11 = sld [smem:[#allocation29_spill]] }
  0x4a   : > { %s4359_s25 = scalar_lea.vmem %s5244_s5, %s3468_s8  ;;  %s5248_s19 = sld [smem:[#allocation31_spill]] }
  0x4b   : > { %s4364_s23 = scalar_lea.vmem %s5245_s6, %s3468_s8  ;;  %s728_s5 = scalar_lea.vmem [#allocation9], %s4335_s12 }
  0x4c   : > { %s737_s6 = scalar_lea.vmem [#allocation10], %s4335_s12  ;;  %883 = sbr.rel (%p3307_p2) target bundleno = 239 (0xef), region = 120 }
  0x4d   : > { %s4374_s26 = scalar_lea.vmem %s5246_s22, %s3468_s8  ;;  %s5249_s27 = sld [smem:[#allocation22_spill]] (!%p3307_p2) }
  0x4f   : > { %s4379_s18 = scalar_lea.vmem %s5247_s11, %s3468_s8 }
  0x50   : > { %s4384_s2 = scalar_lea.vmem %s5248_s19, %s3473_s13 }
  0x51   : > { %v3474_v3 = vld [vmem:[#allocation3] sm:$0xff]  ;;  %v3475_v4 = vld [vmem:[#allocation3 + $0x8] sm:$0xff]  ;;  %vm929_vm0 = vcmask 392192   ;;  %v3476_v5 = vld [vmem:[#allocation3 + $0x10] sm:$0xff]  ;;  %vm972_vm1 = vcmask 261120  }
  0x52   : > { %v963_v6 = vld [vmem:[#allocation6] sm:$0xff]  ;;  %v965_v7 = vld [vmem:[#allocation6 + $0x10] sm:$0xff]  ;;  %v964_v12 = vld [vmem:[#allocation6 + $0x8] sm:$0xff] }
  0x53   : > { %s5250_s22 = smov %s5249_s27  ;;  %v3479_v0 = vld [vmem:[%s5249_s27 + $0x10] sm:$0xff] }
  0x54   : > { %944 = vmatpush.bf16.msra.mxu0 %v3479_v0  ;;  %3500 = vmatpush.bf16.msra.mxu1 %v3479_v0  ;;  %v3478_v1 = vld [vmem:[%s5250_s22 + $0x8] sm:$0xff]  ;;  %v3477_v2 = vld [vmem:[%s5250_s22] sm:$0xff] }
  0x55   : > { %3501 = vmatpush.bf16.msra.mxu2 %v3479_v0 }
  0x58   : > { %945 = vmatpush.bf16.msra.mxu0 %v3478_v1  ;;  %3502 = vmatpush.bf16.msra.mxu1 %v3478_v1 }
  0x59   : > { %3503 = vmatpush.bf16.msra.mxu2 %v3478_v1 }
  0x5c   : > { %946 = vmatpush.bf16.msra.mxu0 %v3477_v2  ;;  %3504 = vmatpush.bf16.msra.mxu1 %v3477_v2 }
  0x5d   : > { %3505 = vmatpush.bf16.msra.mxu2 %v3477_v2 }
  0x5f   : > { %3332 = vmatmul.msk.bf16.vlgmr.msra.gmra.mxu0 %vm929_vm0, %v3474_v3  ;;  %3333 = vmatmul.msk.bf16.vlgmr.msra.gmra.mxu1 %vm929_vm0, %v3475_v4 }
  0x60   : > { %3334 = vmatmul.msk.bf16.vlgmr.msra.gmra.mxu2 %vm929_vm0, %v3476_v5 }
  0xdc   : > { %v948_v8 = vpop.f32.mrf.mxu0  ;;  %v953_v9 = vpop.f32.mrf.mxu1 }
  0xdd   : > { %v966_v10 = vadd.f32 %v963_v6, %v948_v8  ;;  %v968_v11 = vadd.f32 %v965_v7, %v953_v9 }
  0xdf   : > { %973 = vst.msk [vmem:[#allocation2] sm:$0xff] %vm972_vm1, %v966_v10 }
  0xe0   : > { %975 = vst.msk [vmem:[#allocation2 + $0x10] sm:$0xff] %vm972_vm1, %v968_v11 }
  0xe3   : > { %v958_v13 = vpop.f32.mrf.mxu2 }
  0xe4   : > { %v970_v14 = vadd.f32 %v964_v12, %v958_v13  ;;  %v950_v15 = vpop.f32.mrf.mxu0  ;;  %v955_v16 = vpop.f32.mrf.mxu1 }
  0xe5   : > { %v967_v17 = vadd.f32 %v964_v12, %v950_v15  ;;  %v969_v18 = vadd.f32 %v963_v6, %v955_v16 }
  0xe6   : > { %977 = vst.msk [vmem:[#allocation2 + $0x20] sm:$0xff] %vm972_vm1, %v970_v14 }
  0xe7   : > { %974 = vst.msk [vmem:[#allocation2 + $0x8] sm:$0xff] %vm972_vm1, %v967_v17 }
  0xe8   : > { %976 = vst.msk [vmem:[#allocation2 + $0x18] sm:$0xff] %vm972_vm1, %v969_v18 }
  0xeb   : > { %v960_v19 = vpop.f32.mrf.mxu2 }
  0xec   : > { %v971_v20 = vadd.f32 %v965_v7, %v960_v19 }
  0xee   : > { %978 = vst.msk [vmem:[#allocation2 + $0x28] sm:$0xff] %vm972_vm1, %v971_v20 }
  0xef PF: > { %v983_v21 = vld [vmem:[#allocation2 + $0x20] sm:$0xff]  ;;  %vm987_vm2 = vcmask 261120   ;;  %v981_v22 = vld [vmem:[#allocation2 + $0x10] sm:$0xff]  ;;  %v982_v28 = vld [vmem:[#allocation2 + $0x18] sm:$0xff]  ;;  %v4096_v33 = vmov 32.0   ;;  %s5254_s19 = scalar_lea.vmem %s5195_s4, %s4344_s24  ;;  %s4099_s10 = smov 104  }
  0xf0   : > { %v979_v23 = vld [vmem:[#allocation2] sm:$0xff]  ;;  %v1000_v24 = vsel %vm987_vm2, %v983_v21, 0.0  ;;  %v994_v25 = vsel %vm987_vm2, %v981_v22, 0.0  ;;  %v980_v29 = vld [vmem:[#allocation2 + $0x8] sm:$0xff]  ;;  %v997_v31 = vsel %vm987_vm2, %v982_v28, 0.0  ;;  %3670 = vrcp.f32 %v4096_v33  ;;  %s4100_s17 = smov 8  }
  0xf1   : > { %v988_v26 = vsel %vm987_vm2, %v979_v23, 0.0  ;;  %1001 = vadd.xlane.f32.xlu1 %v1000_v24  ;;  %995 = vadd.xlane.f32.xlu0 %v994_v25  ;;  %v991_v32 = vsel %vm987_vm2, %v980_v29, 0.0  ;;  %v3481_v8 = vld [vmem:[%s4359_s25 + $0x8] sm:$0xff]  ;;  %v3480_v12 = vld [vmem:[%s4359_s25] sm:$0xff]  ;;  %s4101_s27 = smov 16   ;;  %s4102_s29 = smov 24  }
  0xf2   : > { %989 = vadd.xlane.f32.xlu2 %v988_v26  ;;  %3506 = vmatpush.bf16.msra.mxu1 %v3481_v8  ;;  %v3485_v14 = vld [vmem:[%s4369_s9 + $0x8] sm:$0xff]  ;;  %v3484_v20 = vld [vmem:[%s4369_s9] sm:$0xff]  ;;  %s5251_s9 = scalar_lea.vmem %s5194_s3, %s4344_s24  ;;  %s4097_s24 = smov 120  }
  0xf3   : > { %1179 = vmatpush.bf16.msra.mxu0 %v3481_v8  ;;  %1259 = vmatpush.bf16.msra.mxu2 %v3485_v14  ;;  %v3665_v8 = vld [vmem:[%s5254_s19] ss:$0 sm:$0xff]  ;;  %p3454_p3 = scmp.ne.s32.totalorder %s4080_s30, 1 }
  0xf4   : > { %v3482_v14 = vld [vmem:[%s4364_s23] sm:$0xff]  ;;  %s5258_s30 = sld [smem:[#allocation34_spill]] (!%p3454_p3) }
  0xf5   : > { %v984_v27 = vld [vmem:[#allocation2 + $0x28] sm:$0xff]  ;;  %s5260_s16 = sld [smem:[#allocation32_spill]] (!%p3454_p3) }
  0xf6   : > { %v1003_v30 = vsel %vm987_vm2, %v984_v27, 0.0  ;;  %v3671_v34 = vpop.eup %3670  ;;  %3507 = vmatpush.bf16.msra.mxu1 %v3480_v12  ;;  %s5261_s25 = sld [smem:[#allocation33_spill]] (!%p3454_p3) }
  0xf7   : > { %v1007_v35 = vmul.f32 32.0, %v3671_v34  ;;  %vm1011_vm3 = vweird.f32 %v3671_v34  ;;  %1180 = vmatpush.bf16.msra.mxu0 %v3480_v12  ;;  %1260 = vmatpush.bf16.msra.mxu2 %v3484_v20 }
  0xf9   : > { %1004 = vadd.xlane.f32.xlu1 %v1003_v30  ;;  %998 = vadd.xlane.f32.xlu0 %v997_v31  ;;  %v1008_v36 = vsub.f32 1.0, %v1007_v35 }
  0xfa   : > { %992 = vadd.xlane.f32.xlu2 %v991_v32 }
  0xfb   : > { %v1009_v37 = vmul.f32 %v3671_v34, %v1008_v36 }
  0xfd   : > { %v1010_v38 = vadd.f32 %v3671_v34, %v1009_v37 }
  0xff   : > { %v4411_v39 = vsel %vm1011_vm3, %v3671_v34, %v1010_v38 }
 0x164   : > { %v1002_v40 = vpop.xlane.xlu1 %1001  ;;  %v996_v41 = vpop.xlane.xlu0 %995 }
 0x165   : > { %v1017_v42 = vmul.f32 %v4411_v39, %v1002_v40  ;;  %v1015_v43 = vmul.f32 %v4411_v39, %v996_v41  ;;  %v990_v44 = vpop.xlane.xlu2 %989 }
 0x166   : > { %v1013_v53 = vmul.f32 %v4411_v39, %v990_v44 }
 0x167   : > { %v4415_v45 = vsub.f32 %v983_v21, %v1017_v42  ;;  %v4417_v46 = vsub.f32 %v981_v22, %v1015_v43 }
 0x168   : > { %v4435_v61 = vsub.f32 %v979_v23, %v1013_v53 }
 0x169   : > { %v1027_v47 = vmul.f32 %v4417_v46, %v4417_v46  ;;  %v1029_v48 = vmul.f32 %v4415_v45, %v4415_v45 }
 0x16a   : > { %v1025_v4 = vmul.f32 %v4435_v61, %v4435_v61 }
 0x16b   : > { %v1037_v49 = vsel %vm987_vm2, %v1027_v47, 0.0  ;;  %v1043_v50 = vsel %vm987_vm2, %v1029_v48, 0.0 }
 0x16c   : > { %v1005_v51 = vpop.xlane.xlu1 %1004  ;;  %1038 = vadd.xlane.f32.xlu0 %v1037_v49  ;;  %v999_v52 = vpop.xlane.xlu0 %998  ;;  %1044 = vadd.xlane.f32.xlu2 %v1043_v50  ;;  %v1031_v5 = vsel %vm987_vm2, %v1025_v4, 0.0 }
 0x16d   : > { %v1018_v54 = vmul.f32 %v4411_v39, %v1005_v51  ;;  %v1016_v55 = vmul.f32 %v4411_v39, %v999_v52  ;;  %v993_v56 = vpop.xlane.xlu2 %992 }
 0x16e   : > { %v1014_v57 = vmul.f32 %v4411_v39, %v993_v56 }
 0x16f   : > { %v4429_v58 = vsub.f32 %v984_v27, %v1018_v54  ;;  %v4431_v59 = vsub.f32 %v982_v28, %v1016_v55 }
 0x170   : > { %v4433_v60 = vsub.f32 %v980_v29, %v1014_v57  ;;  %v3664_v57 = vld [vmem:[%s5251_s9] ss:$0 sm:$0xff] }
 0x171   : > { %v1030_v62 = vmul.f32 %v4429_v58, %v4429_v58  ;;  %v1028_v63 = vmul.f32 %v4431_v59, %v4431_v59 }
 0x172   : > { %v1026_v0 = vmul.f32 %v4433_v60, %v4433_v60 }
 0x173   : > { %v1046_v1 = vsel %vm987_vm2, %v1030_v62, 0.0  ;;  %v1040_v2 = vsel %vm987_vm2, %v1028_v63, 0.0 }
 0x174   : > { %1047 = vadd.xlane.f32.xlu0 %v1046_v1  ;;  %1041 = vadd.xlane.f32.xlu1 %v1040_v2  ;;  %v1034_v3 = vsel %vm987_vm2, %v1026_v0, 0.0 }
 0x175   : > { %1035 = vadd.xlane.f32.xlu2 %v1034_v3 }
 0x17c   : > { %1032 = vadd.xlane.f32.xlu1 %v1031_v5 }
 0x1df   : > { %v1039_v6 = vpop.xlane.xlu0 %1038  ;;  %v1045_v7 = vpop.xlane.xlu2 %1044 }
 0x1e0   : > { %v1051_v9 = vmul.f32 %v1039_v6, %v4411_v39  ;;  %v1053_v10 = vmul.f32 %v1045_v7, %v4411_v39 }
 0x1e2   : > { %v1057_v11 = vadd.f32 1e-05, %v1051_v9  ;;  %v4453_v13 = vadd.f32 1e-05, %v1053_v10  ;;  %v3483_v9 = vld [vmem:[%s4364_s23 + $0x8] sm:$0xff]  ;;  %s4098_s23 = smov 112  }
 0x1e3   : > { %1219 = vmatpush.bf16.msrb.mxu1 %v3483_v9 }
 0x1e4   : > { %3672 = vrsqrt.f32 %v1057_v11  ;;  %vm1087_vm5 = vweird.f32 %v1057_v11  ;;  %vm1107_vm1 = vweird.f32 %v4453_v13 }
 0x1e5   : > { %3674 = vrsqrt.f32 %v4453_v13 }
 0x1e7   : > { %v1042_v15 = vpop.xlane.xlu1 %1041  ;;  %v1048_v16 = vpop.xlane.xlu0 %1047  ;;  %1220 = vmatpush.bf16.msrb.mxu1 %v3482_v14 }
 0x1e8   : > { %v1052_v17 = vmul.f32 %v1042_v15, %v4411_v39  ;;  %v1054_v18 = vmul.f32 %v1048_v16, %v4411_v39  ;;  %v1036_v19 = vpop.xlane.xlu2 %1035 }
 0x1e9   : > { %v1050_v21 = vmul.f32 %v1036_v19, %v4411_v39 }
 0x1ea   : > { %v3673_v22 = vpop.eup %3672  ;;  %v1058_v23 = vadd.f32 1e-05, %v1052_v17  ;;  %v4461_v24 = vadd.f32 1e-05, %v1054_v18 }
 0x1eb   : > { %v1082_v25 = vmul.f32 %v3673_v22, %v1057_v11  ;;  %v1056_v26 = vadd.f32 1e-05, %v1050_v21  ;;  %v4464_v28 = vpop.eup %3674  ;;  %vm1088_vm4 = vweird.f32 %v3673_v22 }
 0x1ec   : > { %3676 = vrsqrt.f32 %v1058_v23  ;;  %v1102_v34 = vmul.f32 %v4464_v28, %v4453_v13  ;;  %vm1089_vm6 = vmor %vm1087_vm5, %vm1088_vm4  ;;  %vm1097_vm10 = vweird.f32 %v1058_v23  ;;  %vm1117_vm12 = vweird.f32 %v4461_v24 }
 0x1ed   : > { %v1083_v27 = vmul.f32 %v3673_v22, %v1082_v25  ;;  %3678 = vrsqrt.f32 %v4461_v24  ;;  %vm1077_vm8 = vweird.f32 %v1056_v26  ;;  %vm1108_vm3 = vweird.f32 %v4464_v28 }
 0x1ee   : > { %3680 = vrsqrt.f32 %v1056_v26  ;;  %v1103_v44 = vmul.f32 %v4464_v28, %v1102_v34 }
 0x1ef   : > { %v1084_v29 = vmul.f32 0.5, %v1083_v27  ;;  %v1033_v30 = vpop.xlane.xlu1 %1032 }
 0x1f0   : > { %v1049_v31 = vmul.f32 %v1033_v30, %v4411_v39  ;;  %v1104_v56 = vmul.f32 0.5, %v1103_v44 }
 0x1f1   : > { %v1085_v32 = vsub.f32 1.5, %v1084_v29 }
 0x1f2   : > { %v3677_v33 = vpop.eup %3676  ;;  %v1055_v35 = vadd.f32 1e-05, %v1049_v31  ;;  %v1105_v5 = vsub.f32 1.5, %v1104_v56 }
 0x1f3   : > { %v4469_v36 = vpop.eup %3678  ;;  %v1086_v37 = vmul.f32 %v3673_v22, %v1085_v32  ;;  %v1092_v38 = vmul.f32 %v3677_v33, %v1058_v23  ;;  %vm1098_vm7 = vweird.f32 %v3677_v33 }
 0x1f4   : > { %v3681_v40 = vpop.eup %3680  ;;  %v1112_v41 = vmul.f32 %v4469_v36, %v4461_v24  ;;  %3682 = vrsqrt.f32 %v1055_v35  ;;  %vm1099_vm11 = vmor %vm1097_vm10, %vm1098_vm7  ;;  %vm1118_vm14 = vweird.f32 %v4469_v36  ;;  %vm1067_vm15 = vweird.f32 %v1055_v35 }
 0x1f5   : > { %v1093_v42 = vmul.f32 %v3677_v33, %v1092_v38  ;;  %v1072_v43 = vmul.f32 %v3681_v40, %v1056_v26  ;;  %v1090_v48 = vsel %vm1089_vm6, %v3673_v22, %v1086_v37  ;;  %vm1078_vm9 = vweird.f32 %v3681_v40  ;;  %vm4503_vm4 = vmor %vm1117_vm12, %vm1118_vm14 }
 0x1f6   : > { %v1113_v47 = vmul.f32 %v4469_v36, %v1112_v41  ;;  %v1123_v55 = vmul.f32 %v1090_v48, %v4417_v46  ;;  %vm4483_vm13 = vmor %vm1077_vm8, %vm1078_vm9  ;;  %v1106_v20 = vmul.f32 %v4464_v28, %v1105_v5  ;;  %vm1314_vm7 = vcmask 64512  }
 0x1f7   : > { %v1094_v49 = vmul.f32 0.5, %v1093_v42  ;;  %v1073_v50 = vmul.f32 %v3681_v40, %v1072_v43  ;;  %vm1109_vm6 = vmor %vm1107_vm1, %vm1108_vm3  ;;  %vm1501_vm8 = vcmask 1043456   ;;  %vm1405_vm10 = vcmask 195584  }
 0x1f8   : > { %v1114_v52 = vmul.f32 0.5, %v1113_v47  ;;  %v1132_v7 = vmul.f32 %v3664_v57, %v1123_v55 }
 0x1f9   : > { %v1095_v51 = vsub.f32 1.5, %v1094_v49  ;;  %v1074_v53 = vmul.f32 0.5, %v1073_v50 }
 0x1fa   : > { %v3683_v54 = vpop.eup %3682  ;;  %v1115_v2 = vsub.f32 1.5, %v1114_v52  ;;  %v1141_v18 = vadd.f32 %v3665_v8, %v1132_v7 }
 0x1fb   : > { %v1096_v62 = vmul.f32 %v3677_v33, %v1095_v51  ;;  %v1075_v63 = vsub.f32 1.5, %v1074_v53  ;;  %v1062_v0 = vmul.f32 %v3683_v54, %v1055_v35  ;;  %vm1068_vm0 = vweird.f32 %v3683_v54 }
 0x1fc   : > { %vm1069_vm5 = vmor %vm1067_vm15, %vm1068_vm0 }
 0x1fd   : > { %v1100_v46 = vsel %vm1099_vm11, %v3677_v33, %v1096_v62  ;;  %v1076_v3 = vmul.f32 %v3681_v40, %v1075_v63  ;;  %v1063_v4 = vmul.f32 %v3683_v54, %v1062_v0  ;;  %vm2365_vm11 = vcmask 130048  }
 0x1fe   : > { %v1124_v6 = vmul.f32 %v1100_v46, %v4431_v59  ;;  %v1116_v59 = vmul.f32 %v4469_v36, %v1115_v2 }
 0x1ff   : > { %v1080_v10 = vsel %vm4483_vm13, %v3681_v40, %v1076_v3  ;;  %v1064_v11 = vmul.f32 0.5, %v1063_v4 }
 0x200   : > { %v1133_v12 = vmul.f32 %v3664_v57, %v1124_v6  ;;  %v1122_v17 = vmul.f32 %v1080_v10, %v4433_v60  ;;  %v1120_v22 = vsel %vm4503_vm4, %v4469_v36, %v1116_v59  ;;  %v1110_v60 = vsel %vm1109_vm6, %v4464_v28, %v1106_v20 }
 0x201   : > { %v1065_v16 = vsub.f32 1.5, %v1064_v11  ;;  %v1126_v26 = vmul.f32 %v1120_v22, %v4429_v58  ;;  %v1125_v29 = vmul.f32 %v1110_v60, %v4415_v45 }
 0x202   : > { %v1142_v19 = vadd.f32 %v3665_v8, %v1133_v12  ;;  %v1131_v25 = vmul.f32 %v3664_v57, %v1122_v17 }
 0x203   : > { %v1066_v21 = vmul.f32 %v3683_v54, %v1065_v16  ;;  %v1135_v33 = vmul.f32 %v3664_v57, %v1126_v26  ;;  %v1134_v34 = vmul.f32 %v3664_v57, %v1125_v29 }
 0x204   : > { %v1146_v13 = vpack.c.bf16 %v1142_v19, %v1141_v18  ;;  %v1140_v31 = vadd.f32 %v3665_v8, %v1131_v25 }
 0x205   : > { %v1070_v23 = vsel %vm1069_vm5, %v3683_v54, %v1066_v21  ;;  %v1143_v35 = vadd.f32 %v3665_v8, %v1134_v34 }
 0x206   : > { %v1121_v24 = vmul.f32 %v1070_v23, %v4435_v61  ;;  %3344 = vmatmul.msk.bf16.vlgmr.msra.gmra.mxu1 %vm987_vm2, %v1146_v13  ;;  %v1144_v61 = vadd.f32 %v3665_v8, %v1135_v33 }
 0x208   : > { %v1130_v27 = vmul.f32 %v3664_v57, %v1121_v24  ;;  %v1147_v36 = vpack.c.bf16 %v1144_v61, %v1143_v35 }
 0x20a   : > { %v1139_v30 = vadd.f32 %v3665_v8, %v1130_v27 }
 0x20c   : > { %v1145_v32 = vpack.c.bf16 %v1140_v31, %v1139_v30 }
 0x20e   : > { %3343 = vmatmul.msk.bf16.vlgmr.msra.gmra.mxu0 %vm987_vm2, %v1145_v32  ;;  %3365 = vmatmul.msk.bf16.vlgmr.msra.gmra.mxu2 %vm987_vm2, %v1145_v32 }
 0x216   : > { %3345 = vmatmul.msk.bf16.gmra.mxu1 %vm987_vm2, %v1147_v36 }
 0x21e   : > { %3366 = vmatmul.msk.bf16.gmra.mxu2 %vm987_vm2, %v1146_v13 }
 0x226   : > { %3354 = vmatmul.msk.bf16.vlgmr.msrb.gmra.mxu1 %vm987_vm2, %v1145_v32 }
 0x22e   : > { %3367 = vmatmul.msk.bf16.gmra.mxu2 %vm987_vm2, %v1147_v36 }
 0x236   : > { %3355 = vmatmul.msk.bf16.gmra.mxu1 %vm987_vm2, %v1146_v13 }
 0x246   : > { %3356 = vmatmul.msk.bf16.gmra.mxu1 %vm987_vm2, %v1147_v36 }
 0x283   : > { %v1187_v45 = vpop.f32.mrf.mxu1 }
 0x284   : > { %v1279_v47 = vpack.c.bf16 %v1187_v45, %v1187_v45 }
 0x286   : > { %v1303_v51 = vunpack.c.l.b16 %v1279_v47 }
 0x288   : > { %v4531_v52 = vpack.c.b16 %v1303_v51, %v1303_v51 }
 0x28b   : > { %v1182_v58 = vpop.f32.mrf.mxu0  ;;  %v1189_v28 = vpop.f32.mrf.mxu1 }
 0x28c   : > { %v1277_v38 = vpack.c.bf16 %v1182_v58, %v1182_v58  ;;  %v1280_v55 = vpack.c.bf16 %v1189_v28, %v1189_v28 }
 0x28e   : > { %v1301_v43 = vunpack.c.l.b16 %v1277_v38  ;;  %v1348_v62 = vunpack.c.l.b16 %v1280_v55 }
 0x291   : > { %v4525_v37 = vpop.f32.mrf.mxu2 }
 0x292   : > { %v1289_v60 = vpack.c.bf16 %v4525_v37, %v4525_v37 }
 0x293   : > { %v1184_v40 = vpop.f32.mrf.mxu0  ;;  %v1192_v41 = vpop.f32.mrf.mxu1 }
 0x294   : > { %v1278_v42 = vpack.c.bf16 %v1184_v40, %v1184_v40  ;;  %v1281_v53 = vpack.c.bf16 %v1192_v41, %v1192_v41  ;;  %v1489_v61 = vunpack.c.l.b16 %v1289_v60 }
 0x296   : > { %v1302_v44 = vunpack.c.l.b16 %v1278_v42  ;;  %v1349_v57 = vunpack.c.l.b16 %v1281_v53 }
 0x298   : > { %v4527_v48 = vpack.c.b16 %v1302_v44, %v1301_v43  ;;  %v4535_v63 = vpack.c.b16 %v1349_v57, %v1348_v62 }
 0x299   : > { %v1264_v49 = vpop.f32.mrf.mxu2 }
 0x29a   : > { %1567 = vrot.lane.b32.xlu2 %v4527_v48, %s4097_s24  ;;  %v1290_v22 = vpack.c.bf16 %v1264_v49, %v1264_v49 }
 0x29b   : > { %v1194_v50 = vpop.f32.mrf.mxu1 }
 0x29c   : > { %v1282_v0 = vpack.c.bf16 %v1194_v50, %v1194_v50  ;;  %v1490_v29 = vunpack.c.l.b16 %v1290_v22 }
 0x29e   : > { %v1350_v3 = vunpack.c.l.b16 %v1282_v0  ;;  %v4560_v36 = vpack.c.b16 %v1490_v29, %v1489_v61 }
 0x2a0   : > { %v4539_v7 = vpack.c.b16 %v1350_v3, %v1350_v3 }
 0x2a1   : > { %v1267_v54 = vpop.f32.mrf.mxu2 }
 0x2a2   : > { %1569 = vrot.lane.b32.xlu2 %v4531_v52, %s4097_s24  ;;  %v1291_v14 = vpack.c.bf16 %v1267_v54, %v1267_v54 }
 0x2a3   : > { %v1222_v56 = vpop.f32.mrf.mxu1 }
 0x2a4   : > { %v1283_v46 = vpack.c.bf16 %v1222_v56, %v1222_v56  ;;  %v1491_v18 = vunpack.c.l.b16 %v1291_v14 }
 0x2a6   : > { %v1309_v5 = vunpack.c.l.b16 %v1283_v46  ;;  %v4548_v24 = vpack.c.b16 %v1491_v18, %v1491_v18 }
 0x2a8   : > { %v1503_v34 = vsel %vm1501_vm8, %v4548_v24, 0 }
 0x2a9   : > { %v1269_v1 = vpop.f32.mrf.mxu2 }
 0x2aa   : > { %1605 = vrot.lane.b32.xlu2 %v4535_v63, %s4097_s24  ;;  %v1292_v13 = vpack.c.bf16 %v1269_v1, %v1269_v1 }
 0x2ab   : > { %v1224_v2 = vpop.f32.mrf.mxu1 }
 0x2ac   : > { %v1284_v4 = vpack.c.bf16 %v1224_v2, %v1224_v2  ;;  %v1534_v27 = vunpack.c.l.b16 %v1292_v13 }
 0x2ae   : > { %v1310_v6 = vunpack.c.l.b16 %v1284_v4 }
 0x2b0   : > { %v1312_v8 = vpack.c.b16 %v1310_v6, %v1309_v5 }
 0x2b1   : > { %v1272_v9 = vpop.f32.mrf.mxu2 }
 0x2b2   : > { %1571 = vrot.lane.b32.xlu1 %v1312_v8, %s4097_s24  ;;  %1607 = vrot.lane.b32.xlu2 %v4539_v7, %s4097_s24  ;;  %v1293_v19 = vpack.c.bf16 %v1272_v9, %v1272_v9  ;;  %v1322_v31 = vsel %vm1314_vm7, %v1312_v8, 0 }
 0x2b3   : > { %v1227_v10 = vpop.f32.mrf.mxu1 }
 0x2b4   : > { %v1285_v11 = vpack.c.bf16 %v1227_v10, %v1227_v10  ;;  %v1535_v25 = vunpack.c.l.b16 %v1293_v19 }
 0x2b6   : > { %v1311_v12 = vunpack.c.l.b16 %v1285_v11  ;;  %v4555_v32 = vpack.c.b16 %v1535_v25, %v1534_v27 }
 0x2b8   : > { %v1313_v59 = vpack.c.b16 %v1311_v12, %v1311_v12 }
 0x2b9   : > { %v1274_v15 = vpop.f32.mrf.mxu2 }
 0x2ba   : > { %v1294_v16 = vpack.c.bf16 %v1274_v15, %v1274_v15  ;;  %1573 = vrot.lane.b32.xlu0 %v1313_v59, %s4097_s24  ;;  %v1325_v17 = vsel %vm1314_vm7, %v1313_v59, 0 }
 0x2bb   : > { %v1229_v20 = vpop.f32.mrf.mxu1  ;;  %1333 = vmatpush.bf16.xpose.msrb.mxu0 %v1325_v17  ;;  %3508 = vmatpush.bf16.xpose.msra.mxu3 %v1325_v17 }
 0x2bc   : > { %v1536_v21 = vunpack.c.l.b16 %v1294_v16  ;;  %v1286_v30 = vpack.c.bf16 %v1229_v20, %v1229_v20 }
 0x2be   : > { %v4546_v23 = vpack.c.b16 %v1536_v21, %v1536_v21  ;;  %v1356_v45 = vunpack.c.l.b16 %v1286_v30 }
 0x2c0   : > { %v1547_v26 = vsel %vm1501_vm8, %v4546_v23, 0 }
 0x2c1   : > { %1555 = vmatpush.bf16.msra.mxu1 %v1547_v26 }
 0x2c3   : > { %v1232_v33 = vpop.f32.mrf.mxu1  ;;  %1334 = vmatpush.bf16.xpose.msrb.mxu0 %v1322_v31  ;;  %3509 = vmatpush.bf16.xpose.msra.mxu3 %v1322_v31 }
 0x2c4   : > { %v1287_v35 = vpack.c.bf16 %v1232_v33, %v1232_v33 }
 0x2c5   : > { %1556 = vmatpush.bf16.msra.mxu1 %v4555_v32 }
 0x2c6   : > { %v1357_v58 = vunpack.c.l.b16 %v1287_v35 }
 0x2c8   : > { %v1359_v28 = vpack.c.b16 %v1357_v58, %v1356_v45 }
 0x2ca   : > { %3369 = vmatmul.msk.bf16.vlgmr.msra.gmra.mxu3 %vm1314_vm7, %v4531_v52  ;;  %1609 = vrot.lane.b32.xlu1 %v1359_v28, %s4097_s24  ;;  %v1368_v43 = vsel %vm1314_vm7, %v1359_v28, 0 }
 0x2cb   : > { %1511 = vmatpush.bf16.msra.mxu0 %v1503_v34  ;;  %1849 = vrot.lane.b32.xlu2 %v1359_v28, %s4098_s23  ;;  %v1234_v37 = vpop.f32.mrf.mxu1 }
 0x2cc   : > { %3368 = vmatmul.msk.bf16.vlgmr.msrb.gmra.mxu0 %vm1314_vm7, %v4527_v48  ;;  %v1288_v38 = vpack.c.bf16 %v1234_v37, %v1234_v37 }
 0x2ce   : > { %v1358_v40 = vunpack.c.l.b16 %v1288_v38 }
 0x2cf   : > { %1512 = vmatpush.bf16.msra.mxu0 %v4560_v36 }
 0x2d0   : > { %v1360_v41 = vpack.c.b16 %v1358_v40, %v1358_v40 }
 0x2d2   : > { %1811 = vrot.lane.b32.xlu1 %v1312_v8, %s4098_s23  ;;  %1611 = vrot.lane.b32.xlu0 %v1360_v41, %s4097_s24  ;;  %v1371_v42 = vsel %vm1314_vm7, %v1360_v41, 0 }
 0x2d3   : > { %2051 = vrot.lane.b32.xlu2 %v1312_v8, %s4099_s10  ;;  %1379 = vmatpush.bf16.xpose.msrb.mxu3 %v1371_v42 }
 0x2da   : > { %1851 = vrot.lane.b32.xlu1 %v1360_v41, %s4098_s23  ;;  %1813 = vrot.lane.b32.xlu0 %v1313_v59, %s4098_s23 }
 0x2db   : > { %2091 = vrot.lane.b32.xlu2 %v1360_v41, %s4099_s10  ;;  %1380 = vmatpush.bf16.xpose.msrb.mxu3 %v1368_v43 }
 0x2e2   : > { %2053 = vrot.lane.b32.xlu1 %v1313_v59, %s4099_s10  ;;  %3370 = vmatmul.msk.bf16.vlgmr.msrb.gmra.mxu3 %vm1314_vm7, %v4535_v63 }
 0x2e3   : > { %1807 = vrot.lane.b32.xlu0 %v4527_v48, %s4098_s23  ;;  %2049 = vrot.lane.b32.xlu2 %v4531_v52, %s4099_s10 }
 0x2ea   : > { %2047 = vrot.lane.b32.xlu1 %v4527_v48, %s4099_s10 }
 0x2eb   : > { %1809 = vrot.lane.b32.xlu0 %v4531_v52, %s4098_s23  ;;  %1737 = vrot.lane.b32.xlu2 %v4548_v24, %s4097_s24 }
 0x2f2   : > { %3371 = vmatmul.msk.bf16.gmra.mxu3 %vm1314_vm7, %v4539_v7  ;;  %2089 = vrot.lane.b32.xlu1 %v1359_v28, %s4099_s10 }
 0x2f3   : > { %1845 = vrot.lane.b32.xlu0 %v4535_v63, %s4098_s23  ;;  %1775 = vrot.lane.b32.xlu2 %v4555_v32, %s4097_s24 }
 0x2f4   : > { %v1568_v44 = vpop.permute.xlu2 %1567 }
 0x2fa   : > { %2087 = vrot.lane.b32.xlu1 %v4539_v7, %s4099_s10 }
 0x2fb   : > { %1847 = vrot.lane.b32.xlu0 %v4539_v7, %s4098_s23  ;;  %2017 = vrot.lane.b32.xlu2 %v4546_v23, %s4098_s23 }
 0x2fc   : > { %v1570_v47 = vpop.permute.xlu2 %1569 }
 0x302   : > { %1735 = vrot.lane.b32.xlu1 %v4560_v36, %s4097_s24 }
 0x303   : > { %2085 = vrot.lane.b32.xlu0 %v4535_v63, %s4099_s10  ;;  %v1295_v63 = vlaneseq }
 0x304   : > { %v1606_v48 = vpop.permute.xlu2 %1605 }
 0x305   : > { %v4621_v46 = vand.u32 127, %v1295_v63 }
 0x307   : > { %vm1297_vm9 = vcmp.lt.s32.totalorder %v4621_v46, 17 }
 0x30a   : > { %1777 = vrot.lane.b32.xlu1 %v4546_v23, %s4097_s24 }
 0x30b   : > { %1977 = vrot.lane.b32.xlu0 %v4548_v24, %s4098_s23 }
 0x30c   : > { %v4613_v49 = vpop.permute.xlu2 %1607 }
 0x312   : > { %1975 = vrot.lane.b32.xlu1 %v4560_v36, %s4098_s23 }
 0x324   : > { %v1572_v54 = vpop.permute.xlu1 %1571 }
 0x325   : > { %v1850_v50 = vpop.permute.xlu2 %1849  ;;  %v1582_v56 = vsel %vm1314_vm7, %v1572_v54, 0 }
 0x326   : > { %v1860_v60 = vsel %vm1314_vm7, %v1850_v50, 0 }
 0x32c   : > { %v1574_v51 = vpop.permute.xlu0 %1573 }
 0x32d   : > { %v2052_v52 = vpop.permute.xlu2 %2051  ;;  %v1585_v53 = vsel %vm1314_vm7, %v1574_v51, 0 }
 0x32e   : > { %1593 = vmatpush.bf16.xpose.msrb.mxu2 %v1585_v53  ;;  %v2062_v31 = vsel %vm1314_vm7, %v2052_v52, 0 }
 0x335   : > { %v2092_v55 = vpop.permute.xlu2 %2091 }
 0x336   : > { %1594 = vmatpush.bf16.xpose.msrb.mxu2 %v1582_v56  ;;  %v2103_v27 = vsel %vm1314_vm7, %v2092_v55, 0 }
 0x33c   : > { %v1610_v57 = vpop.permute.xlu1 %1609 }
 0x33d   : > { %v4617_v62 = vpop.permute.xlu2 %2049  ;;  %3376 = vmatmul.msk.bf16.vlgmr.msrb.gmra.mxu2 %vm1314_vm7, %v1568_v44  ;;  %v1620_v11 = vsel %vm1314_vm7, %v1610_v57, 0 }
 0x344   : > { %v1812_v0 = vpop.permute.xlu1 %1811  ;;  %v1612_v1 = vpop.permute.xlu0 %1611 }
 0x345   : > { %v1623_v2 = vsel %vm1314_vm7, %v1612_v1, 0  ;;  %v1738_v3 = vpop.permute.xlu2 %1737  ;;  %v1822_v22 = vsel %vm1314_vm7, %v1812_v0, 0 }
 0x346   : > { %v1747_v4 = vsel %vm1501_vm8, %v1738_v3, 0  ;;  %1631 = vmatpush.bf16.xpose.msra.mxu3 %v1623_v2 }
 0x347   : > { %1755 = vmatpush.bf16.msrb.mxu0 %v1747_v4 }
 0x349   : > { %v1336_v5 = vpop.f32.mrf.mxu0 }
 0x34a   : > { %v1391_v6 = vmul.f32 0.35355338, %v1336_v5 }
 0x34c   : > { %v4628_v7 = vsel %vm1297_vm9, %v1391_v6, -1e+09  ;;  %v1852_v8 = vpop.permute.xlu1 %1851  ;;  %v1814_v9 = vpop.permute.xlu0 %1813 }
 0x34d   : > { %v1406_v10 = vsel %vm1405_vm10, %v4628_v7, -inf  ;;  %v1863_v12 = vsel %vm1314_vm7, %v1852_v8, 0  ;;  %v1825_v14 = vsel %vm1314_vm7, %v1814_v9, 0  ;;  %v1341_v59 = vpop.f32.mrf.mxu3  ;;  %3377 = vmatmul.msk.bf16.gmra.mxu2 %vm1314_vm7, %v1570_v47  ;;  %v1776_v54 = vpop.permute.xlu2 %1775 }
 0x34e   : > { %1407 = vmax.xlane.f32.xlu0 %v1406_v10  ;;  %v1393_v15 = vmul.f32 0.35355338, %v1341_v59  ;;  %1632 = vmatpush.bf16.xpose.msra.mxu3 %v1620_v11 }
 0x34f   : > { %1833 = vmatpush.bf16.xpose.msra.mxu2 %v1825_v14 }
 0x350   : > { %v4638_v17 = vsel %vm1297_vm9, %v1393_v15, -1e+09 }
 0x351   : > { %v1338_v16 = vpop.f32.mrf.mxu0  ;;  %v1412_v19 = vsel %vm1405_vm10, %v4638_v17, -inf }
 0x352   : > { %v1392_v18 = vmul.f32 0.35355338, %v1338_v16  ;;  %1413 = vmax.xlane.f32.xlu1 %v1412_v19 }
 0x354   : > { %v4644_v20 = vsel %vm1297_vm9, %v1392_v18, -1e+09  ;;  %v2054_v21 = vpop.permute.xlu1 %2053 }
 0x355   : > { %v1409_v13 = vsel %vm1405_vm10, %v4644_v20, -inf  ;;  %v2065_v25 = vsel %vm1314_vm7, %v2054_v21, 0  ;;  %3378 = vmatmul.msk.bf16.vlgmr.msra.gmra.mxu3 %vm1314_vm7, %v1606_v48  ;;  %v1343_v26 = vpop.f32.mrf.mxu3  ;;  %v1808_v29 = vpop.permute.xlu0 %1807 }
 0x356   : > { %1871 = vmatpush.bf16.xpose.msrb.mxu3 %v1863_v12  ;;  %1410 = vmax.xlane.f32.xlu2 %v1409_v13  ;;  %v4687_v0 = vpop.permute.xlu2 %2017 }
 0x357   : > { %1834 = vmatpush.bf16.xpose.msra.mxu2 %v1822_v22 }
 0x35c   : > { %v2048_v30 = vpop.permute.xlu1 %2047 }
 0x35d   : > { %v1810_v28 = vpop.permute.xlu0 %1809 }
 0x35e   : > { %1872 = vmatpush.bf16.xpose.msrb.mxu3 %v1860_v60  ;;  %3384 = vmatmul.msk.bf16.vlgmr.msra.gmra.mxu2 %vm1314_vm7, %v1808_v29 }
 0x35f   : > { %2073 = vmatpush.bf16.xpose.msrb.mxu2 %v2065_v25 }
 0x364   : > { %v2090_v33 = vpop.permute.xlu1 %2089 }
 0x365   : > { %v2100_v34 = vsel %vm1314_vm7, %v2090_v33, 0  ;;  %v1382_v61 = vpop.f32.mrf.mxu3  ;;  %3379 = vmatmul.msk.bf16.gmra.mxu3 %vm1314_vm7, %v4613_v49  ;;  %v1846_v43 = vpop.permute.xlu0 %1845 }
 0x366   : > { %2111 = vmatpush.bf16.xpose.msra.mxu3 %v2103_v27  ;;  %v1394_v35 = vmul.f32 0.35355338, %v1382_v61 }
 0x367   : > { %2074 = vmatpush.bf16.xpose.msrb.mxu2 %v2062_v31 }
 0x368   : > { %v4660_v45 = vsel %vm1297_vm9, %v1394_v35, -1e+09 }
 0x369   : > { %v1415_v58 = vsel %vm1405_vm10, %v4660_v45, -inf }
 0x36a   : > { %1416 = vmax.xlane.f32.xlu0 %v1415_v58 }
 0x36c   : > { %v2088_v37 = vpop.permute.xlu1 %2087 }
 0x36d   : > { %v1384_v38 = vpop.f32.mrf.mxu3  ;;  %v1848_v55 = vpop.permute.xlu0 %1847 }
 0x36e   : > { %2112 = vmatpush.bf16.xpose.msra.mxu3 %v2100_v34  ;;  %3385 = vmatmul.msk.bf16.gmra.mxu2 %vm1314_vm7, %v1810_v28  ;;  %v1395_v40 = vmul.f32 0.35355338, %v1384_v38 }
 0x370   : > { %v4667_v41 = vsel %vm1297_vm9, %v1395_v40, -1e+09 }
 0x371   : > { %v1418_v42 = vsel %vm1405_vm10, %v4667_v41, -inf }
 0x372   : > { %1419 = vmax.xlane.f32.xlu2 %v1418_v42 }
 0x374   : > { %v1736_v44 = vpop.permute.xlu1 %1735 }
 0x375   : > { %v1387_v47 = vpop.f32.mrf.mxu3  ;;  %1756 = vmatpush.bf16.msrb.mxu0 %v1736_v44  ;;  %3386 = vmatmul.msk.bf16.vlgmr.msrb.gmra.mxu3 %vm1314_vm7, %v1846_v43  ;;  %v2086_v56 = vpop.permute.xlu0 %2085 }
 0x376   : > { %v1396_v48 = vmul.f32 0.35355338, %v1387_v47 }
 0x378   : > { %v4674_v49 = vsel %vm1297_vm9, %v1396_v48, -1e+09 }
 0x379   : > { %v1421_v50 = vsel %vm1405_vm10, %v4674_v49, -inf }
 0x37a   : > { %1422 = vmax.xlane.f32.xlu2 %v1421_v50 }
 0x37c   : > { %v1778_v51 = vpop.permute.xlu1 %1777 }
 0x37d   : > { %v1787_v52 = vsel %vm1501_vm8, %v1778_v51, 0  ;;  %v1389_v53 = vpop.f32.mrf.mxu3  ;;  %v4685_v57 = vpop.permute.xlu0 %1977 }
 0x37e   : > { %3392 = vmatmul.msk.bf16.vlgmr.msrb.gmra.mxu2 %vm1314_vm7, %v2048_v30  ;;  %1795 = vmatpush.bf16.msrb.mxu1 %v1787_v52 }
 0x382   : > { %1796 = vmatpush.bf16.msrb.mxu1 %v1776_v54 }
 0x384   : > { %v4689_v1 = vpop.permute.xlu1 %1975 }
 0x385   : > { %3387 = vmatmul.msk.bf16.gmra.mxu3 %vm1314_vm7, %v1848_v55 }
 0x38e   : > { %3393 = vmatmul.msk.bf16.gmra.mxu2 %vm1314_vm7, %v4617_v62 }
 0x395   : > { %3394 = vmatmul.msk.bf16.vlgmr.msra.gmra.mxu3 %vm1314_vm7, %v2086_v56 }
 0x3a5   : > { %3395 = vmatmul.msk.bf16.gmra.mxu3 %vm1314_vm7, %v2088_v37 }
 0x3c0   : > { %v1596_v3 = vpop.f32.mrf.mxu2 }
 0x3c1   : > { %v1408_v2 = vpop.xlane.xlu0 %1407  ;;  %v1643_v5 = vmul.f32 0.35355338, %v1596_v3 }
 0x3c2   : > { %v1424_v4 = vsub.f32 %v4628_v7, %v1408_v2 }
 0x3c3   : > { %v4694_v62 = vsel %vm1297_vm9, %v1643_v5, -1e+09 }
 0x3c4   : > { %v1430_v6 = vmul.f32 1.442695, %v1424_v4  ;;  %v1655_v8 = vsel %vm1405_vm10, %v4694_v62, -inf }
 0x3c5   : > { %1656 = vmax.xlane.f32.xlu1 %v1655_v8  ;;  %v1414_v9 = vpop.xlane.xlu1 %1413 }
 0x3c6   : > { %3684 = vpow2.f32 %v1430_v6  ;;  %v1426_v7 = vsub.f32 %v4638_v17, %v1414_v9 }
 0x3c8   : > { %v1598_v11 = vpop.f32.mrf.mxu2  ;;  %v1434_v18 = vmul.f32 1.442695, %v1426_v7 }
 0x3c9   : > { %v1411_v10 = vpop.xlane.xlu2 %1410  ;;  %v1644_v16 = vmul.f32 0.35355338, %v1598_v11 }
 0x3ca   : > { %v1425_v12 = vsub.f32 %v4644_v20, %v1411_v10 }
 0x3cb   : > { %v4706_v13 = vsel %vm1297_vm9, %v1644_v16, -1e+09 }
 0x3cc   : > { %v4699_v14 = vpop.eup %3684  ;;  %v1432_v59 = vmul.f32 1.442695, %v1425_v12  ;;  %v1658_v20 = vsel %vm1405_vm10, %v4706_v13, -inf }
 0x3cd   : > { %v1442_v15 = vsel %vm1405_vm10, %v4699_v14, 0.0 }
 0x3ce   : > { %3686 = vpow2.f32 %v1432_v59  ;;  %1443 = vadd.xlane.f32.xlu0 %v1442_v15 }
 0x3cf   : > { %3688 = vpow2.f32 %v1434_v18 }
 0x3d0   : > { %v1601_v19 = vpop.f32.mrf.mxu2 }
 0x3d1   : > { %v1645_v21 = vmul.f32 0.35355338, %v1601_v19 }
 0x3d3   : > { %v4712_v17 = vsel %vm1297_vm9, %v1645_v21, -1e+09 }
 0x3d4   : > { %v4708_v22 = vpop.eup %3686  ;;  %v1661_v60 = vsel %vm1405_vm10, %v4712_v17, -inf }
 0x3d5   : > { %v1445_v25 = vsel %vm1405_vm10, %v4708_v22, 0.0  ;;  %1662 = vmax.xlane.f32.xlu1 %v1661_v60  ;;  %v4720_v29 = vpop.eup %3688 }
 0x3d6   : > { %1659 = vmax.xlane.f32.xlu0 %v1658_v20  ;;  %1446 = vadd.xlane.f32.xlu2 %v1445_v25  ;;  %v1448_v33 = vsel %vm1405_vm10, %v4720_v29, 0.0 }
 0x3d8   : > { %v1603_v26 = vpop.f32.mrf.mxu2  ;;  %v1634_v27 = vpop.f32.mrf.mxu3 }
 0x3d9   : > { %v1646_v30 = vmul.f32 0.35355338, %v1634_v27 }
 0x3db   : > { %v4724_v31 = vsel %vm1297_vm9, %v1646_v30, -1e+09 }
 0x3dc   : > { %v1664_v34 = vsel %vm1405_vm10, %v4724_v31, -inf }
 0x3dd   : > { %v1417_v61 = vpop.xlane.xlu0 %1416  ;;  %1665 = vmax.xlane.f32.xlu1 %v1664_v34 }
 0x3de   : > { %1449 = vadd.xlane.f32.xlu0 %v1448_v33  ;;  %v1427_v35 = vsub.f32 %v4660_v45, %v1417_v61 }
 0x3e0   : > { %v1436_v58 = vmul.f32 1.442695, %v1427_v35  ;;  %v1636_v28 = vpop.f32.mrf.mxu3 }
 0x3e1   : > { %v1836_v37 = vpop.f32.mrf.mxu2  ;;  %v1647_v38 = vmul.f32 0.35355338, %v1636_v28 }
 0x3e2   : > { %v1883_v40 = vmul.f32 0.35355338, %v1836_v37  ;;  %3690 = vpow2.f32 %v1436_v58 }
 0x3e3   : > { %v4733_v42 = vsel %vm1297_vm9, %v1647_v38, -1e+09 }
 0x3e4   : > { %v4737_v43 = vsel %vm1297_vm9, %v1883_v40, -1e+09  ;;  %v1667_v44 = vsel %vm1405_vm10, %v4733_v42, -inf }
 0x3e5   : > { %v1895_v45 = vsel %vm1405_vm10, %v4737_v43, -inf  ;;  %v1420_v47 = vpop.xlane.xlu2 %1419 }
 0x3e6   : > { %1668 = vmax.xlane.f32.xlu0 %v1667_v44  ;;  %1896 = vmax.xlane.f32.xlu2 %v1895_v45  ;;  %v1428_v48 = vsub.f32 %v4667_v41, %v1420_v47 }
 0x3e8   : > { %v4744_v50 = vpop.eup %3690  ;;  %v1438_v51 = vmul.f32 1.442695, %v1428_v48  ;;  %v1639_v52 = vpop.f32.mrf.mxu3 }
 0x3e9   : > { %v1838_v53 = vpop.f32.mrf.mxu2  ;;  %v1648_v54 = vmul.f32 0.35355338, %v1639_v52  ;;  %v1451_v55 = vsel %vm1405_vm10, %v4744_v50, 0.0 }
 0x3ea   : > { %3692 = vpow2.f32 %v1438_v51  ;;  %v1884_v56 = vmul.f32 0.35355338, %v1838_v53  ;;  %1452 = vadd.xlane.f32.xlu1 %v1451_v55 }
 0x3eb   : > { %v4750_v2 = vsel %vm1297_vm9, %v1648_v54, -1e+09 }
 0x3ec   : > { %v1670_v3 = vsel %vm1405_vm10, %v4750_v2, -inf  ;;  %v4757_v5 = vsel %vm1297_vm9, %v1884_v56, -1e+09 }
 0x3ed   : > { %v1423_v41 = vpop.xlane.xlu2 %1422  ;;  %v1898_v12 = vsel %vm1405_vm10, %v4757_v5, -inf }
 0x3ee   : > { %1671 = vmax.xlane.f32.xlu2 %v1670_v3  ;;  %v1429_v4 = vsub.f32 %v4674_v49, %v1423_v41 }
 0x3f0   : > { %v4759_v6 = vpop.eup %3692  ;;  %v1440_v8 = vmul.f32 1.442695, %v1429_v4  ;;  %v1641_v9 = vpop.f32.mrf.mxu3 }
 0x3f1   : > { %v1841_v10 = vpop.f32.mrf.mxu2  ;;  %v1454_v7 = vsel %vm1405_vm10, %v4759_v6, 0.0 }
 0x3f2   : > { %v1885_v11 = vmul.f32 0.35355338, %v1841_v10  ;;  %3694 = vpow2.f32 %v1440_v8  ;;  %1899 = vmax.xlane.f32.xlu1 %v1898_v12  ;;  %1455 = vadd.xlane.f32.xlu0 %v1454_v7 }
 0x3f4   : > { %v4767_v49 = vsel %vm1297_vm9, %v1885_v11, -1e+09 }
 0x3f5   : > { %v1901_v59 = vsel %vm1405_vm10, %v4767_v49, -inf }
 0x3f6   : > { %1902 = vmax.xlane.f32.xlu2 %v1901_v59 }
 0x3f8   : > { %v4771_v15 = vpop.eup %3694  ;;  %v1874_v18 = vpop.f32.mrf.mxu3 }
 0x3f9   : > { %v1843_v16 = vpop.f32.mrf.mxu2  ;;  %v1886_v19 = vmul.f32 0.35355338, %v1874_v18  ;;  %v1457_v21 = vsel %vm1405_vm10, %v4771_v15, 0.0 }
 0x3fa   : > { %1458 = vadd.xlane.f32.xlu0 %v1457_v21 }
 0x3fb   : > { %v4777_v20 = vsel %vm1297_vm9, %v1886_v19, -1e+09 }
 0x3fc   : > { %v1904_v25 = vsel %vm1405_vm10, %v4777_v20, -inf }
 0x3fe   : > { %1905 = vmax.xlane.f32.xlu2 %v1904_v25 }
 0x400   : > { %v1876_v60 = vpop.f32.mrf.mxu3 }
 0x401   : > { %v2076_v26 = vpop.f32.mrf.mxu2  ;;  %v1887_v27 = vmul.f32 0.35355338, %v1876_v60 }
 0x402   : > { %v2123_v34 = vmul.f32 0.35355338, %v2076_v26 }
 0x403   : > { %v4783_v30 = vsel %vm1297_vm9, %v1887_v27, -1e+09 }
 0x404   : > { %v1907_v33 = vsel %vm1405_vm10, %v4783_v30, -inf  ;;  %v4789_v28 = vsel %vm1297_vm9, %v2123_v34, -1e+09 }
 0x405   : > { %1908 = vmax.xlane.f32.xlu1 %v1907_v33  ;;  %v2135_v38 = vsel %vm1405_vm10, %v4789_v28, -inf }
 0x408   : > { %v1879_v61 = vpop.f32.mrf.mxu3 }
 0x409   : > { %v2078_v35 = vpop.f32.mrf.mxu2  ;;  %v1888_v44 = vmul.f32 0.35355338, %v1879_v61 }
 0x40a   : > { %v2124_v58 = vmul.f32 0.35355338, %v2078_v35 }
 0x40b   : > { %v4801_v48 = vsel %vm1297_vm9, %v1888_v44, -1e+09 }
 0x40c   : > { %v4793_v37 = vsel %vm1297_vm9, %v2124_v58, -1e+09  ;;  %v1910_v51 = vsel %vm1405_vm10, %v4801_v48, -inf }
 0x40d   : > { %v2138_v40 = vsel %vm1405_vm10, %v4793_v37, -inf  ;;  %2136 = vmax.xlane.f32.xlu1 %v2135_v38 }
 0x40e   : > { %2139 = vmax.xlane.f32.xlu0 %v2138_v40 }
 0x410   : > { %v1881_v45 = vpop.f32.mrf.mxu3 }
 0x411   : > { %v2081_v47 = vpop.f32.mrf.mxu2 }
 0x412   : > { %v2125_v52 = vmul.f32 0.35355338, %v2081_v47 }
 0x414   : > { %v4807_v55 = vsel %vm1297_vm9, %v2125_v52, -1e+09 }
 0x415   : > { %v2141_v56 = vsel %vm1405_vm10, %v4807_v55, -inf }
 0x416   : > { %1911 = vmax.xlane.f32.xlu0 %v1910_v51 }
 0x418   : > { %v2114_v54 = vpop.f32.mrf.mxu3 }
 0x419   : > { %v2083_v53 = vpop.f32.mrf.mxu2  ;;  %v2126_v3 = vmul.f32 0.35355338, %v2114_v54 }
 0x41b   : > { %v4813_v4 = vsel %vm1297_vm9, %v2126_v3, -1e+09 }
 0x41c   : > { %v2144_v8 = vsel %vm1405_vm10, %v4813_v4, -inf }
 0x41e   : > { %2142 = vmax.xlane.f32.xlu0 %v2141_v56 }
 0x420   : > { %v2116_v41 = vpop.f32.mrf.mxu3 }
 0x421   : > { %v2127_v9 = vmul.f32 0.35355338, %v2116_v41 }
 0x423   : > { %v4819_v11 = vsel %vm1297_vm9, %v2127_v9, -1e+09 }
 0x424   : > { %v2147_v12 = vsel %vm1405_vm10, %v4819_v11, -inf }
 0x426   : > { %2145 = vmax.xlane.f32.xlu0 %v2144_v8 }
 0x428   : > { %v2119_v10 = vpop.f32.mrf.mxu3 }
 0x429   : > { %v2128_v7 = vmul.f32 0.35355338, %v2119_v10 }
 0x42b   : > { %v4825_v16 = vsel %vm1297_vm9, %v2128_v7, -1e+09 }
 0x42c   : > { %v2150_v18 = vsel %vm1405_vm10, %v4825_v16, -inf }
 0x42e   : > { %2148 = vmax.xlane.f32.xlu0 %v2147_v12 }
 0x430   : > { %v2121_v59 = vpop.f32.mrf.mxu3 }
 0x436   : > { %2151 = vmax.xlane.f32.xlu0 %v2150_v18 }
 0x438   : > { %v1657_v19 = vpop.xlane.xlu1 %1656 }
 0x439   : > { %v1673_v21 = vsub.f32 %v4694_v62, %v1657_v19 }
 0x43b   : > { %v1679_v25 = vmul.f32 1.442695, %v1673_v21 }
 0x43d   : > { %3696 = vpow2.f32 %v1679_v25 }
 0x441   : > { %v1444_v60 = vpop.xlane.xlu0 %1443 }
 0x442   : > { %3698 = vrcp.f32 %v1444_v60 }
 0x443   : > { %v4830_v26 = vpop.eup %3696 }
 0x444   : > { %v1691_v27 = vsel %vm1405_vm10, %v4830_v26, 0.0 }
 0x445   : > { %1692 = vadd.xlane.f32.xlu1 %v1691_v27 }
 0x448   : > { %v3699_v34 = vpop.eup %3698  ;;  %v1663_v35 = vpop.xlane.xlu1 %1662 }
 0x449   : > { %v1660_v46 = vpop.xlane.xlu0 %1659  ;;  %v1447_v33 = vpop.xlane.xlu2 %1446  ;;  %v1675_v62 = vsub.f32 %v4712_v17, %v1663_v35  ;;  %v1466_v38 = vmul.f32 %v3699_v34, %v4699_v14 }
 0x44a   : > { %v1674_v61 = vsub.f32 %v4706_v13, %v1660_v46  ;;  %3700 = vrcp.f32 %v1447_v33 }
 0x44b   : > { %v1683_v44 = vmul.f32 1.442695, %v1675_v62  ;;  %v1472_v45 = vpack.c.bf16 %v1466_v38, %v1466_v38 }
 0x44c   : > { %v1681_v58 = vmul.f32 1.442695, %v1674_v61 }
 0x44d   : > { %v1481_v56 = vunpack.c.l.b16 %v1472_v45 }
 0x44e   : > { %3702 = vpow2.f32 %v1681_v58 }
 0x450   : > { %v3701_v40 = vpop.eup %3700  ;;  %v1666_v52 = vpop.xlane.xlu1 %1665 }
 0x451   : > { %v1467_v47 = vmul.f32 %v3701_v40, %v4708_v22  ;;  %v1450_v51 = vpop.xlane.xlu0 %1449  ;;  %v1676_v54 = vsub.f32 %v4724_v31, %v1666_v52  ;;  %v1987_v22 = vsel %vm1501_vm8, %v4685_v57, 0 }
 0x452   : > { %3704 = vrcp.f32 %v1450_v51 }
 0x453   : > { %v1473_v53 = vpack.c.bf16 %v1467_v47, %v1467_v47  ;;  %3706 = vpow2.f32 %v1683_v44  ;;  %v1685_v17 = vmul.f32 1.442695, %v1676_v54 }
 0x454   : > { %v4839_v13 = vpop.eup %3702 }
 0x455   : > { %v1482_v3 = vunpack.c.l.b16 %v1473_v53  ;;  %v1694_v14 = vsel %vm1405_vm10, %v4839_v13, 0.0  ;;  %3708 = vpow2.f32 %v1685_v17 }
 0x456   : > { %1695 = vadd.xlane.f32.xlu0 %v1694_v14 }
 0x457   : > { %v1484_v41 = vpack.c.b16 %v1482_v3, %v1481_v56 }
 0x458   : > { %v3705_v8 = vpop.eup %3704 }
 0x459   : > { %3372 = vmatmul.msk.bf16.vlgmr.msra.gmra.mxu0 %vm1405_vm10, %v1484_v41  ;;  %v1669_v9 = vpop.xlane.xlu0 %1668  ;;  %v1897_v31 = vpop.xlane.xlu2 %1896  ;;  %v1468_v7 = vmul.f32 %v3705_v8, %v4720_v29 }
 0x45a   : > { %v4846_v10 = vpop.eup %3706  ;;  %1995 = vmatpush.bf16.msra.mxu0 %v1987_v22  ;;  %v1677_v12 = vsub.f32 %v4733_v42, %v1669_v9  ;;  %v1913_v18 = vsub.f32 %v4737_v43, %v1897_v31 }
 0x45b   : > { %v4851_v19 = vpop.eup %3708  ;;  %v1697_v21 = vsel %vm1405_vm10, %v4846_v10, 0.0  ;;  %v1474_v42 = vpack.c.bf16 %v1468_v7, %v1468_v7 }
 0x45c   : > { %v1687_v59 = vmul.f32 1.442695, %v1677_v12  ;;  %v1700_v25 = vsel %vm1405_vm10, %v4851_v19, 0.0  ;;  %v1919_v60 = vmul.f32 1.442695, %v1913_v18 }
 0x45d   : > { %v1453_v57 = vpop.xlane.xlu1 %1452  ;;  %1701 = vadd.xlane.f32.xlu2 %v1700_v25  ;;  %v1483_v27 = vunpack.c.l.b16 %v1474_v42 }
 0x45e   : > { %3710 = vpow2.f32 %v1687_v59  ;;  %1996 = vmatpush.bf16.msra.mxu0 %v4689_v1  ;;  %1698 = vadd.xlane.f32.xlu0 %v1697_v21 }
 0x45f   : > { %3712 = vrcp.f32 %v1453_v57  ;;  %v1485_v58 = vpack.c.b16 %v1483_v27, %v1483_v27 }
 0x460   : > { %3714 = vpow2.f32 %v1919_v60 }
 0x461   : > { %v1672_v29 = vpop.xlane.xlu2 %1671 }
 0x462   : > { %v1678_v46 = vsub.f32 %v4750_v2, %v1672_v29 }
 0x464   : > { %v4858_v43 = vpop.eup %3710  ;;  %v1689_v62 = vmul.f32 1.442695, %v1678_v46 }
 0x465   : > { %v1703_v33 = vsel %vm1405_vm10, %v4858_v43, 0.0  ;;  %v1900_v1 = vpop.xlane.xlu1 %1899  ;;  %v1456_v34 = vpop.xlane.xlu0 %1455 }
 0x466   : > { %1704 = vadd.xlane.f32.xlu0 %v1703_v33  ;;  %v3713_v61 = vpop.eup %3712  ;;  %v1914_v35 = vsub.f32 %v4757_v5, %v1900_v1  ;;  %3716 = vrcp.f32 %v1456_v34 }
 0x467   : > { %v4865_v40 = vpop.eup %3714  ;;  %v1469_v44 = vmul.f32 %v3713_v61, %v4744_v50 }
 0x468   : > { %v1921_v38 = vmul.f32 1.442695, %v1914_v35  ;;  %v1931_v45 = vsel %vm1405_vm10, %v4865_v40, 0.0 }
 0x469   : > { %3373 = vmatmul.msk.bf16.gmra.mxu0 %vm1405_vm10, %v1485_v58  ;;  %v1475_v47 = vpack.c.bf16 %v1469_v44, %v1469_v44 }
 0x46a   : > { %3718 = vpow2.f32 %v1921_v38 }
 0x46b   : > { %3720 = vpow2.f32 %v1689_v62  ;;  %v1526_v56 = vunpack.c.l.b16 %v1475_v47 }
 0x46c   : > { %v3717_v2 = vpop.eup %3716 }
 0x46d   : > { %v1470_v51 = vmul.f32 %v3717_v2, %v4759_v6  ;;  %v1459_v5 = vpop.xlane.xlu0 %1458  ;;  %v2027_v6 = vsel %vm1501_vm8, %v4687_v0, 0 }
 0x46e   : > { %1932 = vadd.xlane.f32.xlu0 %v1931_v45  ;;  %3722 = vrcp.f32 %v1459_v5 }
 0x46f   : > { %v1476_v52 = vpack.c.bf16 %v1470_v51, %v1470_v51 }
 0x470   : > { %v4871_v53 = vpop.eup %3718 }
 0x471   : > { %v4873_v54 = vpop.eup %3720  ;;  %v1527_v3 = vunpack.c.l.b16 %v1476_v52  ;;  %v1934_v50 = vsel %vm1405_vm10, %v4871_v53, 0.0 }
 0x472   : > { %1935 = vadd.xlane.f32.xlu1 %v1934_v50  ;;  %v1706_v41 = vsel %vm1405_vm10, %v4873_v54, 0.0 }
 0x473   : > { %v1529_v17 = vpack.c.b16 %v1527_v3, %v1526_v56 }
 0x474   : > { %v3723_v14 = vpop.eup %3722 }
 0x475   : > { %3374 = vmatmul.msk.bf16.vlgmr.msra.gmra.mxu1 %vm1405_vm10, %v1529_v17  ;;  %2217 = vrot.lane.b32.xlu2 %v4548_v24, %s4099_s10  ;;  %v1471_v8 = vmul.f32 %v3723_v14, %v4771_v15  ;;  %v1903_v24 = vpop.xlane.xlu2 %1902 }
 0x476   : > { %1707 = vadd.xlane.f32.xlu0 %v1706_v41  ;;  %2035 = vmatpush.bf16.msra.mxu1 %v2027_v6 }
 0x477   : > { %v1477_v9 = vpack.c.bf16 %v1471_v8, %v1471_v8 }
 0x478   : > { %v1909_v22 = vpop.xlane.xlu1 %1908 }
 0x479   : > { %v1528_v31 = vunpack.c.l.b16 %v1477_v9 }
 0x47b   : > { %v1530_v0 = vpack.c.b16 %v1528_v31, %v1528_v31 }
 0x47d   : > { %v1906_v62 = vpop.xlane.xlu2 %1905 }
 0x47e   : > { %v1916_v44 = vsub.f32 %v4777_v20, %v1906_v62 }
 0x480   : > { %v2137_v12 = vpop.xlane.xlu1 %2136  ;;  %v1925_v45 = vmul.f32 1.442695, %v1916_v44 }
 0x481   : > { %v2140_v7 = vpop.xlane.xlu0 %2139  ;;  %v2153_v59 = vsub.f32 %v4789_v28, %v2137_v12 }
 0x482   : > { %v2154_v21 = vsub.f32 %v4793_v37, %v2140_v7  ;;  %v1915_v37 = vsub.f32 %v4767_v49, %v1903_v24 }
 0x483   : > { %v2159_v18 = vmul.f32 1.442695, %v2153_v59 }
 0x484   : > { %v2161_v57 = vmul.f32 1.442695, %v2154_v21  ;;  %v1923_v27 = vmul.f32 1.442695, %v1915_v37 }
 0x485   : > { %3724 = vpow2.f32 %v2159_v18  ;;  %3375 = vmatmul.msk.bf16.gmra.mxu1 %vm1405_vm10, %v1530_v0 }
 0x486   : > { %3726 = vpow2.f32 %v2161_v57 }
 0x489   : > { %v1912_v25 = vpop.xlane.xlu0 %1911 }
 0x48a   : > { %v1918_v15 = vsub.f32 %v4801_v48, %v1912_v25  ;;  %v1917_v48 = vsub.f32 %v4783_v30, %v1909_v22 }
 0x48b   : > { %v4888_v42 = vpop.eup %3724  ;;  %2015 = vrot.lane.b32.xlu1 %v4555_v32, %s4098_s23 }
 0x48c   : > { %v2171_v28 = vsel %vm1405_vm10, %v4888_v42, 0.0  ;;  %v1929_v60 = vmul.f32 1.442695, %v1918_v15  ;;  %v4896_v29 = vpop.eup %3726  ;;  %v1927_v1 = vmul.f32 1.442695, %v1917_v48 }
 0x48d   : > { %2172 = vadd.xlane.f32.xlu0 %v2171_v28  ;;  %v2174_v46 = vsel %vm1405_vm10, %v4896_v29, 0.0 }
 0x48e   : > { %3728 = vpow2.f32 %v1929_v60 }
 0x48f   : > { %3730 = vpow2.f32 %v1923_v27 }
 0x490   : > { %3732 = vpow2.f32 %v1927_v1 }
 0x491   : > { %v2143_v34 = vpop.xlane.xlu0 %2142 }
 0x492   : > { %v2155_v35 = vsub.f32 %v4807_v55, %v2143_v34 }
 0x494   : > { %v4901_v33 = vpop.eup %3728  ;;  %v2163_v30 = vmul.f32 1.442695, %v2155_v35 }
 0x495   : > { %2175 = vadd.xlane.f32.xlu0 %v2174_v46  ;;  %v4903_v61 = vpop.eup %3730  ;;  %v1946_v49 = vsel %vm1405_vm10, %v4901_v33, 0.0 }
 0x496   : > { %v1937_v58 = vsel %vm1405_vm10, %v4903_v61, 0.0  ;;  %v4910_v38 = vpop.eup %3732  ;;  %3734 = vpow2.f32 %v2163_v30 }
 0x497   : > { %v1943_v2 = vsel %vm1405_vm10, %v4910_v38, 0.0  ;;  %3736 = vpow2.f32 %v1925_v45 }
 0x499   : > { %v2146_v47 = vpop.xlane.xlu0 %2145 }
 0x49a   : > { %v2156_v55 = vsub.f32 %v4813_v4, %v2146_v47 }
 0x49c   : > { %v4915_v51 = vpop.eup %3734  ;;  %v2165_v52 = vmul.f32 1.442695, %v2156_v55 }
 0x49d   : > { %1947 = vadd.xlane.f32.xlu0 %v1946_v49  ;;  %v2177_v5 = vsel %vm1405_vm10, %v4915_v51, 0.0  ;;  %v4920_v56 = vpop.eup %3736 }
 0x49e   : > { %1938 = vadd.xlane.f32.xlu2 %v1937_v58  ;;  %3738 = vpow2.f32 %v2165_v52  ;;  %v1940_v20 = vsel %vm1405_vm10, %v4920_v56, 0.0 }
 0x4a1   : > { %v2149_v3 = vpop.xlane.xlu0 %2148 }
 0x4a4   : > { %v4926_v50 = vpop.eup %3738 }
 0x4a5   : > { %v2180_v4 = vsel %vm1405_vm10, %v4926_v50, 0.0 }
 0x4a6   : > { %1944 = vadd.xlane.f32.xlu2 %v1943_v2 }
 0x4a9   : > { %v2152_v17 = vpop.xlane.xlu0 %2151 }
 0x4aa   : > { %v2158_v31 = vsub.f32 %v4825_v16, %v2152_v17 }
 0x4ae   : > { %2178 = vadd.xlane.f32.xlu2 %v2177_v5 }
 0x4b1   : > { %2215 = vrot.lane.b32.xlu0 %v4560_v36, %s4099_s10  ;;  %v2157_v36 = vsub.f32 %v4819_v11, %v2149_v3 }
 0x4b3   : > { %v2167_v8 = vmul.f32 1.442695, %v2157_v36 }
 0x4b5   : > { %1941 = vadd.xlane.f32.xlu1 %v1940_v20 }
 0x4b8   : > { %v1693_v14 = vpop.xlane.xlu1 %1692 }
 0x4b9   : > { %3740 = vrcp.f32 %v1693_v14 }
 0x4bd   : > { %2181 = vadd.xlane.f32.xlu1 %v2180_v4 }
 0x4bf   : > { %v3741_v6 = vpop.eup %3740 }
 0x4c0   : > { %v1715_v22 = vmul.f32 %v3741_v6, %v4830_v26 }
 0x4c2   : > { %v1721_v12 = vpack.c.bf16 %v1715_v22, %v1715_v22 }
 0x4c4   : > { %v1730_v11 = vunpack.c.l.b16 %v1721_v12 }
 0x4c6   : > { %2257 = vrot.lane.b32.xlu2 %v4546_v23, %s4099_s10  ;;  %v2169_v23 = vmul.f32 1.442695, %v2158_v31 }
 0x4c9   : > { %v1696_v41 = vpop.xlane.xlu0 %1695 }
 0x4ca   : > { %3742 = vrcp.f32 %v1696_v41 }
 0x4cb   : > { %3744 = vpow2.f32 %v2167_v8 }
 0x4d0   : > { %v3743_v9 = vpop.eup %3742  ;;  %v1702_v18 = vpop.xlane.xlu2 %1701 }
 0x4d1   : > { %v1716_v7 = vmul.f32 %v3743_v9, %v4839_v13  ;;  %v1699_v59 = vpop.xlane.xlu0 %1698  ;;  %v4938_v25 = vpop.eup %3744 }
 0x4d2   : > { %3746 = vrcp.f32 %v1699_v59  ;;  %v2183_v37 = vsel %vm1405_vm10, %v4938_v25, 0.0 }
 0x4d3   : > { %v1722_v21 = vpack.c.bf16 %v1716_v7, %v1716_v7  ;;  %3748 = vrcp.f32 %v1702_v18 }
 0x4d4   : > { %3750 = vpow2.f32 %v2169_v23 }
 0x4d5   : > { %v1731_v0 = vunpack.c.l.b16 %v1722_v21 }
 0x4d6   : > { %v4936_v57 = vpop.f32.mrf.mxu0  ;;  %2255 = vrot.lane.b32.xlu1 %v4555_v32, %s4099_s10 }
 0x4d7   : > { %v1733_v26 = vpack.c.b16 %v1731_v0, %v1730_v11 }
 0x4d8   : > { %v3747_v16 = vpop.eup %3746  ;;  %v2218_v15 = vpop.permute.xlu2 %2217 }
 0x4d9   : > { %3380 = vmatmul.msk.bf16.vlgmr.msrb.gmra.mxu0 %vm1405_vm10, %v1733_v26  ;;  %v1705_v13 = vpop.xlane.xlu0 %1704  ;;  %v3749_v24 = vpop.eup %3748  ;;  %v2227_v28 = vsel %vm1501_vm8, %v2218_v15, 0  ;;  %v1717_v60 = vmul.f32 %v3747_v16, %v4846_v10 }
 0x4da   : > { %3752 = vrcp.f32 %v1705_v13  ;;  %2235 = vmatpush.bf16.msrb.mxu0 %v2227_v28  ;;  %v1718_v27 = vmul.f32 %v3749_v24, %v4851_v19  ;;  %v4950_v46 = vpop.eup %3750 }
 0x4db   : > { %2184 = vadd.xlane.f32.xlu0 %v2183_v37  ;;  %v1723_v48 = vpack.c.bf16 %v1717_v60, %v1717_v60  ;;  %v2186_v62 = vsel %vm1405_vm10, %v4950_v46, 0.0 }
 0x4dc   : > { %v1724_v34 = vpack.c.bf16 %v1718_v27, %v1718_v27 }
 0x4dd   : > { %v1732_v30 = vunpack.c.l.b16 %v1723_v48 }
 0x4de   : > { %v4948_v32 = vpop.f32.mrf.mxu0  ;;  %v1770_v10 = vunpack.c.l.b16 %v1724_v34 }
 0x4df   : > { %v1734_v47 = vpack.c.b16 %v1732_v30, %v1732_v30 }
 0x4e0   : > { %v3753_v1 = vpop.eup %3752 }
 0x4e1   : > { %v1719_v49 = vmul.f32 %v3753_v1, %v4858_v43  ;;  %v1933_v35 = vpop.xlane.xlu0 %1932 }
 0x4e2   : > { %3754 = vrcp.f32 %v1933_v35 }
 0x4e3   : > { %v1725_v58 = vpack.c.bf16 %v1719_v49, %v1719_v49  ;;  %2187 = vadd.xlane.f32.xlu0 %v2186_v62 }
 0x4e5   : > { %v1771_v44 = vunpack.c.l.b16 %v1725_v58  ;;  %v1936_v2 = vpop.xlane.xlu1 %1935 }
 0x4e6   : > { %v4955_v19 = vpop.f32.mrf.mxu0  ;;  %3756 = vrcp.f32 %v1936_v2 }
 0x4e7   : > { %v1773_v45 = vpack.c.b16 %v1771_v44, %v1770_v10 }
 0x4e8   : > { %v3755_v43 = vpop.eup %3754 }
 0x4e9   : > { %3381 = vmatmul.msk.bf16.gmra.mxu0 %vm1405_vm10, %v1734_v47  ;;  %v1708_v55 = vpop.xlane.xlu0 %1707  ;;  %3382 = vmatmul.msk.bf16.vlgmr.msrb.gmra.mxu1 %vm1405_vm10, %v1773_v45  ;;  %v1955_v52 = vmul.f32 %v3755_v43, %v4865_v40 }
 0x4ea   : > { %3758 = vrcp.f32 %v1708_v55 }
 0x4eb   : > { %v1961_v14 = vpack.c.bf16 %v1955_v52, %v1955_v52 }
 0x4ec   : > { %v3757_v5 = vpop.eup %3756 }
 0x4ed   : > { %v1956_v20 = vmul.f32 %v3757_v5, %v4871_v53  ;;  %v1970_v22 = vunpack.c.l.b16 %v1961_v14 }
 0x4ee   : > { %v1521_v3 = vpop.f32.mrf.mxu0 }
 0x4ef   : > { %v1962_v17 = vpack.c.bf16 %v1956_v20, %v1956_v20 }
 0x4f0   : > { %v3759_v4 = vpop.eup %3758 }
 0x4f1   : > { %v1720_v36 = vmul.f32 %v3759_v4, %v4873_v54  ;;  %v1971_v41 = vunpack.c.l.b16 %v1962_v17 }
 0x4f2   : > { %v4962_v6 = vpop.f32.mrf.mxu1 }
 0x4f3   : > { %v1726_v8 = vpack.c.bf16 %v1720_v36, %v1720_v36  ;;  %v1973_v31 = vpack.c.b16 %v1971_v41, %v1970_v22 }
 0x4f5   : > { %v1772_v9 = vunpack.c.l.b16 %v1726_v8 }
 0x4f7   : > { %v1774_v12 = vpack.c.b16 %v1772_v9, %v1772_v9 }
 0x4f9   : > { %3388 = vmatmul.msk.bf16.vlgmr.msra.gmra.mxu0 %vm1405_vm10, %v1973_v31  ;;  %3383 = vmatmul.msk.bf16.gmra.mxu1 %vm1405_vm10, %v1774_v12 }
 0x4fa   : > { %v4966_v40 = vpop.f32.mrf.mxu1 }
 0x4fd   : > { %v2016_v53 = vpop.permute.xlu1 %2015 }
 0x4fe   : > { %2036 = vmatpush.bf16.msra.mxu1 %v2016_v53 }
 0x500   : > { %v2173_v59 = vpop.xlane.xlu0 %2172 }
 0x502   : > { %v4968_v7 = vpop.f32.mrf.mxu1 }
 0x508   : > { %v2176_v18 = vpop.xlane.xlu0 %2175 }
 0x50a   : > { %v1565_v54 = vpop.f32.mrf.mxu1 }
 0x510   : > { %v1948_v26 = vpop.xlane.xlu0 %1947 }
 0x511   : > { %v1939_v21 = vpop.xlane.xlu2 %1938 }
 0x512   : > { %3760 = vrcp.f32 %v1939_v21 }
 0x513   : > { %3762 = vrcp.f32 %v2176_v18 }
 0x514   : > { %3764 = vrcp.f32 %v2173_v59 }
 0x518   : > { %v3761_v23 = vpop.eup %3760 }
 0x519   : > { %v1945_v11 = vpop.xlane.xlu2 %1944  ;;  %v1957_v0 = vmul.f32 %v3761_v23, %v4903_v61  ;;  %v3763_v15 = vpop.eup %3762 }
 0x51a   : > { %v3765_v37 = vpop.eup %3764  ;;  %3766 = vrcp.f32 %v1945_v11  ;;  %v2196_v27 = vmul.f32 %v3763_v15, %v4896_v29 }
 0x51b   : > { %v1963_v16 = vpack.c.bf16 %v1957_v0, %v1957_v0  ;;  %v2195_v48 = vmul.f32 %v3765_v37, %v4888_v42 }
 0x51c   : > { %v2202_v1 = vpack.c.bf16 %v2196_v27, %v2196_v27 }
 0x51d   : > { %v1972_v13 = vunpack.c.l.b16 %v1963_v16  ;;  %v2201_v49 = vpack.c.bf16 %v2195_v48, %v2195_v48 }
 0x51e   : > { %v2211_v62 = vunpack.c.l.b16 %v2202_v1 }
 0x51f   : > { %v1974_v24 = vpack.c.b16 %v1972_v13, %v1972_v13  ;;  %v2210_v10 = vunpack.c.l.b16 %v2201_v49 }
 0x520   : > { %v3767_v34 = vpop.eup %3766 }
 0x521   : > { %3389 = vmatmul.msk.bf16.gmra.mxu0 %vm1405_vm10, %v1974_v24  ;;  %v2179_v28 = vpop.xlane.xlu2 %2178  ;;  %v1959_v30 = vmul.f32 %v3767_v34, %v4910_v38  ;;  %v2213_v2 = vpack.c.b16 %v2211_v62, %v2210_v10 }
 0x523   : > { %v2216_v60 = vpop.permute.xlu0 %2215  ;;  %v1965_v29 = vpack.c.bf16 %v1959_v30, %v1959_v30 }
 0x524   : > { %2236 = vmatpush.bf16.msrb.mxu0 %v2216_v60 }
 0x525   : > { %v2011_v55 = vunpack.c.l.b16 %v1965_v29 }
 0x528   : > { %v1942_v61 = vpop.xlane.xlu1 %1941 }
 0x529   : > { %3768 = vrcp.f32 %v1942_v61  ;;  %v2258_v35 = vpop.permute.xlu2 %2257 }
 0x52a   : > { %3770 = vrcp.f32 %v2179_v28  ;;  %v2267_v58 = vsel %vm1501_vm8, %v2258_v35, 0 }
 0x52b   : > { %2275 = vmatpush.bf16.msrb.mxu1 %v2267_v58  ;;  %3772 = vrcp.f32 %v1948_v26 }
 0x52f   : > { %v3769_v44 = vpop.eup %3768 }
 0x530   : > { %v1958_v45 = vmul.f32 %v3769_v44, %v4920_v56  ;;  %v3771_v42 = vpop.eup %3770  ;;  %v2182_v14 = vpop.xlane.xlu1 %2181 }
 0x531   : > { %3396 = vmatmul.msk.bf16.vlgmr.msrb.gmra.mxu0 %vm1405_vm10, %v2213_v2  ;;  %v2197_v5 = vmul.f32 %v3771_v42, %v4915_v51  ;;  %v3773_v20 = vpop.eup %3772  ;;  %3774 = vrcp.f32 %v2182_v14 }
 0x532   : > { %v1964_v47 = vpack.c.bf16 %v1958_v45, %v1958_v45  ;;  %v1960_v3 = vmul.f32 %v3773_v20, %v4901_v33 }
 0x533   : > { %v2203_v38 = vpack.c.bf16 %v2197_v5, %v2197_v5 }
 0x534   : > { %v2010_v43 = vunpack.c.l.b16 %v1964_v47  ;;  %v1966_v17 = vpack.c.bf16 %v1960_v3, %v1960_v3 }
 0x535   : > { %v2212_v4 = vunpack.c.l.b16 %v2203_v38 }
 0x536   : > { %v2013_v52 = vpack.c.b16 %v2011_v55, %v2010_v43  ;;  %v2012_v36 = vunpack.c.l.b16 %v1966_v17  ;;  %v3487_v43 = vld [vmem:[%s4374_s26 + $0x8] sm:$0xff]  ;;  %v3486_v17 = vld [vmem:[%s4374_s26] sm:$0xff]  ;;  %s5257_s26 = scalar_lea.vmem [#allocation8], %s4335_s12  ;;  %s5259_s12 = smov (!%p3454_p3), %s5258_s30 }
 0x537   : > { %v2214_v56 = vpack.c.b16 %v2212_v4, %v2212_v4  ;;  %v3775_v22 = vpop.eup %3774  ;;  %2412 = vmatpush.bf16.msra.mxu2 %v3487_v43 }
 0x538   : > { %3390 = vmatmul.msk.bf16.vlgmr.msra.gmra.mxu1 %vm1405_vm10, %v2013_v52  ;;  %v2014_v41 = vpack.c.b16 %v2012_v36, %v2012_v36  ;;  %v2198_v9 = vmul.f32 %v3775_v22, %v4926_v50 }
 0x53a   : > { %v2204_v12 = vpack.c.bf16 %v2198_v9, %v2198_v9 }
 0x53b   : > { %2413 = vmatpush.bf16.msra.mxu2 %v3486_v17  ;;  %v3807_v17 = vld [vmem:[#allocation2 + $0x18] sm:$0xff] }
 0x53c   : > { %v2250_v18 = vunpack.c.l.b16 %v2204_v12 }
 0x541   : > { %3397 = vmatmul.msk.bf16.gmra.mxu0 %vm1405_vm10, %v2214_v56 }
 0x548   : > { %v2256_v8 = vpop.permute.xlu1 %2255  ;;  %3391 = vmatmul.msk.bf16.gmra.mxu1 %vm1405_vm10, %v2014_v41 }
 0x549   : > { %2276 = vmatpush.bf16.msrb.mxu1 %v2256_v8 }
 0x54e   : > { %v2185_v51 = vpop.xlane.xlu0 %2184 }
 0x54f   : > { %3776 = vrcp.f32 %v2185_v51 }
 0x555   : > { %v3777_v31 = vpop.eup %3776 }
 0x556   : > { %v1758_v33 = vpop.f32.mrf.mxu0  ;;  %v2199_v53 = vmul.f32 %v3777_v31, %v4938_v25  ;;  %v2188_v59 = vpop.xlane.xlu0 %2187 }
 0x557   : > { %3778 = vrcp.f32 %v2188_v59 }
 0x558   : > { %v2205_v54 = vpack.c.bf16 %v2199_v53, %v2199_v53 }
 0x55a   : > { %v2251_v21 = vunpack.c.l.b16 %v2205_v54 }
 0x55c   : > { %v2253_v23 = vpack.c.b16 %v2251_v21, %v2250_v18 }
 0x55d   : > { %v3779_v11 = vpop.eup %3778 }
 0x55e   : > { %v1760_v0 = vpop.f32.mrf.mxu0  ;;  %3398 = vmatmul.msk.bf16.vlgmr.msrb.gmra.mxu1 %vm1405_vm10, %v2253_v23  ;;  %v2200_v16 = vmul.f32 %v3779_v11, %v4950_v46 }
 0x55f   : > { %v3619_v26 = vpack.i.bf16 %v1760_v0, %v1758_v33 }
 0x560   : > { %v2206_v50 = vpack.c.bf16 %v2200_v16, %v2200_v16 }
 0x561   : > { %3620 = vrot.lane.b32.xlu0 %v3619_v26, %s4100_s17 }
 0x562   : > { %v2252_v25 = vunpack.c.l.b16 %v2206_v50 }
 0x564   : > { %v2254_v28 = vpack.c.b16 %v2252_v25, %v2252_v25 }
 0x566   : > { %v1763_v13 = vpop.f32.mrf.mxu0  ;;  %v1798_v24 = vpop.f32.mrf.mxu1 }
 0x567   : > { %v3634_v15 = vpack.i.bf16 %v1798_v24, %v1763_v13 }
 0x569   : > { %3635 = vrot.lane.b32.xlu1 %v3634_v15, %s4100_s17 }
 0x56e   : > { %v1765_v37 = vpop.f32.mrf.mxu0  ;;  %v1800_v60 = vpop.f32.mrf.mxu1  ;;  %3399 = vmatmul.msk.bf16.gmra.mxu1 %vm1405_vm10, %v2254_v28 }
 0x576   : > { %v1998_v27 = vpop.f32.mrf.mxu0  ;;  %v1803_v48 = vpop.f32.mrf.mxu1 }
 0x577   : > { %v3649_v1 = vpack.i.bf16 %v1803_v48, %v1800_v60 }
 0x579   : > { %3650 = vrot.lane.b32.xlu0 %v3649_v1, %s4100_s17 }
 0x57e   : > { %v2000_v61 = vpop.f32.mrf.mxu0  ;;  %v1805_v34 = vpop.f32.mrf.mxu1 }
 0x57f   : > { %v3624_v46 = vpack.i.bf16 %v2000_v61, %v1998_v27 }
 0x581   : > { %3625 = vrot.lane.b32.xlu2 %v3624_v46, %s4101_s27 }
 0x59e   : > { %v2003_v49 = vpop.f32.mrf.mxu0 }
 0x5a6   : > { %v2005_v35 = vpop.f32.mrf.mxu0 }
 0x5ae   : > { %v2238_v58 = vpop.f32.mrf.mxu0 }
 0x5b5   : > { %v2038_v62 = vpop.f32.mrf.mxu1 }
 0x5b6   : > { %v2240_v30 = vpop.f32.mrf.mxu0  ;;  %v3639_v29 = vpack.i.bf16 %v2038_v62, %v2003_v49 }
 0x5b7   : > { %v3629_v10 = vpack.i.bf16 %v2240_v30, %v2238_v58 }
 0x5b9   : > { %3630 = vrot.lane.b32.xlu2 %v3629_v10, %s4102_s29 }
 0x5bd   : > { %v2040_v44 = vpop.f32.mrf.mxu1 }
 0x5be   : > { %v2243_v2 = vpop.f32.mrf.mxu0 }
 0x5c1   : > { %3640 = vrot.lane.b32.xlu2 %v3639_v29, %s4101_s27 }
 0x5c5   : > { %v2043_v45 = vpop.f32.mrf.mxu1 }
 0x5c6   : > { %v3654_v42 = vpack.i.bf16 %v2043_v45, %v2040_v44  ;;  %v2245_v47 = vpop.f32.mrf.mxu0 }
 0x5c9   : > { %3655 = vrot.lane.b32.xlu2 %v3654_v42, %s4101_s27  ;;  %v3804_v42 = vld [vmem:[#allocation2] sm:$0xff] }
 0x5cd   : > { %v2045_v55 = vpop.f32.mrf.mxu1 }
 0x5ce   : > { %v3805_v55 = vld [vmem:[#allocation2 + $0x8] sm:$0xff] }
 0x5d3   : > { %v3621_v56 = vpop.permute.xlu0 %3620 }
 0x5d4   : > { %v3623_v36 = vunpack.i.h.bf16 %v3621_v56  ;;  %v3622_v41 = vunpack.i.l.bf16 %v3621_v56 }
 0x5d6   : > { %v2360_v9 = vsel %vm1314_vm7, %v4948_v32, %v3623_v36  ;;  %v2359_v31 = vsel %vm1314_vm7, %v4936_v57, %v3622_v41  ;;  %v3808_v41 = vld [vmem:[#allocation2 + $0x20] sm:$0xff] }
 0x5db   : > { %v2278_v5 = vpop.f32.mrf.mxu1  ;;  %v3626_v14 = vpop.permute.xlu2 %3625 }
 0x5dc   : > { %v3644_v52 = vpack.i.bf16 %v2278_v5, %v2243_v2  ;;  %v3628_v8 = vunpack.i.h.bf16 %v3626_v14  ;;  %v3627_v51 = vunpack.i.l.bf16 %v3626_v14  ;;  %v3636_v23 = vpop.permute.xlu1 %3635 }
 0x5dd   : > { %v3638_v0 = vunpack.i.h.bf16 %v3636_v23  ;;  %v3637_v32 = vunpack.i.l.bf16 %v3636_v23 }
 0x5de   : > { %3645 = vrot.lane.b32.xlu1 %v3644_v52, %s4102_s29  ;;  %v2367_v53 = vsel %vm2365_vm11, %v2360_v9, %v3628_v8  ;;  %v2366_v59 = vsel %vm2365_vm11, %v2359_v31, %v3627_v51  ;;  %v3809_v9 = vld [vmem:[#allocation2 + $0x28] sm:$0xff] }
 0x5df   : > { %v2362_v50 = vsel %vm1314_vm7, %v4962_v6, %v3638_v0  ;;  %v2361_v13 = vsel %vm1314_vm7, %v4955_v19, %v3637_v32 }
 0x5e3   : > { %v2280_v20 = vpop.f32.mrf.mxu1 }
 0x5eb   : > { %v2283_v38 = vpop.f32.mrf.mxu1  ;;  %v3651_v48 = vpop.permute.xlu0 %3650 }
 0x5ec   : > { %v3659_v3 = vpack.i.bf16 %v2283_v38, %v2280_v20  ;;  %v3653_v61 = vunpack.i.h.bf16 %v3651_v48  ;;  %v3652_v6 = vunpack.i.l.bf16 %v3651_v48  ;;  %v3806_v20 = vld [vmem:[#allocation2 + $0x10] sm:$0xff] }
 0x5ee   : > { %3660 = vrot.lane.b32.xlu1 %v3659_v3, %s4102_s29  ;;  %v2364_v49 = vsel %vm1314_vm7, %v4968_v7, %v3653_v61  ;;  %v2363_v35 = vsel %vm1314_vm7, %v4966_v40, %v3652_v6 }
 0x5f3   : > { %v2285_v4 = vpop.f32.mrf.mxu1 }
 0x613   : > { %v3631_v22 = vpop.permute.xlu2 %3630 }
 0x614   : > { %v3633_v33 = vunpack.i.h.bf16 %v3631_v22  ;;  %v3632_v12 = vunpack.i.l.bf16 %v3631_v22 }
 0x616   : > { %v2372_v54 = vsel %vm1405_vm10, %v2366_v59, %v3632_v12  ;;  %v2373_v18 = vsel %vm1405_vm10, %v2367_v53, %v3633_v33 }
 0x617   : > { %v2378_v21 = vpack.c.bf16 %v2373_v18, %v2372_v54 }
 0x619   : > { %3408 = vmatmul.msk.bf16.vlgmr.msra.gmra.mxu2 %vm987_vm2, %v2378_v21 }
 0x61b   : > { %v3641_v11 = vpop.permute.xlu2 %3640 }
 0x61c   : > { %v3643_v26 = vunpack.i.h.bf16 %v3641_v11  ;;  %v3642_v16 = vunpack.i.l.bf16 %v3641_v11 }
 0x61e   : > { %v2369_v25 = vsel %vm2365_vm11, %v2362_v50, %v3643_v26  ;;  %v2368_v28 = vsel %vm2365_vm11, %v2361_v13, %v3642_v16 }
 0x623   : > { %v3656_v1 = vpop.permute.xlu2 %3655 }
 0x624   : > { %v3658_v34 = vunpack.i.h.bf16 %v3656_v1  ;;  %v3657_v46 = vunpack.i.l.bf16 %v3656_v1 }
 0x626   : > { %v2371_v30 = vsel %vm2365_vm11, %v2364_v49, %v3658_v34  ;;  %v2370_v10 = vsel %vm2365_vm11, %v2363_v35, %v3657_v46  ;;  %v3489_v35 = vld [vmem:[%s4379_s18 + $0x8] sm:$0xff] }
 0x627   : > { %2626 = vmatpush.bf16.msrb.mxu3 %v3489_v35 }
 0x650   : > { %v3646_v57 = vpop.permute.xlu1 %3645 }
 0x651   : > { %v3648_v24 = vunpack.i.h.bf16 %v3646_v57  ;;  %v3647_v15 = vunpack.i.l.bf16 %v3646_v57 }
 0x653   : > { %v2374_v37 = vsel %vm1405_vm10, %v2368_v28, %v3647_v15  ;;  %v2375_v60 = vsel %vm1405_vm10, %v2369_v25, %v3648_v24 }
 0x654   : > { %v2379_v27 = vpack.c.bf16 %v2375_v60, %v2374_v37 }
 0x656   : > { %3409 = vmatmul.msk.bf16.gmra.mxu2 %vm987_vm2, %v2379_v27 }
 0x660   : > { %v3661_v19 = vpop.permute.xlu1 %3660 }
 0x661   : > { %v3663_v58 = vunpack.i.h.bf16 %v3661_v19  ;;  %v3662_v62 = vunpack.i.l.bf16 %v3661_v19 }
 0x663   : > { %v2376_v44 = vsel %vm1405_vm10, %v2370_v10, %v3662_v62  ;;  %v2377_v2 = vsel %vm1405_vm10, %v2371_v30, %v3663_v58  ;;  %v3488_v10 = vld [vmem:[%s4379_s18] sm:$0xff] }
 0x664   : > { %v2380_v29 = vpack.c.bf16 %v2377_v2, %v2376_v44  ;;  %2627 = vmatpush.bf16.msrb.mxu3 %v3488_v10 }
 0x666   : > { %3410 = vmatmul.msk.bf16.gmra.mxu2 %vm987_vm2, %v2380_v29 }
 0x69c   : > { %v2415_v45 = vpop.f32.mrf.mxu2 }
 0x69d   : > { %v5017_v47 = vadd.f32 %v3804_v42, %v2415_v45 }
 0x69f   : > { %v2438_v40 = vsel %vm987_vm2, %v5017_v47, 0.0 }
 0x6a0   : > { %2439 = vadd.xlane.f32.xlu0 %v2438_v40 }
 0x6a4   : > { %v2417_v7 = vpop.f32.mrf.mxu2 }
 0x6a5   : > { %v5021_v43 = vadd.f32 %v3805_v55, %v2417_v7 }
 0x6a7   : > { %v2441_v5 = vsel %vm987_vm2, %v5021_v43, 0.0 }
 0x6a8   : > { %2442 = vadd.xlane.f32.xlu2 %v2441_v5 }
 0x6d9   : > { %v2420_v52 = vpop.f32.mrf.mxu2 }
 0x6da   : > { %v5025_v38 = vadd.f32 %v3806_v20, %v2420_v52 }
 0x6dc   : > { %v2444_v3 = vsel %vm987_vm2, %v5025_v38, 0.0 }
 0x6dd   : > { %2445 = vadd.xlane.f32.xlu1 %v2444_v3 }
 0x6e1   : > { %v2422_v4 = vpop.f32.mrf.mxu2 }
 0x6e2   : > { %v5029_v14 = vadd.f32 %v3807_v17, %v2422_v4 }
 0x6e4   : > { %v2447_v56 = vsel %vm987_vm2, %v5029_v14, 0.0 }
 0x6e5   : > { %2448 = vadd.xlane.f32.xlu0 %v2447_v56 }
 0x6e9   : > { %v2425_v36 = vpop.f32.mrf.mxu2 }
 0x6ea   : > { %v5033_v8 = vadd.f32 %v3808_v41, %v2425_v36  ;;  %v5089_v36 = vld [vmem:[%s5257_s26] ss:$0 sm:$0xff] }
 0x6ec   : > { %v2450_v51 = vsel %vm987_vm2, %v5033_v8, 0.0 }
 0x6ed   : > { %2451 = vadd.xlane.f32.xlu2 %v2450_v51 }
 0x6f1   : > { %v2427_v22 = vpop.f32.mrf.mxu2 }
 0x6f2   : > { %v5037_v31 = vadd.f32 %v3809_v9, %v2427_v22  ;;  %v5094_v9 = vld [vmem:[%s728_s5] ss:$0 sm:$0xff] }
 0x6f4   : > { %v2453_v33 = vsel %vm987_vm2, %v5037_v31, 0.0 }
 0x6f5   : > { %2454 = vadd.xlane.f32.xlu1 %v2453_v33 }
 0x713   : > { %v2440_v12 = vpop.xlane.xlu0 %2439 }
 0x714   : > { %v2456_v53 = vmul.f32 %v2440_v12, %v4411_v39 }
 0x716   : > { %v5043_v59 = vsub.f32 %v5017_v47, %v2456_v53 }
 0x718   : > { %v2468_v54 = vmul.f32 %v5043_v59, %v5043_v59 }
 0x71a   : > { %v2474_v18 = vsel %vm987_vm2, %v2468_v54, 0.0 }
 0x71b   : > { %v2443_v21 = vpop.xlane.xlu2 %2442  ;;  %2475 = vadd.xlane.f32.xlu0 %v2474_v18 }
 0x71c   : > { %v2457_v23 = vmul.f32 %v2443_v21, %v4411_v39 }
 0x71e   : > { %v5050_v11 = vsub.f32 %v5021_v43, %v2457_v23 }
 0x720   : > { %v2469_v0 = vmul.f32 %v5050_v11, %v5050_v11 }
 0x722   : > { %v2477_v32 = vsel %vm987_vm2, %v2469_v0, 0.0 }
 0x723   : > { %2478 = vadd.xlane.f32.xlu2 %v2477_v32 }
 0x750   : > { %v2446_v26 = vpop.xlane.xlu1 %2445 }
 0x751   : > { %v2458_v16 = vmul.f32 %v2446_v26, %v4411_v39 }
 0x753   : > { %v5057_v57 = vsub.f32 %v5025_v38, %v2458_v16 }
 0x755   : > { %v2470_v50 = vmul.f32 %v5057_v57, %v5057_v57 }
 0x757   : > { %v2480_v13 = vsel %vm987_vm2, %v2470_v50, 0.0 }
 0x758   : > { %v2449_v24 = vpop.xlane.xlu0 %2448  ;;  %2481 = vadd.xlane.f32.xlu1 %v2480_v13 }
 0x759   : > { %v2459_v15 = vmul.f32 %v2449_v24, %v4411_v39 }
 0x75b   : > { %v5064_v25 = vsub.f32 %v5029_v14, %v2459_v15 }
 0x75d   : > { %v2471_v28 = vmul.f32 %v5064_v25, %v5064_v25 }
 0x75f   : > { %v2483_v37 = vsel %vm987_vm2, %v2471_v28, 0.0 }
 0x760   : > { %2484 = vadd.xlane.f32.xlu0 %v2483_v37  ;;  %v2452_v60 = vpop.xlane.xlu2 %2451 }
 0x761   : > { %v2460_v27 = vmul.f32 %v2452_v60, %v4411_v39 }
 0x763   : > { %v5071_v48 = vsub.f32 %v5033_v8, %v2460_v27 }
 0x765   : > { %v2472_v1 = vmul.f32 %v5071_v48, %v5071_v48 }
 0x767   : > { %v2486_v61 = vsel %vm987_vm2, %v2472_v1, 0.0 }
 0x768   : > { %2487 = vadd.xlane.f32.xlu2 %v2486_v61  ;;  %v2455_v6 = vpop.xlane.xlu1 %2454 }
 0x769   : > { %v2461_v34 = vmul.f32 %v2455_v6, %v4411_v39 }
 0x76b   : > { %v5078_v46 = vsub.f32 %v5037_v31, %v2461_v34 }
 0x76d   : > { %v2473_v19 = vmul.f32 %v5078_v46, %v5078_v46 }
 0x76f   : > { %v2489_v49 = vsel %vm987_vm2, %v2473_v19, 0.0 }
 0x770   : > { %2490 = vadd.xlane.f32.xlu1 %v2489_v49 }
 0x78e   : > { %v2476_v58 = vpop.xlane.xlu0 %2475 }
 0x78f   : > { %v2492_v62 = vmul.f32 %v2476_v58, %v4411_v39 }
 0x791   : > { %v2498_v30 = vadd.f32 1e-05, %v2492_v62 }
 0x793   : > { %3780 = vrsqrt.f32 %v2498_v30  ;;  %vm2510_vm13 = vweird.f32 %v2498_v30 }
 0x796   : > { %v2479_v44 = vpop.xlane.xlu2 %2478 }
 0x797   : > { %v2493_v2 = vmul.f32 %v2479_v44, %v4411_v39 }
 0x799   : > { %v3781_v29 = vpop.eup %3780  ;;  %v2499_v45 = vadd.f32 1e-05, %v2493_v2 }
 0x79a   : > { %v2505_v42 = vmul.f32 %v3781_v29, %v2498_v30  ;;  %vm2511_vm12 = vweird.f32 %v3781_v29 }
 0x79b   : > { %3782 = vrsqrt.f32 %v2499_v45  ;;  %vm2512_vm14 = vmor %vm2510_vm13, %vm2511_vm12  ;;  %vm2520_vm0 = vweird.f32 %v2499_v45 }
 0x79c   : > { %v2506_v40 = vmul.f32 %v3781_v29, %v2505_v42 }
 0x79e   : > { %v2507_v7 = vmul.f32 0.5, %v2506_v40 }
 0x7a0   : > { %v2508_v55 = vsub.f32 1.5, %v2507_v7 }
 0x7a1   : > { %v3783_v5 = vpop.eup %3782 }
 0x7a2   : > { %v2509_v52 = vmul.f32 %v3781_v29, %v2508_v55  ;;  %v2515_v20 = vmul.f32 %v3783_v5, %v2499_v45  ;;  %vm2521_vm15 = vweird.f32 %v3783_v5 }
 0x7a3   : > { %vm2522_vm1 = vmor %vm2520_vm0, %vm2521_vm15 }
 0x7a4   : > { %v2516_v3 = vmul.f32 %v3783_v5, %v2515_v20  ;;  %v2513_v4 = vsel %vm2512_vm14, %v3781_v29, %v2509_v52 }
 0x7a5   : > { %v2564_v41 = vmul.f32 %v2513_v4, %v5043_v59 }
 0x7a6   : > { %v2517_v17 = vmul.f32 0.5, %v2516_v3 }
 0x7a7   : > { %v2573_v33 = vmul.f32 %v5089_v36, %v2564_v41 }
 0x7a8   : > { %v2518_v56 = vsub.f32 1.5, %v2517_v17 }
 0x7a9   : > { %v2582_v54 = vadd.f32 %v5094_v9, %v2573_v33 }
 0x7aa   : > { %v2519_v51 = vmul.f32 %v3783_v5, %v2518_v56 }
 0x7ac   : > { %v2523_v22 = vsel %vm2522_vm1, %v3783_v5, %v2519_v51 }
 0x7ad   : > { %v2565_v12 = vmul.f32 %v2523_v22, %v5050_v11 }
 0x7af   : > { %v2574_v53 = vmul.f32 %v5089_v36, %v2565_v12 }
 0x7b1   : > { %v2583_v18 = vadd.f32 %v5094_v9, %v2574_v53 }
 0x7b3   : > { %v2588_v21 = vpack.c.bf16 %v2583_v18, %v2582_v54 }
 0x7b5   : > { %3419 = vmatmul.msk.bf16.vlgmr.msrb.gmra.mxu3 %vm987_vm2, %v2588_v21 }
 0x7cb   : > { %v2482_v59 = vpop.xlane.xlu1 %2481 }
 0x7cc   : > { %v2494_v23 = vmul.f32 %v2482_v59, %v4411_v39 }
 0x7ce   : > { %v2500_v0 = vadd.f32 1e-05, %v2494_v23  ;;  %v3497_v23 = vld [vmem:[%s4384_s2 + $0x38] sm:$0xff] }
 0x7cf   : > { %2769 = vmatpush.bf16.msra.mxu0 %v3497_v23 }
 0x7d0   : > { %3784 = vrsqrt.f32 %v2500_v0  ;;  %vm2530_vm4 = vweird.f32 %v2500_v0 }
 0x7d3   : > { %v2485_v32 = vpop.xlane.xlu0 %2484 }
 0x7d4   : > { %v2495_v26 = vmul.f32 %v2485_v32, %v4411_v39  ;;  %v3494_v32 = vld [vmem:[%s4384_s2 + $0x20] sm:$0xff] }
 0x7d6   : > { %v3785_v16 = vpop.eup %3784  ;;  %v2501_v50 = vadd.f32 1e-05, %v2495_v26  ;;  %v3493_v26 = vld [vmem:[%s4384_s2 + $0x18] sm:$0xff] }
 0x7d7   : > { %v2525_v11 = vmul.f32 %v3785_v16, %v2500_v0  ;;  %vm2531_vm3 = vweird.f32 %v3785_v16  ;;  %v3496_v0 = vld [vmem:[%s4384_s2 + $0x30] sm:$0xff] }
 0x7d8   : > { %3786 = vrsqrt.f32 %v2501_v50  ;;  %vm2532_vm5 = vmor %vm2530_vm4, %vm2531_vm3  ;;  %vm2540_vm7 = vweird.f32 %v2501_v50  ;;  %2770 = vmatpush.bf16.msra.mxu0 %v3496_v0 }
 0x7d9   : > { %v2526_v13 = vmul.f32 %v3785_v16, %v2525_v11 }
 0x7db   : > { %v2527_v24 = vmul.f32 0.5, %v2526_v13  ;;  %v2488_v15 = vpop.xlane.xlu2 %2487 }
 0x7dc   : > { %v2496_v28 = vmul.f32 %v2488_v15, %v4411_v39 }
 0x7dd   : > { %v2528_v37 = vsub.f32 1.5, %v2527_v24 }
 0x7de   : > { %v3787_v60 = vpop.eup %3786  ;;  %v2502_v27 = vadd.f32 1e-05, %v2496_v28 }
 0x7df   : > { %v2529_v1 = vmul.f32 %v3785_v16, %v2528_v37  ;;  %v2535_v61 = vmul.f32 %v3787_v60, %v2501_v50  ;;  %vm2541_vm6 = vweird.f32 %v3787_v60  ;;  %v3668_v50 = vld [vmem:[%s737_s6] ss:$0 sm:$0xff] }
 0x7e0   : > { %3788 = vrsqrt.f32 %v2502_v27  ;;  %vm2542_vm8 = vmor %vm2540_vm7, %vm2541_vm6  ;;  %vm2550_vm10 = vweird.f32 %v2502_v27 }
 0x7e1   : > { %v2536_v6 = vmul.f32 %v3787_v60, %v2535_v61  ;;  %v2533_v34 = vsel %vm2532_vm5, %v3785_v16, %v2529_v1  ;;  %v3491_v16 = vld [vmem:[%s4384_s2 + $0x8] sm:$0xff] }
 0x7e2   : > { %v2566_v30 = vmul.f32 %v2533_v34, %v5057_v57 }
 0x7e3   : > { %v2537_v19 = vmul.f32 0.5, %v2536_v6  ;;  %v2491_v49 = vpop.xlane.xlu1 %2490 }
 0x7e4   : > { %v2497_v35 = vmul.f32 %v2491_v49, %v4411_v39  ;;  %v2575_v40 = vmul.f32 %v5089_v36, %v2566_v30 }
 0x7e5   : > { %v2538_v58 = vsub.f32 1.5, %v2537_v19 }
 0x7e6   : > { %v3789_v62 = vpop.eup %3788  ;;  %v2503_v10 = vadd.f32 1e-05, %v2497_v35  ;;  %v2584_v20 = vadd.f32 %v5094_v9, %v2575_v40 }
 0x7e7   : > { %v2539_v44 = vmul.f32 %v3787_v60, %v2538_v58  ;;  %v2545_v2 = vmul.f32 %v3789_v62, %v2502_v27  ;;  %vm2551_vm9 = vweird.f32 %v3789_v62 }
 0x7e8   : > { %3790 = vrsqrt.f32 %v2503_v10  ;;  %vm2552_vm11 = vmor %vm2550_vm10, %vm2551_vm9  ;;  %vm2560_vm13 = vweird.f32 %v2503_v10 }
 0x7e9   : > { %v2543_v29 = vsel %vm2542_vm8, %v3787_v60, %v2539_v44  ;;  %v2546_v45 = vmul.f32 %v3789_v62, %v2545_v2 }
 0x7ea   : > { %v2567_v42 = vmul.f32 %v2543_v29, %v5064_v25 }
 0x7eb   : > { %v2547_v7 = vmul.f32 0.5, %v2546_v45 }
 0x7ec   : > { %v2576_v55 = vmul.f32 %v5089_v36, %v2567_v42 }
 0x7ed   : > { %v2548_v5 = vsub.f32 1.5, %v2547_v7 }
 0x7ee   : > { %v3791_v52 = vpop.eup %3790  ;;  %v2585_v57 = vadd.f32 %v5094_v9, %v2576_v55 }
 0x7ef   : > { %v2549_v3 = vmul.f32 %v3789_v62, %v2548_v5  ;;  %v2555_v4 = vmul.f32 %v3791_v52, %v2503_v10  ;;  %vm2561_vm12 = vweird.f32 %v3791_v52 }
 0x7f0   : > { %v2589_v17 = vpack.c.bf16 %v2585_v57, %v2584_v20  ;;  %vm2562_vm14 = vmor %vm2560_vm13, %vm2561_vm12 }
 0x7f1   : > { %v2556_v56 = vmul.f32 %v3791_v52, %v2555_v4  ;;  %v2553_v25 = vsel %vm2552_vm11, %v3789_v62, %v2549_v3 }
 0x7f2   : > { %3420 = vmatmul.msk.bf16.gmra.mxu3 %vm987_vm2, %v2589_v17  ;;  %v2568_v22 = vmul.f32 %v2553_v25, %v5071_v48 }
 0x7f3   : > { %v2557_v41 = vmul.f32 0.5, %v2556_v56 }
 0x7f4   : > { %v2577_v54 = vmul.f32 %v5089_v36, %v2568_v22 }
 0x7f5   : > { %v2558_v51 = vsub.f32 1.5, %v2557_v41 }
 0x7f6   : > { %v2586_v21 = vadd.f32 %v5094_v9, %v2577_v54 }
 0x7f7   : > { %v2559_v33 = vmul.f32 %v3791_v52, %v2558_v51 }
 0x7f9   : > { %v2563_v12 = vsel %vm2562_vm14, %v3791_v52, %v2559_v33 }
 0x7fa   : > { %v2569_v53 = vmul.f32 %v2563_v12, %v5078_v46  ;;  %v3495_v46 = vld [vmem:[%s4384_s2 + $0x28] sm:$0xff] }
 0x7fb   : > { %2771 = vmatpush.bf16.msra.mxu0 %v3495_v46 }
 0x7fc   : > { %v2578_v18 = vmul.f32 %v5089_v36, %v2569_v53  ;;  %v3492_v36 = vld [vmem:[%s4384_s2 + $0x10] sm:$0xff] }
 0x7fe   : > { %v2587_v59 = vadd.f32 %v5094_v9, %v2578_v18  ;;  %v3490_v9 = vld [vmem:[%s4384_s2] sm:$0xff] }
 0x7ff   : > { %2772 = vmatpush.bf16.msra.mxu0 %v3494_v32 }
 0x800   : > { %v2590_v48 = vpack.c.bf16 %v2587_v59, %v2586_v21 }
 0x802   : > { %3421 = vmatmul.msk.bf16.gmra.mxu3 %vm987_vm2, %v2590_v48 }
 0x803   : > { %2773 = vmatpush.bf16.msra.mxu0 %v3493_v26 }
 0x807   : > { %2774 = vmatpush.bf16.msra.mxu0 %v3492_v36 }
 0x80b   : > { %2775 = vmatpush.bf16.msra.mxu0 %v3491_v16 }
 0x80f   : > { %2776 = vmatpush.bf16.msra.mxu0 %v3490_v9 }
 0x838   : > { %v2629_v11 = vpop.f32.mrf.mxu3 }
 0x839   : > { %v2630_v13 = vadd.f32 %v3668_v50, %v2629_v11 }
 0x83b   : > { %v2650_v24 = vmul.f32 0.044715, %v2630_v13  ;;  %v2644_v30 = vmul.f32 0.5, %v2630_v13 }
 0x83d   : > { %v2656_v15 = vmul.f32 %v2650_v24, %v2630_v13 }
 0x83f   : > { %v2662_v28 = vmul.f32 %v2656_v15, %v2630_v13 }
 0x840   : > { %v2631_v37 = vpop.f32.mrf.mxu3 }
 0x841   : > { %v2668_v60 = vadd.f32 %v2662_v28, %v2630_v13  ;;  %v2632_v27 = vadd.f32 %v3668_v50, %v2631_v37 }
 0x843   : > { %v2651_v1 = vmul.f32 0.044715, %v2632_v27  ;;  %v2674_v61 = vmul.f32 0.7978846, %v2668_v60  ;;  %v2645_v10 = vmul.f32 0.5, %v2632_v27 }
 0x845   : > { %v2657_v6 = vmul.f32 %v2651_v1, %v2632_v27  ;;  %3792 = vtanh.f32 %v2674_v61 }
 0x847   : > { %v2663_v34 = vmul.f32 %v2657_v6, %v2632_v27 }
 0x849   : > { %v2669_v19 = vadd.f32 %v2663_v34, %v2632_v27 }
 0x84b   : > { %v2675_v49 = vmul.f32 0.7978846, %v2669_v19  ;;  %v3793_v35 = vpop.eup %3792 }
 0x84c   : > { %v2686_v58 = vadd.f32 1.0, %v3793_v35 }
 0x84d   : > { %3794 = vtanh.f32 %v2675_v49  ;;  %v3669_v49 = vld [vmem:[%s746_s21] ss:$0 sm:$0xff] }
 0x84e   : > { %v2692_v2 = vmul.f32 %v2686_v58, %v2644_v30 }
 0x853   : > { %v3795_v62 = vpop.eup %3794 }
 0x854   : > { %v2687_v44 = vadd.f32 1.0, %v3795_v62 }
 0x856   : > { %v2693_v29 = vmul.f32 %v2687_v44, %v2645_v10 }
 0x858   : > { %v2698_v45 = vpack.c.bf16 %v2693_v29, %v2692_v2 }
 0x85a   : > { %2777 = vmatmul.bf16.vlgmr.msra.gmra.mxu0 %v2698_v45 }
 0x875   : > { %v2634_v42 = vpop.f32.mrf.mxu3 }
 0x876   : > { %v2635_v40 = vadd.f32 %v3668_v50, %v2634_v42 }
 0x878   : > { %v2652_v7 = vmul.f32 0.044715, %v2635_v40  ;;  %v2646_v46 = vmul.f32 0.5, %v2635_v40 }
 0x87a   : > { %v2658_v55 = vmul.f32 %v2652_v7, %v2635_v40 }
 0x87c   : > { %v2664_v5 = vmul.f32 %v2658_v55, %v2635_v40 }
 0x87d   : > { %v2636_v52 = vpop.f32.mrf.mxu3 }
 0x87e   : > { %v2637_v20 = vadd.f32 %v3668_v50, %v2636_v52  ;;  %v2670_v57 = vadd.f32 %v2664_v5, %v2635_v40 }
 0x880   : > { %v2653_v3 = vmul.f32 0.044715, %v2637_v20  ;;  %v2676_v17 = vmul.f32 0.7978846, %v2670_v57  ;;  %v2647_v32 = vmul.f32 0.5, %v2637_v20 }
 0x882   : > { %v2659_v4 = vmul.f32 %v2653_v3, %v2637_v20  ;;  %3796 = vtanh.f32 %v2676_v17 }
 0x884   : > { %v2665_v56 = vmul.f32 %v2659_v4, %v2637_v20 }
 0x885   : > { %v2639_v25 = vpop.f32.mrf.mxu3 }
 0x886   : > { %v2640_v41 = vadd.f32 %v3668_v50, %v2639_v25  ;;  %v2671_v51 = vadd.f32 %v2665_v56, %v2637_v20 }
 0x888   : > { %v2654_v22 = vmul.f32 0.044715, %v2640_v41  ;;  %v2677_v33 = vmul.f32 0.7978846, %v2671_v51  ;;  %v3797_v53 = vpop.eup %3796  ;;  %v2648_v27 = vmul.f32 0.5, %v2640_v41 }
 0x889   : > { %v2688_v48 = vadd.f32 1.0, %v3797_v53 }
 0x88a   : > { %v2660_v12 = vmul.f32 %v2654_v22, %v2640_v41  ;;  %3798 = vtanh.f32 %v2677_v33 }
 0x88b   : > { %v2694_v9 = vmul.f32 %v2688_v48, %v2646_v46 }
 0x88c   : > { %v2666_v54 = vmul.f32 %v2660_v12, %v2640_v41 }
 0x88d   : > { %v2641_v18 = vpop.f32.mrf.mxu3 }
 0x88e   : > { %v2642_v21 = vadd.f32 %v3668_v50, %v2641_v18  ;;  %v2672_v59 = vadd.f32 %v2666_v54, %v2640_v41 }
 0x890   : > { %v3799_v23 = vpop.eup %3798  ;;  %v2655_v0 = vmul.f32 0.044715, %v2642_v21  ;;  %v2678_v16 = vmul.f32 0.7978846, %v2672_v59  ;;  %v2649_v1 = vmul.f32 0.5, %v2642_v21 }
 0x891   : > { %v2689_v26 = vadd.f32 1.0, %v3799_v23 }
 0x892   : > { %v2661_v36 = vmul.f32 %v2655_v0, %v2642_v21  ;;  %3800 = vtanh.f32 %v2678_v16 }
 0x893   : > { %v2695_v11 = vmul.f32 %v2689_v26, %v2647_v32 }
 0x894   : > { %v2667_v13 = vmul.f32 %v2661_v36, %v2642_v21 }
 0x895   : > { %v2699_v24 = vpack.c.bf16 %v2695_v11, %v2694_v9 }
 0x896   : > { %v2673_v15 = vadd.f32 %v2667_v13, %v2642_v21 }
 0x897   : > { %2782 = vmatmul.bf16.gmra.mxu0 %v2699_v24 }
 0x898   : > { %v2679_v28 = vmul.f32 0.7978846, %v2673_v15  ;;  %v3801_v50 = vpop.eup %3800 }
 0x899   : > { %v2690_v37 = vadd.f32 1.0, %v3801_v50 }
 0x89a   : > { %3802 = vtanh.f32 %v2679_v28 }
 0x89b   : > { %v2696_v6 = vmul.f32 %v2690_v37, %v2648_v27 }
 0x8a0   : > { %v3803_v60 = vpop.eup %3802 }
 0x8a1   : > { %v2691_v61 = vadd.f32 1.0, %v3803_v60 }
 0x8a3   : > { %v2697_v34 = vmul.f32 %v2691_v61, %v2649_v1 }
 0x8a5   : > { %v2700_v19 = vpack.c.bf16 %v2697_v34, %v2696_v6 }
 0x8a7   : > { %2787 = vmatmul.bf16.gmra.mxu0 %v2700_v19 }
 0x8d7   : > { %v2778_v35 = vpop.f32.mrf.mxu0 }
 0x8d8   : > { %v2779_v58 = vadd.f32 %v3669_v49, %v2778_v35 }
 0x8da   : > { %v2793_v62 = vadd.f32 %v2779_v58, %v5017_v47 }
 0x8dc   : > { %2799 = vst.msk [vmem:[#allocation2] sm:$0xff] %vm987_vm2, %v2793_v62 }
 0x8df   : > { %v2780_v30 = vpop.f32.mrf.mxu0 }
 0x8e0   : > { %v2781_v10 = vadd.f32 %v3669_v49, %v2780_v30 }
 0x8e2   : > { %v2794_v44 = vadd.f32 %v2781_v10, %v5021_v43 }
 0x8e4   : > { %2800 = vst.msk [vmem:[#allocation2 + $0x8] sm:$0xff] %vm987_vm2, %v2794_v44 }
 0x914   : > { %v2783_v2 = vpop.f32.mrf.mxu0 }
 0x915   : > { %v2784_v29 = vadd.f32 %v3669_v49, %v2783_v2 }
 0x917   : > { %v2795_v45 = vadd.f32 %v2784_v29, %v5025_v38 }
 0x919   : > { %2801 = vst.msk [vmem:[#allocation2 + $0x10] sm:$0xff] %vm987_vm2, %v2795_v45 }
 0x91c   : > { %v2785_v42 = vpop.f32.mrf.mxu0 }
 0x91d   : > { %v2786_v40 = vadd.f32 %v3669_v49, %v2785_v42 }
 0x91f   : > { %v2796_v7 = vadd.f32 %v2786_v40, %v5029_v14 }
 0x921   : > { %2802 = vst.msk [vmem:[#allocation2 + $0x18] sm:$0xff] %vm987_vm2, %v2796_v7 }
 0x924   : > { %v2788_v47 = vpop.f32.mrf.mxu0 }
 0x925   : > { %v2789_v55 = vadd.f32 %v3669_v49, %v2788_v47 }
 0x927   : > { %v2797_v5 = vadd.f32 %v2789_v55, %v5033_v8 }
 0x929   : > { %2803 = vst.msk [vmem:[#allocation2 + $0x20] sm:$0xff] %vm987_vm2, %v2797_v5 }
 0x92c   : > { %v2790_v43 = vpop.f32.mrf.mxu0 }
 0x92d   : > { %v2791_v52 = vadd.f32 %v3669_v49, %v2790_v43  ;;  %2808 = sbr.rel (%p3454_p3) target bundleno = 2917 (0xb65), region = 124 }
 0x92f   : > { %v2798_v20 = vadd.f32 %v2791_v52, %v5037_v31 }
 0x931   : > { %2804 = vst.msk [vmem:[#allocation2 + $0x28] sm:$0xff] %vm987_vm2, %v2798_v20 }
 0x932   : > { %v2811_v38 = vsel %vm987_vm2, %v2793_v62, 0.0  ;;  %v2820_v14 = vsel %vm987_vm2, %v2796_v7, 0.0  ;;  %v3499_v53 = vld [vmem:[%s5258_s30 + $0x8] sm:$0xff]  ;;  %v3498_v54 = vld [vmem:[%s5259_s12] sm:$0xff]  ;;  %v2962_v13 = vshrl.u32 %v1295_v63, 7  ;;  %vm3012_vm7 = vcmask 1041409  }
 0x933   : > { %2812 = vadd.xlane.f32.xlu0 %v2811_v38  ;;  %3036 = vmatpush.bf16.msra.mxu0 %v3499_v53  ;;  %v3810_v9 = vld [vmem:[%s5260_s16] ss:$0 sm:$0xff]  ;;  %vm3044_vm8 = vcmask 1041408  }
 0x934   : > { %v3811_v15 = vld [vmem:[%s5261_s25] ss:$0 sm:$0xff]  ;;  %vm2965_vm4 = vcmp.eq.s32.totalorder %v2962_v13, 0 }
 0x937   : > { %3037 = vmatpush.bf16.msra.mxu0 %v3498_v54 }
 0x93b   : > { %2821 = vadd.xlane.f32.xlu0 %v2820_v14 }
 0x9a6   : > { %v2813_v57 = vpop.xlane.xlu0 %2812 }
 0x9a7   : > { %v2829_v8 = vmul.f32 %v2813_v57, %v4411_v39 }
 0x9a9   : > { %v2835_v3 = vsub.f32 %v2793_v62, %v2829_v8 }
 0x9ab   : > { %v2841_v4 = vmul.f32 %v2835_v3, %v2835_v3 }
 0x9ad   : > { %v2847_v17 = vsel %vm987_vm2, %v2841_v4, 0.0 }
 0x9ae   : > { %2848 = vadd.xlane.f32.xlu1 %v2847_v17  ;;  %v2822_v31 = vpop.xlane.xlu0 %2821 }
 0x9af   : > { %v2832_v56 = vmul.f32 %v2822_v31, %v4411_v39 }
 0x9b1   : > { %v2838_v25 = vsub.f32 %v2796_v7, %v2832_v56 }
 0x9b3   : > { %v2844_v41 = vmul.f32 %v2838_v25, %v2838_v25 }
 0x9b5   : > { %v2856_v51 = vsel %vm987_vm2, %v2844_v41, 0.0 }
 0x9b6   : > { %2857 = vadd.xlane.f32.xlu1 %v2856_v51 }
 0xa21   : > { %v2849_v22 = vpop.xlane.xlu1 %2848 }
 0xa22   : > { %v2865_v33 = vmul.f32 %v2849_v22, %v4411_v39 }
 0xa24   : > { %v2871_v12 = vadd.f32 1e-05, %v2865_v33 }
 0xa26   : > { %3812 = vrsqrt.f32 %v2871_v12  ;;  %vm2883_vm0 = vweird.f32 %v2871_v12 }
 0xa29   : > { %v2858_v18 = vpop.xlane.xlu1 %2857 }
 0xa2a   : > { %v2868_v21 = vmul.f32 %v2858_v18, %v4411_v39 }
 0xa2c   : > { %v3813_v59 = vpop.eup %3812  ;;  %v2874_v48 = vadd.f32 1e-05, %v2868_v21 }
 0xa2d   : > { %v2878_v23 = vmul.f32 %v3813_v59, %v2871_v12  ;;  %vm2884_vm15 = vweird.f32 %v3813_v59 }
 0xa2e   : > { %3814 = vrsqrt.f32 %v2874_v48  ;;  %vm2885_vm1 = vmor %vm2883_vm0, %vm2884_vm15  ;;  %vm2913_vm5 = vweird.f32 %v2874_v48 }
 0xa2f   : > { %v2879_v0 = vmul.f32 %v3813_v59, %v2878_v23 }
 0xa31   : > { %v2880_v46 = vmul.f32 0.5, %v2879_v0 }
 0xa33   : > { %v2881_v32 = vsub.f32 1.5, %v2880_v46 }
 0xa34   : > { %v3815_v26 = vpop.eup %3814 }
 0xa35   : > { %v2882_v36 = vmul.f32 %v3813_v59, %v2881_v32  ;;  %v2908_v16 = vmul.f32 %v3815_v26, %v2874_v48  ;;  %vm2914_vm3 = vweird.f32 %v3815_v26 }
 0xa36   : > { %vm2915_vm6 = vmor %vm2913_vm5, %vm2914_vm3 }
 0xa37   : > { %v2886_v11 = vsel %vm2885_vm1, %v3813_v59, %v2882_v36  ;;  %v2909_v39 = vmul.f32 %v3815_v26, %v2908_v16 }
 0xa38   : > { %v2937_v24 = vmul.f32 %v2886_v11, %v2835_v3 }
 0xa39   : > { %v2910_v28 = vmul.f32 0.5, %v2909_v39 }
 0xa3a   : > { %v2946_v50 = vmul.f32 %v3810_v9, %v2937_v24 }
 0xa3b   : > { %v2911_v37 = vsub.f32 1.5, %v2910_v28 }
 0xa3c   : > { %v2955_v60 = vadd.f32 %v3811_v15, %v2946_v50 }
 0xa3d   : > { %v2912_v27 = vmul.f32 %v3815_v26, %v2911_v37 }
 0xa3e   : > { %v2974_v1 = vsel %vm2965_vm4, %v2955_v60, 0.0 }
 0xa3f   : > { %v2916_v61 = vsel %vm2915_vm6, %v3815_v26, %v2912_v27  ;;  %v2980_v6 = vsel %vm987_vm2, %v2974_v1, 0.0 }
 0xa40   : > { %v2940_v34 = vmul.f32 %v2916_v61, %v2838_v25  ;;  %v2985_v63 = vrot.slane %v2980_v6, 4 }
 0xa42   : > { %v2949_v19 = vmul.f32 %v3810_v9, %v2940_v34  ;;  %v2986_v49 = vadd.f32 %v2985_v63, %v2980_v6 }
 0xa44   : > { %v2958_v35 = vadd.f32 %v3811_v15, %v2949_v19  ;;  %v2987_v58 = vrot.slane %v2986_v49, 2 }
 0xa46   : > { %v2977_v62 = vsel %vm2965_vm4, %v2958_v35, 0.0  ;;  %v2988_v30 = vadd.f32 %v2987_v58, %v2986_v49 }
 0xa47   : > { %v2991_v10 = vsel %vm987_vm2, %v2977_v62, 0.0 }
 0xa48   : > { %v2996_v44 = vrot.slane %v2991_v10, 4  ;;  %v2989_v2 = vrot.slane %v2988_v30, 1 }
 0xa4a   : > { %v2997_v29 = vadd.f32 %v2996_v44, %v2991_v10  ;;  %v2990_v42 = vadd.f32 %v2989_v2, %v2988_v30 }
 0xa4c   : > { %v2998_v45 = vrot.slane %v2997_v29, 2  ;;  %v3002_v55 = vpack.c.bf16 %v2990_v42, %v2990_v42 }
 0xa4e   : > { %v2999_v40 = vadd.f32 %v2998_v45, %v2997_v29  ;;  %v3010_v43 = vunpack.c.l.b16 %v3002_v55 }
 0xa50   : > { %v3000_v7 = vrot.slane %v2999_v40, 1 }
 0xa52   : > { %v3001_v47 = vadd.f32 %v3000_v7, %v2999_v40 }
 0xa54   : > { %v3003_v5 = vpack.c.bf16 %v3001_v47, %v3001_v47 }
 0xa56   : > { %v3011_v52 = vunpack.c.l.b16 %v3003_v5 }
 0xa58   : > { %v3013_v20 = vsel %vm3012_vm7, %v3011_v52, %v3010_v43 }
 0xa59   : > { %v3014_v38 = vpack.c.b16 %v3013_v20, %v3013_v20 }
 0xa5b   : > { %3463 = vmatmul.msk.bf16.vlgmr.msra.gmra.mxu0 %vm987_vm2, %v3014_v38 }
 0xad8   : > { %v3039_v14 = vpop.f32.mrf.mxu0 }
 0xad9   : > { %v3043_v57 = vmul.f32 %v3039_v14, %v3039_v14 }
 0xadb   : > { %v3045_v8 = vsel %vm3044_vm8, %v3043_v57, 0.0 }
 0xadc   : > { %3046 = vadd.xlane.f32.xlu2 %v3045_v8 }
 0xae0   : > { %v3041_v3 = vpop.f32.mrf.mxu0 }
 0xb4f   : > { %v3047_v4 = vpop.xlane.xlu2 %3046 }
 0xb50   : > { %3816 = vrsqrt.f32 %v3047_v4  ;;  %vm3054_vm10 = vweird.f32 %v3047_v4 }
 0xb56   : > { %v3817_v17 = vpop.eup %3816 }
 0xb57   : > { %v3049_v31 = vmul.f32 %v3817_v17, %v3047_v4  ;;  %vm3055_vm9 = vweird.f32 %v3817_v17 }
 0xb58   : > { %vm3056_vm11 = vmor %vm3054_vm10, %vm3055_vm9 }
 0xb59   : > { %v3050_v56 = vmul.f32 %v3817_v17, %v3049_v31 }
 0xb5b   : > { %v3051_v25 = vmul.f32 0.5, %v3050_v56 }
 0xb5d   : > { %v3052_v41 = vsub.f32 1.5, %v3051_v25 }
 0xb5f   : > { %v3053_v51 = vmul.f32 %v3817_v17, %v3052_v41 }
 0xb61   : > { %v3057_v22 = vsel %vm3056_vm11, %v3817_v17, %v3053_v51 }
 0xb62   : > { %v3058_v33 = vmul.f32 %v3057_v22, %v3039_v14 }
 0xb64   : > { %3059 = vst [vmem:[#allocation12] sm:$0x3] %v3058_v33 }
 0xb65 PF: > { %p3555_p4 = scmp.eq.s32.totalorder %s4228_s1, 1  ;;  %s5262_s11 = sld [smem:[#allocation35_spill]] }
 0xb66   : > { %s4103_s24 = smov [#allocation12]  }
 0xb67   : > { %s3068_s23 = sshll.u32 %s4103_s24, 4  ;;  %s3069_s23 = int_to_ptr.vmem [resolvable:$true] %s3068_s23 }
 0xb6b   : > { %s3070_s19 = sshll.u32 %s5262_s11, 4  ;;  %s3071_s19 = int_to_ptr.hbm [resolvable:$true] %s3070_s19 }
 0xb6c   : > { %3527 = dma.vmem_to_hbm [thread:$0]  (%p3555_p4), %s3069_s23, 32, %s3071_s19, [#allocation5]  }
 0xb6d   : > { %4063 = dma.done.wait (%p3555_p4), [#allocation5], 32  }
 0xb6e   : > { %4065 = vsyncadd (%p3555_p4), [#allocation5], 4294967264 }
 0xb6f PF: > { %s5263_s10 = sld [smem:[#allocation18_spill]]  ;;  %s5267_s27 = smov %s4072_s28 }
 0xb70   : > { %s5264_s17 = sld [smem:[#allocation17_spill]]  ;;  %s5269_s30 = smov %s4084_s0 }
 0xb71   : > { %s5265_s29 = sld [smem:[#allocation20_spill]] }
 0xb72   : > { %s5266_s1 = sld [smem:[#allocation19_spill]] }
 0xb75   : > { %s31_s19 = sadd.s32 1, %s5263_s10  }
 0xb76   : > { %p28_p5 = scmp.ge.s32.totalorder %s31_s19, 4   ;;  %s5268_s28 = smov %s5264_s17 }
 0xb78   : > { %s5270_s0 = smov %s5266_s1  ;;  %30 = sbr.rel (!%p28_p5) target bundleno = 21 (0x15), region = 203 }
 0xb7d   :  { %3084 = vsyncpa [#allocation4], 1 }
 0xb7e   :  { %3086 = vsyncpa [#allocation4 + $0x1], 1 }
 0xb7f   :  { %3087 = vsyncpa [#allocation7], 1 }
 0xb80   :  { %3088 = vsyncpa [#allocation5], 1 }
 0xb81   :  { %3090 = vsyncpa [#allocation5 + $0x1], 1 }

</bundles_post_ra>
